<compile_context>
chip_gen: v7x
topology: tpu7x:2x2x1
jax: 0.10.0
libtpu: 0.0.40
codegen_flags: <defaults>
</compile_context>

<pallas_src>
import functools
import math

import jax
import jax.numpy as jnp
from jax.experimental import pallas as pl
from jax.experimental.pallas import tpu as pltpu

_BN_EPS = 1e-5
_LANE = 128
_CHAN_ALIGN = 16          # bf16 sublane packing -> pad channel dims to mult of 16
_PAD = 5                  # largest dilation/padding in DWR (the d5 branch)

_COMPILER_PARAMS = pltpu.CompilerParams(
    dimension_semantics=("parallel",),
    vmem_limit_bytes=32 * 1024 * 1024,
)


# -----------------------------------------------------------------------------
# Small helpers
# -----------------------------------------------------------------------------
def _round_up(x, m):
  return (x + m - 1) // m * m


def _pad_to(a, shape):
  return jnp.pad(a, [(0, t - s) for s, t in zip(a.shape, shape)])


def _pick_tm(m):
  """Lane tile: multiple of 128, as large as possible, >=2 grid steps if we can."""
  for t in (2048, 1024, 512, 256, 128):
    if m % t == 0 and m // t >= 2:
      return t
  for t in (2048, 1024, 512, 256, 128):
    if m % t == 0:
      return t
  return m  # fallback: full M (lane-masked stores, correctness only)


class _Canvas:
  """Zero-padded spatial canvas, flattened per image.

  Row stride Wc and guard rows are chosen so that (a) every 3x3 tap of any
  dilation <= _PAD is a constant in-bounds lane shift of the flat canvas and
  (b) the output window starts at a 128-aligned lane offset.
  """

  def __init__(self, h, w, pad=_PAD):
    self.h, self.w, self.pad = h, w, pad
    self.wc = _round_up(w + 2 * pad, 32)              # row stride (lane friendly)
    step = _LANE // math.gcd(self.wc, _LANE)
    self.r0 = _round_up(pad + 1, step)                # top guard rows
    self.hc = self.r0 + h + pad + 1                   # bottom guard >= pad+1
    self.win_start = self.r0 * self.wc                # output-window lane offset
    self.win_len = h * self.wc                        # output-window length
    self.lc = _round_up(self.hc * self.wc, _LANE)     # flat canvas length

  def tap_offsets(self, d):
    return [((kh - 1) * d) * self.wc + (kw - 1) * d
            for kh in range(3) for kw in range(3)]


def _window_mask(cv):
  """1.0 on real image columns, 0.0 on the per-row right/left guard columns."""
  col = jnp.arange(cv.win_len, dtype=jnp.int32) % cv.wc
  ok = (col >= cv.pad) & (col < cv.pad + cv.w)
  return ok.astype(jnp.float32).reshape(1, cv.win_len)


# -----------------------------------------------------------------------------
# Pallas kernels
# -----------------------------------------------------------------------------
def _make_pointwise_kernel(n_in):
  """out = relu(sum_i W_i @ x_i + shift); bias/BN already folded into W/shift."""

  def kernel(*refs):
    x_refs = refs[:n_in]
    w_refs = refs[n_in:2 * n_in]
    shift_ref = refs[2 * n_in]
    out_ref = refs[2 * n_in + 1]
    acc = jnp.zeros(out_ref.shape, jnp.float32)
    for xr, wr in zip(x_refs, w_refs):   # split-Cin partial dots (no HBM concat)
      acc = acc + jnp.dot(wr[...], xr[...], preferred_element_type=jnp.float32)
    out_ref[...] = jnp.maximum(acc + shift_ref[...], 0.0).astype(out_ref.dtype)

  return kernel


def _make_head_kernel(offsets, wstart, wl, lc):
  """Fused Bottleneck.cv1 (3x3, d=1) + DWRSeg_Conv.conv (1x1): canvas -> canvas."""
  lo, hi = wstart, lc - wstart - wl

  def kernel(a_ref, wu_ref, su_ref, wp_ref, sp_ref, mask_ref, out_ref):
    # taps generated in-VMEM from the single padded canvas (no HBM im2col),
    # concatenated into one deep (9*Cin) bf16 contraction.
    taps = jnp.concatenate(
        [a_ref[0, :, pl.ds(wstart + off, wl)] for off in offsets], axis=0)
    u = jnp.maximum(
        jnp.dot(wu_ref[...], taps, preferred_element_type=jnp.float32)
        + su_ref[...], 0.0)
    p = jnp.maximum(
        jnp.dot(wp_ref[...], u.astype(jnp.bfloat16),
                preferred_element_type=jnp.float32) + sp_ref[...], 0.0)
    p = p * mask_ref[...]                       # keep canvas border exactly zero
    cout = out_ref.shape[1]
    if lo > 0:
      out_ref[0, :, pl.ds(0, lo)] = jnp.zeros((cout, lo), out_ref.dtype)
    out_ref[0, :, pl.ds(wstart, wl)] = p.astype(out_ref.dtype)
    if hi > 0:
      out_ref[0, :, pl.ds(wstart + wl, hi)] = jnp.zeros((cout, hi), out_ref.dtype)

  return kernel


def _make_canvas_conv_kernel(offsets, wstart, wl, lc):
  """Single 3x3 conv (+folded BN, ReLU), canvas -> canvas."""
  lo, hi = wstart, lc - wstart - wl

  def kernel(x_ref, w_ref, s_ref, mask_ref, out_ref):
    taps = jnp.concatenate(
        [x_ref[0, :, pl.ds(wstart + off, wl)] for off in offsets], axis=0)
    z = jnp.maximum(
        jnp.dot(w_ref[...], taps, preferred_element_type=jnp.float32)
        + s_ref[...], 0.0) * mask_ref[...]
    cout = out_ref.shape[1]
    if lo > 0:
      out_ref[0, :, pl.ds(0, lo)] = jnp.zeros((cout, lo), out_ref.dtype)
    out_ref[0, :, pl.ds(wstart, wl)] = z.astype(out_ref.dtype)
    if hi > 0:
      out_ref[0, :, pl.ds(wstart + wl, hi)] = jnp.zeros((cout, hi), out_ref.dtype)

  return kernel


def _make_dwr_tail_kernel(branch_offsets, wstart, wl):
  """Fused DWR tail: d1/d3/d5 branches + conv_1x1 (split-Cin "concat") + residual
  p + DWRSeg BatchNorm + tanh-GELU + bottleneck shortcut a.  x_ is read ONCE."""

  def kernel(x_ref, p_ref, a_ref, wd_ref, sd_ref, w11_ref, s11_ref,
             bns_ref, bnb_ref, out_ref):
    cout = out_ref.shape[1]
    acc = jnp.zeros((cout, wl), jnp.float32)
    for bi, offsets in enumerate(branch_offsets):
      taps = jnp.concatenate(
          [x_ref[0, :, pl.ds(wstart + off, wl)] for off in offsets], axis=0)
      xb = jnp.maximum(
          jnp.dot(wd_ref[bi], taps, preferred_element_type=jnp.float32)
          + sd_ref[bi], 0.0)
      acc = acc + jnp.dot(w11_ref[bi], xb.astype(jnp.bfloat16),
                          preferred_element_type=jnp.float32)
    q = jnp.maximum(acc + s11_ref[...], 0.0)                   # relu(bn(conv_1x1))
    q = q + p_ref[0, :, pl.ds(wstart, wl)].astype(jnp.float32)  # DWR residual (+x)
    z = q * bns_ref[...] + bnb_ref[...]                         # DWRSeg BatchNorm
    # tanh-approx GELU (routes through the EUP; nn.GELU default erf ~= this)
    g = 0.5 * z * (1.0 + jnp.tanh(0.7978845608028654 * (z + 0.044715 * z * z * z)))
    y = g + a_ref[0, :, pl.ds(wstart, wl)].astype(jnp.float32)  # bottleneck shortcut
    out_ref[0, :, :] = y.astype(out_ref.dtype)

  return kernel


# -----------------------------------------------------------------------------
# pallas_call wrappers
# -----------------------------------------------------------------------------
def _pointwise_conv(xs, ws, shift, out_dtype):
  m = xs[0].shape[1]
  cout = ws[0].shape[0]
  tm = _pick_tm(m)
  in_specs = [pl.BlockSpec((x.shape[0], tm), lambda j: (0, j)) for x in xs]
  in_specs += [pl.BlockSpec(w.shape, lambda j: (0, 0)) for w in ws]
  in_specs += [pl.BlockSpec(shift.shape, lambda j: (0, 0))]
  return pl.pallas_call(
      _make_pointwise_kernel(len(xs)),
      out_shape=jax.ShapeDtypeStruct((cout, m), out_dtype),
      grid=(m // tm,),
      in_specs=in_specs,
      out_specs=pl.BlockSpec((cout, tm), lambda j: (0, j)),
      compiler_params=_COMPILER_PARAMS,
  )(*xs, *ws, shift)


def _bottleneck_head(a_c, wu, su, wp, sp, mask, cv):
  n, cp, lc = a_c.shape
  return pl.pallas_call(
      _make_head_kernel(cv.tap_offsets(1), cv.win_start, cv.win_len, cv.lc),
      out_shape=jax.ShapeDtypeStruct((n, cp, lc), jnp.bfloat16),
      grid=(n,),
      in_specs=[
          pl.BlockSpec((1, cp, lc), lambda i: (i, 0, 0)),
          pl.BlockSpec(wu.shape, lambda i: (0, 0)),
          pl.BlockSpec(su.shape, lambda i: (0, 0)),
          pl.BlockSpec(wp.shape, lambda i: (0, 0)),
          pl.BlockSpec(sp.shape, lambda i: (0, 0)),
          pl.BlockSpec(mask.shape, lambda i: (0, 0)),
      ],
      out_specs=pl.BlockSpec((1, cp, lc), lambda i: (i, 0, 0)),
      compiler_params=_COMPILER_PARAMS,
  )(a_c, wu, su, wp, sp, mask)


def _canvas_conv3x3(x_c, w, s, mask, cv, dilation=1):
  n, cp, lc = x_c.shape
  return pl.pallas_call(
      _make_canvas_conv_kernel(cv.tap_offsets(dilation), cv.win_start,
                               cv.win_len, cv.lc),
      out_shape=jax.ShapeDtypeStruct((n, cp, lc), jnp.bfloat16),
      grid=(n,),
      in_specs=[
          pl.BlockSpec((1, cp, lc), lambda i: (i, 0, 0)),
          pl.BlockSpec(w.shape, lambda i: (0, 0)),
          pl.BlockSpec(s.shape, lambda i: (0, 0)),
          pl.BlockSpec(mask.shape, lambda i: (0, 0)),
      ],
      out_specs=pl.BlockSpec((1, cp, lc), lambda i: (i, 0, 0)),
      compiler_params=_COMPILER_PARAMS,
  )(x_c, w, s, mask)


def _dwr_tail(x_c, p_c, a_c, wd, sd, w11, s11, bns, bnb, cv):
  n, cp, lc = x_c.shape
  branch_offsets = [cv.tap_offsets(d) for d in (1, 3, 5)]
  # NOTE: acc/taps vreg pressure is modest at these channel counts; at
  # production widths move the branch loop onto a grid axis with a VMEM acc.
  return pl.pallas_call(
      _make_dwr_tail_kernel(branch_offsets, cv.win_start, cv.win_len),
      out_shape=jax.ShapeDtypeStruct((n, cp, cv.win_len), jnp.bfloat16),
      grid=(n,),
      in_specs=[
          pl.BlockSpec((1, cp, lc), lambda i: (i, 0, 0)),
          pl.BlockSpec((1, cp, lc), lambda i: (i, 0, 0)),
          pl.BlockSpec((1, cp, lc), lambda i: (i, 0, 0)),
          pl.BlockSpec(wd.shape, lambda i: (0, 0, 0)),
          pl.BlockSpec(sd.shape, lambda i: (0, 0, 0)),
          pl.BlockSpec(w11.shape, lambda i: (0, 0, 0)),
          pl.BlockSpec(s11.shape, lambda i: (0, 0)),
          pl.BlockSpec(bns.shape, lambda i: (0, 0)),
          pl.BlockSpec(bnb.shape, lambda i: (0, 0)),
      ],
      out_specs=pl.BlockSpec((1, cp, cv.win_len), lambda i: (i, 0, 0)),
      compiler_params=_COMPILER_PARAMS,
  )(x_c, p_c, a_c, wd, sd, w11, s11, bns, bnb)


# -----------------------------------------------------------------------------
# Layout glue (one pass in, one pass out of each layout)
# -----------------------------------------------------------------------------
def _nchw_to_cm(x, c_pad):
  n, c, h, w = x.shape
  xf = jnp.transpose(x, (1, 0, 2, 3)).reshape(c, n * h * w)
  return _pad_to(xf, (c_pad, n * h * w))


def _flat_to_canvas(xf, n, h, w, cv):
  c = xf.shape[0]
  xi = jnp.transpose(xf.reshape(c, n, h, w), (1, 0, 2, 3))
  xi = jnp.pad(xi, ((0, 0), (0, 0),
                    (cv.r0, cv.hc - cv.r0 - h),
                    (cv.pad, cv.wc - cv.pad - w)))
  xi = xi.reshape(n, c, cv.hc * cv.wc)
  if cv.lc > cv.hc * cv.wc:
    xi = jnp.pad(xi, ((0, 0), (0, 0), (0, cv.lc - cv.hc * cv.wc)))
  return xi


def _window_to_flat(y_win, n, h, w, cv):
  c = y_win.shape[1]
  y = y_win.reshape(n, c, h, cv.wc)[:, :, :, cv.pad:cv.pad + w]
  return jnp.transpose(y, (1, 0, 2, 3)).reshape(c, n * h * w)


# -----------------------------------------------------------------------------
# Parameter init (deterministic, synthetic) and folding/padding
# -----------------------------------------------------------------------------
def _init_bn(key, c):
  k1, k2, k3, k4 = jax.random.split(key, 4)
  gamma = jax.random.uniform(k1, (c,), minval=0.5, maxval=1.5)
  beta = jax.random.normal(k2, (c,)) * 0.1
  mean = jax.random.normal(k3, (c,)) * 0.1
  var = jax.random.uniform(k4, (c,), minval=0.5, maxval=1.5)
  scale = gamma / jnp.sqrt(var + _BN_EPS)
  shift = beta - mean * scale
  return scale.astype(jnp.float32), shift.astype(jnp.float32)


def _init_conv(key, cin, cout, k):
  k1, k2, k3 = jax.random.split(key, 3)
  w = jax.random.normal(k1, (cout, cin, k, k), jnp.float32) * 0.1
  b = jax.random.normal(k2, (cout,), jnp.float32) * 0.1
  scale, shift = _init_bn(k3, cout)
  return dict(w=w, b=b, scale=scale, shift=shift)


def init_c3_dwrseg_params(key, c1, c2, e=0.5):
  c_ = int(c2 * e)
  ks = jax.random.split(key, 11)
  params = {
      "cv1": _init_conv(ks[0], c1, c_, 1),
      "cv2": _init_conv(ks[1], c1, c_, 1),
      "cv3": _init_conv(ks[2], 2 * c_, c2, 1),
  }
  m = {"cv1": _init_conv(ks[3], c_, c_, 3)}
  dwrseg = {"conv": _init_conv(ks[4], c_, c_, 1)}
  dwr = {
      "conv_3x3": _init_conv(ks[5], c_, c_, 3),
      "d1": _init_conv(ks[6], c_, c_, 3),
      "d3": _init_conv(ks[7], c_, c_, 3),
      "d5": _init_conv(ks[8], c_, c_, 3),
      "conv_1x1": _init_conv(ks[9], 3 * c_, c_, 1),
  }
  dwrseg["dcnv3"] = dwr
  dwrseg["bn_scale"], dwrseg["bn_shift"] = _init_bn(ks[10], c_)
  m["cv2"] = dwrseg
  params["m0"] = m
  return params


def prepare_c3_dwrseg_params(raw, c1, c2, e=0.5):
  """Fold conv bias + eval-mode BN into (W', shift'), pad channels to 16, bf16."""
  c_ = int(c2 * e)
  cp = _round_up(c_, _CHAN_ALIGN)
  c1p = _round_up(c1, _CHAN_ALIGN)
  c2p = _round_up(c2, _CHAN_ALIGN)

  def fold(p):
    scale = p["scale"]
    wf = scale.reshape(-1, 1, 1, 1) * p["w"]
    sf = scale * p["b"] + p["shift"]
    return wf, sf

  def pack1x1(p, cin_pad, cout_pad, split=None):
    wf, sf = fold(p)
    w2 = wf[:, :, 0, 0]
    if split is None:
      parts = [w2]
    else:
      parts = [w2[:, i * split:(i + 1) * split]
               for i in range(w2.shape[1] // split)]
    parts = [_pad_to(wi, (cout_pad, cin_pad)).astype(jnp.bfloat16) for wi in parts]
    s = _pad_to(sf, (cout_pad,)).reshape(cout_pad, 1).astype(jnp.float32)
    return parts, s

  def pack3x3(p, cin_pad, cout_pad):
    wf, sf = fold(p)
    w2 = _pad_to(wf, (cout_pad, cin_pad, 3, 3))
    # column order (kh, kw, cin) must match the in-kernel tap concat order
    w2 = jnp.transpose(w2, (0, 2, 3, 1)).reshape(cout_pad, 9 * cin_pad)
    s = _pad_to(sf, (cout_pad,)).reshape(cout_pad, 1).astype(jnp.float32)
    return w2.astype(jnp.bfloat16), s

  pp = dict(c_=c_, c2=c2, cp=cp, c1p=c1p, c2p=c2p)

  ws_, s_ = pack1x1(raw["cv1"], c1p, cp)
  pp["cv1_w"], pp["cv1_s"] = ws_[0], s_
  ws_, s_ = pack1x1(raw["cv2"], c1p, cp)
  pp["cv2_w"], pp["cv2_s"] = ws_[0], s_
  ws_, s_ = pack1x1(raw["cv3"], cp, c2p, split=c_)
  pp["cv3_wy"], pp["cv3_wb"], pp["cv3_s"] = ws_[0], ws_[1], s_

  pp["m_cv1_w"], pp["m_cv1_s"] = pack3x3(raw["m0"]["cv1"], cp, cp)

  seg = raw["m0"]["cv2"]
  ws_, s_ = pack1x1(seg["conv"], cp, cp)
  pp["seg_conv_w"], pp["seg_conv_s"] = ws_[0], s_

  dwr = seg["dcnv3"]
  pp["dwr_c3_w"], pp["dwr_c3_s"] = pack3x3(dwr["conv_3x3"], cp, cp)
  dws, dss = zip(*[pack3x3(dwr[k], cp, cp) for k in ("d1", "d3", "d5")])
  pp["dwr_d_w"] = jnp.stack(dws)
  pp["dwr_d_s"] = jnp.stack(dss)
  w11s, s_ = pack1x1(dwr["conv_1x1"], cp, cp, split=c_)
  pp["dwr_11_w"] = jnp.stack(w11s)
  pp["dwr_11_s"] = s_

  pp["seg_bn_scale"] = _pad_to(seg["bn_scale"], (cp,)).reshape(cp, 1).astype(jnp.float32)
  pp["seg_bn_shift"] = _pad_to(seg["bn_shift"], (cp,)).reshape(cp, 1).astype(jnp.float32)
  return pp


# -----------------------------------------------------------------------------
# Full forward (n=1, shortcut=True, g=1, e=0.5)
# -----------------------------------------------------------------------------
def c3_dwrseg_forward(x, params):
  pp = params
  n, _, h, w = x.shape
  c1p, c2, c_ = pp["c1p"], pp["c2"], pp["c_"]
  cv = _Canvas(h, w)
  mask = _window_mask(cv)

  # single NCHW -> (C, M) layout pass at the input; bf16 activations thereafter
  xf = _nchw_to_cm(x, c1p).astype(jnp.bfloat16)

  a = _pointwise_conv([xf], [pp["cv1_w"]], pp["cv1_s"], jnp.bfloat16)   # cv1
  b = _pointwise_conv([xf], [pp["cv2_w"]], pp["cv2_s"], jnp.bfloat16)   # cv2

  a_c = _flat_to_canvas(a, n, h, w, cv)

  # Bottleneck cv1 (3x3, padding=1, see TODO) fused with DWRSeg_Conv.conv (1x1)
  p_c = _bottleneck_head(a_c, pp["m_cv1_w"], pp["m_cv1_s"],
                         pp["seg_conv_w"], pp["seg_conv_s"], mask, cv)
  # DWR.conv_3x3
  x_c = _canvas_conv3x3(p_c, pp["dwr_c3_w"], pp["dwr_c3_s"], mask, cv, dilation=1)
  # fused DWR tail: d1/d3/d5 + conv_1x1(+p) + BN + GELU (+a)
  y_win = _dwr_tail(x_c, p_c, a_c, pp["dwr_d_w"], pp["dwr_d_s"],
                    pp["dwr_11_w"], pp["dwr_11_s"],
                    pp["seg_bn_scale"], pp["seg_bn_shift"], cv)
  y = _window_to_flat(y_win, n, h, w, cv)

  # C3 tail: cv3 over the virtual concat [y, b] (split-Cin, no HBM concat)
  out = _pointwise_conv([y, b], [pp["cv3_wy"], pp["cv3_wb"]], pp["cv3_s"],
                        jnp.float32)
  out = out[:c2].reshape(c2, n, h, w)
  return jnp.transpose(out, (1, 0, 2, 3))


# -----------------------------------------------------------------------------
if __name__ == "__main__":
  key = jax.random.PRNGKey(0)
  kx, kp = jax.random.split(key)

  N, C, H, W = 2, 8, 16, 16          # c1 = c2 = 8, e = 0.5 -> c_ = 4
  x = jax.random.normal(kx, (N, C, H, W), jnp.float32)
  raw_params = init_c3_dwrseg_params(kp, C, C, e=0.5)
  params = prepare_c3_dwrseg_params(raw_params, C, C, e=0.5)

  fwd = jax.jit(functools.partial(c3_dwrseg_forward, params=params))
  out = fwd(x)
  jax.block_until_ready(out)

  assert out.shape == (N, C, H, W), out.shape
  assert out.dtype == jnp.float32
  assert bool(jnp.all(jnp.isfinite(out)))
  print("KERNEL_OK")
</pallas_src>

<mosaic_0001>
module attributes {stable_mosaic.version = 11 : i64} {
  func.func @kernel(%arg0: i32, %arg1: memref<16x256xbf16, #tpu.memory_space<vmem>>, %arg2: memref<16x16xbf16, #tpu.memory_space<vmem>>, %arg3: memref<16x1xf32, #tpu.memory_space<vmem>>, %arg4: memref<16x256xbf16, #tpu.memory_space<vmem>>) attributes {dimension_semantics = [#tpu.dimension_semantics<parallel>], iteration_bounds = array<i64: 2>, scalar_prefetch = 0 : i64, scratch_operands = 0 : i64, tpu.core_type = #tpu.core_type<tc>, window_params = [{transform_indices = @transform_0, window_bounds = array<i64: 16, 256>}, {pipeline_mode = #tpu.pipeline_mode<synchronous>, transform_indices = @transform_1, window_bounds = array<i64: 16, 16>}, {pipeline_mode = #tpu.pipeline_mode<synchronous>, transform_indices = @transform_2, window_bounds = array<i64: 16, 1>}, {transform_indices = @transform_3, window_bounds = array<i64: 16, 256>}]} {
    %cst = arith.constant 0.000000e+00 : f32
    %0 = vector.broadcast %cst : f32 to vector<16x256xf32>
    %c0 = arith.constant 0 : index
    %c0_0 = arith.constant 0 : index
    %1 = vector.load %arg2[%c0, %c0_0] : memref<16x16xbf16, #tpu.memory_space<vmem>>, vector<16x16xbf16>
    %c0_1 = arith.constant 0 : index
    %c0_2 = arith.constant 0 : index
    %2 = vector.load %arg1[%c0_1, %c0_2] : memref<16x256xbf16, #tpu.memory_space<vmem>>, vector<16x256xbf16>
    %cst_3 = arith.constant dense<0.000000e+00> : vector<16x256xf32>
    %3 = tpu.matmul %1, %2, %cst_3 {dimension_numbers = #tpu.dot_dimension_numbers<[1], [0], [0], [1], [0, 0, 1, 1], [], []>} : vector<16x16xbf16>, vector<16x256xbf16>, vector<16x256xf32> -> vector<16x256xf32>
    %4 = arith.addf %0, %3 : vector<16x256xf32>
    %c0_4 = arith.constant 0 : index
    %c0_5 = arith.constant 0 : index
    %5 = vector.load %arg3[%c0_4, %c0_5] : memref<16x1xf32, #tpu.memory_space<vmem>>, vector<16x1xf32>
    %6 = vector.broadcast %5 : vector<16x1xf32> to vector<16x256xf32>
    %7 = arith.addf %4, %6 : vector<16x256xf32>
    %cst_6 = arith.constant 0.000000e+00 : f32
    %8 = vector.broadcast %cst_6 : f32 to vector<16x256xf32>
    %9 = arith.maximumf %7, %8 : vector<16x256xf32>
    %10 = arith.truncf %9 : vector<16x256xf32> to vector<16x256xbf16>
    %c0_7 = arith.constant 0 : index
    %c0_8 = arith.constant 0 : index
    %11 = vector.load %arg4[%c0_7, %c0_8] : memref<16x256xbf16, #tpu.memory_space<vmem>>, vector<16x256xbf16>
    tpu.vector_store %arg4[%c0_7, %c0_8], %10 {strides = array<i32>} : memref<16x256xbf16, #tpu.memory_space<vmem>>, vector<16x256xbf16>,
    return
  }
  func.func @transform_0(%arg0: i32) -> (i32, i32) {
    %c0_i32 = arith.constant 0 : i32
    %c0_i32_0 = arith.constant 0 : i32
    return %c0_i32, %arg0 : i32, i32
  }
  func.func @transform_1(%arg0: i32) -> (i32, i32) {
    %c0_i32 = arith.constant 0 : i32
    %c0_i32_0 = arith.constant 0 : i32
    %c0_i32_1 = arith.constant 0 : i32
    return %c0_i32, %c0_i32_0 : i32, i32
  }
  func.func @transform_2(%arg0: i32) -> (i32, i32) {
    %c0_i32 = arith.constant 0 : i32
    %c0_i32_0 = arith.constant 0 : i32
    %c0_i32_1 = arith.constant 0 : i32
    return %c0_i32, %c0_i32_0 : i32, i32
  }
  func.func @transform_3(%arg0: i32) -> (i32, i32) {
    %c0_i32 = arith.constant 0 : i32
    %c0_i32_0 = arith.constant 0 : i32
    return %c0_i32, %arg0 : i32, i32
  }
}

module attributes {stable_mosaic.version = 11 : i64} {
  func.func @kernel(%arg0: i32, %arg1: memref<1x16x1024xbf16, #tpu.memory_space<vmem>>, %arg2: memref<16x144xbf16, #tpu.memory_space<vmem>>, %arg3: memref<16x1xf32, #tpu.memory_space<vmem>>, %arg4: memref<16x16xbf16, #tpu.memory_space<vmem>>, %arg5: memref<16x1xf32, #tpu.memory_space<vmem>>, %arg6: memref<1x512xf32, #tpu.memory_space<vmem>>, %arg7: memref<1x16x1024xbf16, #tpu.memory_space<vmem>>) attributes {dimension_semantics = [#tpu.dimension_semantics<parallel>], iteration_bounds = array<i64: 2>, scalar_prefetch = 0 : i64, scratch_operands = 0 : i64, tpu.core_type = #tpu.core_type<tc>, window_params = [{transform_indices = @transform_0, window_bounds = array<i64: 1, 16, 1024>}, {pipeline_mode = #tpu.pipeline_mode<synchronous>, transform_indices = @transform_1, window_bounds = array<i64: 16, 144>}, {pipeline_mode = #tpu.pipeline_mode<synchronous>, transform_indices = @transform_2, window_bounds = array<i64: 16, 1>}, {pipeline_mode = #tpu.pipeline_mode<synchronous>, transform_indices = @transform_3, window_bounds = array<i64: 16, 16>}, {pipeline_mode = #tpu.pipeline_mode<synchronous>, transform_indices = @transform_4, window_bounds = array<i64: 16, 1>}, {pipeline_mode = #tpu.pipeline_mode<synchronous>, transform_indices = @transform_5, window_bounds = array<i64: 1, 512>}, {transform_indices = @transform_6, window_bounds = array<i64: 1, 16, 1024>}]} {
    %c0 = arith.constant 0 : index
    %c0_0 = arith.constant 0 : index
    %c223 = arith.constant 223 : index
    %0 = vector.load %arg1[%c0, %c0_0, %c223] : memref<1x16x1024xbf16, #tpu.memory_space<vmem>>, vector<1x16x512xbf16>
    %1 = vector.shape_cast %0 : vector<1x16x512xbf16> to vector<16x512xbf16>
    %c0_1 = arith.constant 0 : index
    %c0_2 = arith.constant 0 : index
    %c224 = arith.constant 224 : index
    %2 = vector.load %arg1[%c0_1, %c0_2, %c224] : memref<1x16x1024xbf16, #tpu.memory_space<vmem>>, vector<1x16x512xbf16>
    %3 = vector.shape_cast %2 : vector<1x16x512xbf16> to vector<16x512xbf16>
    %c0_3 = arith.constant 0 : index
    %c0_4 = arith.constant 0 : index
    %c225 = arith.constant 225 : index
    %4 = vector.load %arg1[%c0_3, %c0_4, %c225] : memref<1x16x1024xbf16, #tpu.memory_space<vmem>>, vector<1x16x512xbf16>
    %5 = vector.shape_cast %4 : vector<1x16x512xbf16> to vector<16x512xbf16>
    %c0_5 = arith.constant 0 : index
    %c0_6 = arith.constant 0 : index
    %c255 = arith.constant 255 : index
    %6 = vector.load %arg1[%c0_5, %c0_6, %c255] : memref<1x16x1024xbf16, #tpu.memory_space<vmem>>, vector<1x16x512xbf16>
    %7 = vector.shape_cast %6 : vector<1x16x512xbf16> to vector<16x512xbf16>
    %c0_7 = arith.constant 0 : index
    %c0_8 = arith.constant 0 : index
    %c256 = arith.constant 256 : index
    %8 = vector.load %arg1[%c0_7, %c0_8, %c256] : memref<1x16x1024xbf16, #tpu.memory_space<vmem>>, vector<1x16x512xbf16>
    %9 = vector.shape_cast %8 : vector<1x16x512xbf16> to vector<16x512xbf16>
    %c0_9 = arith.constant 0 : index
    %c0_10 = arith.constant 0 : index
    %c257 = arith.constant 257 : index
    %10 = vector.load %arg1[%c0_9, %c0_10, %c257] : memref<1x16x1024xbf16, #tpu.memory_space<vmem>>, vector<1x16x512xbf16>
    %11 = vector.shape_cast %10 : vector<1x16x512xbf16> to vector<16x512xbf16>
    %c0_11 = arith.constant 0 : index
    %c0_12 = arith.constant 0 : index
    %c287 = arith.constant 287 : index
    %12 = vector.load %arg1[%c0_11, %c0_12, %c287] : memref<1x16x1024xbf16, #tpu.memory_space<vmem>>, vector<1x16x512xbf16>
    %13 = vector.shape_cast %12 : vector<1x16x512xbf16> to vector<16x512xbf16>
    %c0_13 = arith.constant 0 : index
    %c0_14 = arith.constant 0 : index
    %c288 = arith.constant 288 : index
    %14 = vector.load %arg1[%c0_13, %c0_14, %c288] : memref<1x16x1024xbf16, #tpu.memory_space<vmem>>, vector<1x16x512xbf16>
    %15 = vector.shape_cast %14 : vector<1x16x512xbf16> to vector<16x512xbf16>
    %c0_15 = arith.constant 0 : index
    %c0_16 = arith.constant 0 : index
    %c289 = arith.constant 289 : index
    %16 = vector.load %arg1[%c0_15, %c0_16, %c289] : memref<1x16x1024xbf16, #tpu.memory_space<vmem>>, vector<1x16x512xbf16>
    %17 = vector.shape_cast %16 : vector<1x16x512xbf16> to vector<16x512xbf16>
    %18 = tpu.concatenate %1, %3, %5, %7, %9, %11, %13, %15, %17 in 0 : vector<16x512xbf16>, vector<16x512xbf16>, vector<16x512xbf16>, vector<16x512xbf16>, vector<16x512xbf16>, vector<16x512xbf16>, vector<16x512xbf16>, vector<16x512xbf16>, vector<16x512xbf16> -> vector<144x512xbf16>
    %c0_17 = arith.constant 0 : index
    %c0_18 = arith.constant 0 : index
    %19 = vector.load %arg2[%c0_17, %c0_18] : memref<16x144xbf16, #tpu.memory_space<vmem>>, vector<16x144xbf16>
    %cst = arith.constant dense<0.000000e+00> : vector<16x512xf32>
    %20 = tpu.matmul %19, %18, %cst {dimension_numbers = #tpu.dot_dimension_numbers<[1], [0], [0], [1], [0, 0, 1, 1], [], []>} : vector<16x144xbf16>, vector<144x512xbf16>, vector<16x512xf32> -> vector<16x512xf32>
    %c0_19 = arith.constant 0 : index
    %c0_20 = arith.constant 0 : index
    %21 = vector.load %arg3[%c0_19, %c0_20] : memref<16x1xf32, #tpu.memory_space<vmem>>, vector<16x1xf32>
    %22 = vector.broadcast %21 : vector<16x1xf32> to vector<16x512xf32>
    %23 = arith.addf %20, %22 : vector<16x512xf32>
    %cst_21 = arith.constant 0.000000e+00 : f32
    %24 = vector.broadcast %cst_21 : f32 to vector<16x512xf32>
    %25 = arith.maximumf %23, %24 : vector<16x512xf32>
    %c0_22 = arith.constant 0 : index
    %c0_23 = arith.constant 0 : index
    %26 = vector.load %arg4[%c0_22, %c0_23] : memref<16x16xbf16, #tpu.memory_space<vmem>>, vector<16x16xbf16>
    %27 = arith.truncf %25 : vector<16x512xf32> to vector<16x512xbf16>
    %cst_24 = arith.constant dense<0.000000e+00> : vector<16x512xf32>
    %28 = tpu.matmul %26, %27, %cst_24 {dimension_numbers = #tpu.dot_dimension_numbers<[1], [0], [0], [1], [0, 0, 1, 1], [], []>} : vector<16x16xbf16>, vector<16x512xbf16>, vector<16x512xf32> -> vector<16x512xf32>
    %c0_25 = arith.constant 0 : index
    %c0_26 = arith.constant 0 : index
    %29 = vector.load %arg5[%c0_25, %c0_26] : memref<16x1xf32, #tpu.memory_space<vmem>>, vector<16x1xf32>
    %30 = vector.broadcast %29 : vector<16x1xf32> to vector<16x512xf32>
    %31 = arith.addf %28, %30 : vector<16x512xf32>
    %cst_27 = arith.constant 0.000000e+00 : f32
    %32 = vector.broadcast %cst_27 : f32 to vector<16x512xf32>
    %33 = arith.maximumf %31, %32 : vector<16x512xf32>
    %c0_28 = arith.constant 0 : index
    %c0_29 = arith.constant 0 : index
    %34 = vector.load %arg6[%c0_28, %c0_29] : memref<1x512xf32, #tpu.memory_space<vmem>>, vector<1x512xf32>
    %35 = vector.broadcast %34 : vector<1x512xf32> to vector<16x512xf32>
    %36 = arith.mulf %33, %35 : vector<16x512xf32>
    %cst_30 = arith.constant 0.000000e+00 : bf16
    %37 = vector.broadcast %cst_30 : bf16 to vector<16x256xbf16>
    %c0_31 = arith.constant 0 : index
    %c0_32 = arith.constant 0 : index
    %c0_33 = arith.constant 0 : index
    %38 = vector.load %arg7[%c0_31, %c0_32, %c0_33] : memref<1x16x1024xbf16, #tpu.memory_space<vmem>>, vector<1x16x256xbf16>
    %39 = vector.shape_cast %38 : vector<1x16x256xbf16> to vector<16x256xbf16>
    %40 = vector.shape_cast %37 : vector<16x256xbf16> to vector<1x16x256xbf16>
    tpu.vector_store %arg7[%c0_31, %c0_32, %c0_33], %40 {strides = array<i32>} : memref<1x16x1024xbf16, #tpu.memory_space<vmem>>, vector<1x16x256xbf16>,
    %41 = arith.truncf %36 : vector<16x512xf32> to vector<16x512xbf16>
    %c0_34 = arith.constant 0 : index
    %c0_35 = arith.constant 0 : index
    %c256_36 = arith.constant 256 : index
    %42 = vector.load %arg7[%c0_34, %c0_35, %c256_36] : memref<1x16x1024xbf16, #tpu.memory_space<vmem>>, vector<1x16x512xbf16>
    %43 = vector.shape_cast %42 : vector<1x16x512xbf16> to vector<16x512xbf16>
    %44 = vector.shape_cast %41 : vector<16x512xbf16> to vector<1x16x512xbf16>
    tpu.vector_store %arg7[%c0_34, %c0_35, %c256_36], %44 {strides = array<i32>} : memref<1x16x1024xbf16, #tpu.memory_space<vmem>>, vector<1x16x512xbf16>,
    %cst_37 = arith.constant 0.000000e+00 : bf16
    %45 = vector.broadcast %cst_37 : bf16 to vector<16x256xbf16>
    %c0_38 = arith.constant 0 : index
    %c0_39 = arith.constant 0 : index
    %c768 = arith.constant 768 : index
    %46 = vector.load %arg7[%c0_38, %c0_39, %c768] : memref<1x16x1024xbf16, #tpu.memory_space<vmem>>, vector<1x16x256xbf16>
    %47 = vector.shape_cast %46 : vector<1x16x256xbf16> to vector<16x256xbf16>
    %48 = vector.shape_cast %45 : vector<16x256xbf16> to vector<1x16x256xbf16>
    tpu.vector_store %arg7[%c0_38, %c0_39, %c768], %48 {strides = array<i32>} : memref<1x16x1024xbf16, #tpu.memory_space<vmem>>, vector<1x16x256xbf16>,
    return
  }
  func.func @transform_0(%arg0: i32) -> (i32, i32, i32) {
    %c0_i32 = arith.constant 0 : i32
    %c0_i32_0 = arith.constant 0 : i32
    %c0_i32_1 = arith.constant 0 : i32
    return %arg0, %c0_i32, %c0_i32_0 : i32, i32, i32
  }
  func.func @transform_1(%arg0: i32) -> (i32, i32) {
    %c0_i32 = arith.constant 0 : i32
    %c0_i32_0 = arith.constant 0 : i32
    %c0_i32_1 = arith.constant 0 : i32
    return %c0_i32, %c0_i32_0 : i32, i32
  }
  func.func @transform_2(%arg0: i32) -> (i32, i32) {
    %c0_i32 = arith.constant 0 : i32
    %c0_i32_0 = arith.constant 0 : i32
    %c0_i32_1 = arith.constant 0 : i32
    return %c0_i32, %c0_i32_0 : i32, i32
  }
  func.func @transform_3(%arg0: i32) -> (i32, i32) {
    %c0_i32 = arith.constant 0 : i32
    %c0_i32_0 = arith.constant 0 : i32
    %c0_i32_1 = arith.constant 0 : i32
    return %c0_i32, %c0_i32_0 : i32, i32
  }
  func.func @transform_4(%arg0: i32) -> (i32, i32) {
    %c0_i32 = arith.constant 0 : i32
    %c0_i32_0 = arith.constant 0 : i32
    %c0_i32_1 = arith.constant 0 : i32
    return %c0_i32, %c0_i32_0 : i32, i32
  }
  func.func @transform_5(%arg0: i32) -> (i32, i32) {
    %c0_i32 = arith.constant 0 : i32
    %c0_i32_0 = arith.constant 0 : i32
    %c0_i32_1 = arith.constant 0 : i32
    return %c0_i32, %c0_i32_0 : i32, i32
  }
  func.func @transform_6(%arg0: i32) -> (i32, i32, i32) {
    %c0_i32 = arith.constant 0 : i32
    %c0_i32_0 = arith.constant 0 : i32
    %c0_i32_1 = arith.constant 0 : i32
    return %arg0, %c0_i32, %c0_i32_0 : i32, i32, i32
  }
}

module attributes {stable_mosaic.version = 11 : i64} {
  func.func @kernel(%arg0: i32, %arg1: memref<1x16x1024xbf16, #tpu.memory_space<vmem>>, %arg2: memref<16x144xbf16, #tpu.memory_space<vmem>>, %arg3: memref<16x1xf32, #tpu.memory_space<vmem>>, %arg4: memref<1x512xf32, #tpu.memory_space<vmem>>, %arg5: memref<1x16x1024xbf16, #tpu.memory_space<vmem>>) attributes {dimension_semantics = [#tpu.dimension_semantics<parallel>], iteration_bounds = array<i64: 2>, scalar_prefetch = 0 : i64, scratch_operands = 0 : i64, tpu.core_type = #tpu.core_type<tc>, window_params = [{transform_indices = @transform_0, window_bounds = array<i64: 1, 16, 1024>}, {pipeline_mode = #tpu.pipeline_mode<synchronous>, transform_indices = @transform_1, window_bounds = array<i64: 16, 144>}, {pipeline_mode = #tpu.pipeline_mode<synchronous>, transform_indices = @transform_2, window_bounds = array<i64: 16, 1>}, {pipeline_mode = #tpu.pipeline_mode<synchronous>, transform_indices = @transform_3, window_bounds = array<i64: 1, 512>}, {transform_indices = @transform_4, window_bounds = array<i64: 1, 16, 1024>}]} {
    %c0 = arith.constant 0 : index
    %c0_0 = arith.constant 0 : index
    %c223 = arith.constant 223 : index
    %0 = vector.load %arg1[%c0, %c0_0, %c223] : memref<1x16x1024xbf16, #tpu.memory_space<vmem>>, vector<1x16x512xbf16>
    %1 = vector.shape_cast %0 : vector<1x16x512xbf16> to vector<16x512xbf16>
    %c0_1 = arith.constant 0 : index
    %c0_2 = arith.constant 0 : index
    %c224 = arith.constant 224 : index
    %2 = vector.load %arg1[%c0_1, %c0_2, %c224] : memref<1x16x1024xbf16, #tpu.memory_space<vmem>>, vector<1x16x512xbf16>
    %3 = vector.shape_cast %2 : vector<1x16x512xbf16> to vector<16x512xbf16>
    %c0_3 = arith.constant 0 : index
    %c0_4 = arith.constant 0 : index
    %c225 = arith.constant 225 : index
    %4 = vector.load %arg1[%c0_3, %c0_4, %c225] : memref<1x16x1024xbf16, #tpu.memory_space<vmem>>, vector<1x16x512xbf16>
    %5 = vector.shape_cast %4 : vector<1x16x512xbf16> to vector<16x512xbf16>
    %c0_5 = arith.constant 0 : index
    %c0_6 = arith.constant 0 : index
    %c255 = arith.constant 255 : index
    %6 = vector.load %arg1[%c0_5, %c0_6, %c255] : memref<1x16x1024xbf16, #tpu.memory_space<vmem>>, vector<1x16x512xbf16>
    %7 = vector.shape_cast %6 : vector<1x16x512xbf16> to vector<16x512xbf16>
    %c0_7 = arith.constant 0 : index
    %c0_8 = arith.constant 0 : index
    %c256 = arith.constant 256 : index
    %8 = vector.load %arg1[%c0_7, %c0_8, %c256] : memref<1x16x1024xbf16, #tpu.memory_space<vmem>>, vector<1x16x512xbf16>
    %9 = vector.shape_cast %8 : vector<1x16x512xbf16> to vector<16x512xbf16>
    %c0_9 = arith.constant 0 : index
    %c0_10 = arith.constant 0 : index
    %c257 = arith.constant 257 : index
    %10 = vector.load %arg1[%c0_9, %c0_10, %c257] : memref<1x16x1024xbf16, #tpu.memory_space<vmem>>, vector<1x16x512xbf16>
    %11 = vector.shape_cast %10 : vector<1x16x512xbf16> to vector<16x512xbf16>
    %c0_11 = arith.constant 0 : index
    %c0_12 = arith.constant 0 : index
    %c287 = arith.constant 287 : index
    %12 = vector.load %arg1[%c0_11, %c0_12, %c287] : memref<1x16x1024xbf16, #tpu.memory_space<vmem>>, vector<1x16x512xbf16>
    %13 = vector.shape_cast %12 : vector<1x16x512xbf16> to vector<16x512xbf16>
    %c0_13 = arith.constant 0 : index
    %c0_14 = arith.constant 0 : index
    %c288 = arith.constant 288 : index
    %14 = vector.load %arg1[%c0_13, %c0_14, %c288] : memref<1x16x1024xbf16, #tpu.memory_space<vmem>>, vector<1x16x512xbf16>
    %15 = vector.shape_cast %14 : vector<1x16x512xbf16> to vector<16x512xbf16>
    %c0_15 = arith.constant 0 : index
    %c0_16 = arith.constant 0 : index
    %c289 = arith.constant 289 : index
    %16 = vector.load %arg1[%c0_15, %c0_16, %c289] : memref<1x16x1024xbf16, #tpu.memory_space<vmem>>, vector<1x16x512xbf16>
    %17 = vector.shape_cast %16 : vector<1x16x512xbf16> to vector<16x512xbf16>
    %18 = tpu.concatenate %1, %3, %5, %7, %9, %11, %13, %15, %17 in 0 : vector<16x512xbf16>, vector<16x512xbf16>, vector<16x512xbf16>, vector<16x512xbf16>, vector<16x512xbf16>, vector<16x512xbf16>, vector<16x512xbf16>, vector<16x512xbf16>, vector<16x512xbf16> -> vector<144x512xbf16>
    %c0_17 = arith.constant 0 : index
    %c0_18 = arith.constant 0 : index
    %19 = vector.load %arg2[%c0_17, %c0_18] : memref<16x144xbf16, #tpu.memory_space<vmem>>, vector<16x144xbf16>
    %cst = arith.constant dense<0.000000e+00> : vector<16x512xf32>
    %20 = tpu.matmul %19, %18, %cst {dimension_numbers = #tpu.dot_dimension_numbers<[1], [0], [0], [1], [0, 0, 1, 1], [], []>} : vector<16x144xbf16>, vector<144x512xbf16>, vector<16x512xf32> -> vector<16x512xf32>
    %c0_19 = arith.constant 0 : index
    %c0_20 = arith.constant 0 : index
    %21 = vector.load %arg3[%c0_19, %c0_20] : memref<16x1xf32, #tpu.memory_space<vmem>>, vector<16x1xf32>
    %22 = vector.broadcast %21 : vector<16x1xf32> to vector<16x512xf32>
    %23 = arith.addf %20, %22 : vector<16x512xf32>
    %cst_21 = arith.constant 0.000000e+00 : f32
    %24 = vector.broadcast %cst_21 : f32 to vector<16x512xf32>
    %25 = arith.maximumf %23, %24 : vector<16x512xf32>
    %c0_22 = arith.constant 0 : index
    %c0_23 = arith.constant 0 : index
    %26 = vector.load %arg4[%c0_22, %c0_23] : memref<1x512xf32, #tpu.memory_space<vmem>>, vector<1x512xf32>
    %27 = vector.broadcast %26 : vector<1x512xf32> to vector<16x512xf32>
    %28 = arith.mulf %25, %27 : vector<16x512xf32>
    %cst_24 = arith.constant 0.000000e+00 : bf16
    %29 = vector.broadcast %cst_24 : bf16 to vector<16x256xbf16>
    %c0_25 = arith.constant 0 : index
    %c0_26 = arith.constant 0 : index
    %c0_27 = arith.constant 0 : index
    %30 = vector.load %arg5[%c0_25, %c0_26, %c0_27] : memref<1x16x1024xbf16, #tpu.memory_space<vmem>>, vector<1x16x256xbf16>
    %31 = vector.shape_cast %30 : vector<1x16x256xbf16> to vector<16x256xbf16>
    %32 = vector.shape_cast %29 : vector<16x256xbf16> to vector<1x16x256xbf16>
    tpu.vector_store %arg5[%c0_25, %c0_26, %c0_27], %32 {strides = array<i32>} : memref<1x16x1024xbf16, #tpu.memory_space<vmem>>, vector<1x16x256xbf16>,
    %33 = arith.truncf %28 : vector<16x512xf32> to vector<16x512xbf16>
    %c0_28 = arith.constant 0 : index
    %c0_29 = arith.constant 0 : index
    %c256_30 = arith.constant 256 : index
    %34 = vector.load %arg5[%c0_28, %c0_29, %c256_30] : memref<1x16x1024xbf16, #tpu.memory_space<vmem>>, vector<1x16x512xbf16>
    %35 = vector.shape_cast %34 : vector<1x16x512xbf16> to vector<16x512xbf16>
    %36 = vector.shape_cast %33 : vector<16x512xbf16> to vector<1x16x512xbf16>
    tpu.vector_store %arg5[%c0_28, %c0_29, %c256_30], %36 {strides = array<i32>} : memref<1x16x1024xbf16, #tpu.memory_space<vmem>>, vector<1x16x512xbf16>,
    %cst_31 = arith.constant 0.000000e+00 : bf16
    %37 = vector.broadcast %cst_31 : bf16 to vector<16x256xbf16>
    %c0_32 = arith.constant 0 : index
    %c0_33 = arith.constant 0 : index
    %c768 = arith.constant 768 : index
    %38 = vector.load %arg5[%c0_32, %c0_33, %c768] : memref<1x16x1024xbf16, #tpu.memory_space<vmem>>, vector<1x16x256xbf16>
    %39 = vector.shape_cast %38 : vector<1x16x256xbf16> to vector<16x256xbf16>
    %40 = vector.shape_cast %37 : vector<16x256xbf16> to vector<1x16x256xbf16>
    tpu.vector_store %arg5[%c0_32, %c0_33, %c768], %40 {strides = array<i32>} : memref<1x16x1024xbf16, #tpu.memory_space<vmem>>, vector<1x16x256xbf16>,
    return
  }
  func.func @transform_0(%arg0: i32) -> (i32, i32, i32) {
    %c0_i32 = arith.constant 0 : i32
    %c0_i32_0 = arith.constant 0 : i32
    %c0_i32_1 = arith.constant 0 : i32
    return %arg0, %c0_i32, %c0_i32_0 : i32, i32, i32
  }
  func.func @transform_1(%arg0: i32) -> (i32, i32) {
    %c0_i32 = arith.constant 0 : i32
    %c0_i32_0 = arith.constant 0 : i32
    %c0_i32_1 = arith.constant 0 : i32
    return %c0_i32, %c0_i32_0 : i32, i32
  }
  func.func @transform_2(%arg0: i32) -> (i32, i32) {
    %c0_i32 = arith.constant 0 : i32
    %c0_i32_0 = arith.constant 0 : i32
    %c0_i32_1 = arith.constant 0 : i32
    return %c0_i32, %c0_i32_0 : i32, i32
  }
  func.func @transform_3(%arg0: i32) -> (i32, i32) {
    %c0_i32 = arith.constant 0 : i32
    %c0_i32_0 = arith.constant 0 : i32
    %c0_i32_1 = arith.constant 0 : i32
    return %c0_i32, %c0_i32_0 : i32, i32
  }
  func.func @transform_4(%arg0: i32) -> (i32, i32, i32) {
    %c0_i32 = arith.constant 0 : i32
    %c0_i32_0 = arith.constant 0 : i32
    %c0_i32_1 = arith.constant 0 : i32
    return %arg0, %c0_i32, %c0_i32_0 : i32, i32, i32
  }
}

module attributes {stable_mosaic.version = 11 : i64} {
  func.func @kernel(%arg0: i32, %arg1: memref<1x16x1024xbf16, #tpu.memory_space<vmem>>, %arg2: memref<1x16x1024xbf16, #tpu.memory_space<vmem>>, %arg3: memref<1x16x1024xbf16, #tpu.memory_space<vmem>>, %arg4: memref<3x16x144xbf16, #tpu.memory_space<vmem>>, %arg5: memref<3x16x1xf32, #tpu.memory_space<vmem>>, %arg6: memref<3x16x16xbf16, #tpu.memory_space<vmem>>, %arg7: memref<16x1xf32, #tpu.memory_space<vmem>>, %arg8: memref<16x1xf32, #tpu.memory_space<vmem>>, %arg9: memref<16x1xf32, #tpu.memory_space<vmem>>, %arg10: memref<1x16x512xbf16, #tpu.memory_space<vmem>>) attributes {dimension_semantics = [#tpu.dimension_semantics<parallel>], iteration_bounds = array<i64: 2>, scalar_prefetch = 0 : i64, scratch_operands = 0 : i64, tpu.core_type = #tpu.core_type<tc>, window_params = [{transform_indices = @transform_0, window_bounds = array<i64: 1, 16, 1024>}, {transform_indices = @transform_1, window_bounds = array<i64: 1, 16, 1024>}, {transform_indices = @transform_2, window_bounds = array<i64: 1, 16, 1024>}, {pipeline_mode = #tpu.pipeline_mode<synchronous>, transform_indices = @transform_3, window_bounds = array<i64: 3, 16, 144>}, {pipeline_mode = #tpu.pipeline_mode<synchronous>, transform_indices = @transform_4, window_bounds = array<i64: 3, 16, 1>}, {pipeline_mode = #tpu.pipeline_mode<synchronous>, transform_indices = @transform_5, window_bounds = array<i64: 3, 16, 16>}, {pipeline_mode = #tpu.pipeline_mode<synchronous>, transform_indices = @transform_6, window_bounds = array<i64: 16, 1>}, {pipeline_mode = #tpu.pipeline_mode<synchronous>, transform_indices = @transform_7, window_bounds = array<i64: 16, 1>}, {pipeline_mode = #tpu.pipeline_mode<synchronous>, transform_indices = @transform_8, window_bounds = array<i64: 16, 1>}, {transform_indices = @transform_9, window_bounds = array<i64: 1, 16, 512>}]} {
    %cst = arith.constant 0.000000e+00 : f32
    %0 = vector.broadcast %cst : f32 to vector<16x512xf32>
    %c0 = arith.constant 0 : index
    %c0_0 = arith.constant 0 : index
    %c223 = arith.constant 223 : index
    %1 = vector.load %arg1[%c0, %c0_0, %c223] : memref<1x16x1024xbf16, #tpu.memory_space<vmem>>, vector<1x16x512xbf16>
    %2 = vector.shape_cast %1 : vector<1x16x512xbf16> to vector<16x512xbf16>
    %c0_1 = arith.constant 0 : index
    %c0_2 = arith.constant 0 : index
    %c224 = arith.constant 224 : index
    %3 = vector.load %arg1[%c0_1, %c0_2, %c224] : memref<1x16x1024xbf16, #tpu.memory_space<vmem>>, vector<1x16x512xbf16>
    %4 = vector.shape_cast %3 : vector<1x16x512xbf16> to vector<16x512xbf16>
    %c0_3 = arith.constant 0 : index
    %c0_4 = arith.constant 0 : index
    %c225 = arith.constant 225 : index
    %5 = vector.load %arg1[%c0_3, %c0_4, %c225] : memref<1x16x1024xbf16, #tpu.memory_space<vmem>>, vector<1x16x512xbf16>
    %6 = vector.shape_cast %5 : vector<1x16x512xbf16> to vector<16x512xbf16>
    %c0_5 = arith.constant 0 : index
    %c0_6 = arith.constant 0 : index
    %c255 = arith.constant 255 : index
    %7 = vector.load %arg1[%c0_5, %c0_6, %c255] : memref<1x16x1024xbf16, #tpu.memory_space<vmem>>, vector<1x16x512xbf16>
    %8 = vector.shape_cast %7 : vector<1x16x512xbf16> to vector<16x512xbf16>
    %c0_7 = arith.constant 0 : index
    %c0_8 = arith.constant 0 : index
    %c256 = arith.constant 256 : index
    %9 = vector.load %arg1[%c0_7, %c0_8, %c256] : memref<1x16x1024xbf16, #tpu.memory_space<vmem>>, vector<1x16x512xbf16>
    %10 = vector.shape_cast %9 : vector<1x16x512xbf16> to vector<16x512xbf16>
    %c0_9 = arith.constant 0 : index
    %c0_10 = arith.constant 0 : index
    %c257 = arith.constant 257 : index
    %11 = vector.load %arg1[%c0_9, %c0_10, %c257] : memref<1x16x1024xbf16, #tpu.memory_space<vmem>>, vector<1x16x512xbf16>
    %12 = vector.shape_cast %11 : vector<1x16x512xbf16> to vector<16x512xbf16>
    %c0_11 = arith.constant 0 : index
    %c0_12 = arith.constant 0 : index
    %c287 = arith.constant 287 : index
    %13 = vector.load %arg1[%c0_11, %c0_12, %c287] : memref<1x16x1024xbf16, #tpu.memory_space<vmem>>, vector<1x16x512xbf16>
    %14 = vector.shape_cast %13 : vector<1x16x512xbf16> to vector<16x512xbf16>
    %c0_13 = arith.constant 0 : index
    %c0_14 = arith.constant 0 : index
    %c288 = arith.constant 288 : index
    %15 = vector.load %arg1[%c0_13, %c0_14, %c288] : memref<1x16x1024xbf16, #tpu.memory_space<vmem>>, vector<1x16x512xbf16>
    %16 = vector.shape_cast %15 : vector<1x16x512xbf16> to vector<16x512xbf16>
    %c0_15 = arith.constant 0 : index
    %c0_16 = arith.constant 0 : index
    %c289 = arith.constant 289 : index
    %17 = vector.load %arg1[%c0_15, %c0_16, %c289] : memref<1x16x1024xbf16, #tpu.memory_space<vmem>>, vector<1x16x512xbf16>
    %18 = vector.shape_cast %17 : vector<1x16x512xbf16> to vector<16x512xbf16>
    %19 = tpu.concatenate %2, %4, %6, %8, %10, %12, %14, %16, %18 in 0 : vector<16x512xbf16>, vector<16x512xbf16>, vector<16x512xbf16>, vector<16x512xbf16>, vector<16x512xbf16>, vector<16x512xbf16>, vector<16x512xbf16>, vector<16x512xbf16>, vector<16x512xbf16> -> vector<144x512xbf16>
    %c0_17 = arith.constant 0 : index
    %c0_18 = arith.constant 0 : index
    %c0_19 = arith.constant 0 : index
    %20 = vector.load %arg4[%c0_17, %c0_18, %c0_19] : memref<3x16x144xbf16, #tpu.memory_space<vmem>>, vector<1x16x144xbf16>
    %21 = vector.shape_cast %20 : vector<1x16x144xbf16> to vector<16x144xbf16>
    %cst_20 = arith.constant dense<0.000000e+00> : vector<16x512xf32>
    %22 = tpu.matmul %21, %19, %cst_20 {dimension_numbers = #tpu.dot_dimension_numbers<[1], [0], [0], [1], [0, 0, 1, 1], [], []>} : vector<16x144xbf16>, vector<144x512xbf16>, vector<16x512xf32> -> vector<16x512xf32>
    %c0_21 = arith.constant 0 : index
    %c0_22 = arith.constant 0 : index
    %c0_23 = arith.constant 0 : index
    %23 = vector.load %arg5[%c0_21, %c0_22, %c0_23] : memref<3x16x1xf32, #tpu.memory_space<vmem>>, vector<1x16x1xf32>
    %24 = vector.shape_cast %23 : vector<1x16x1xf32> to vector<16x1xf32>
    %25 = vector.broadcast %24 : vector<16x1xf32> to vector<16x512xf32>
    %26 = arith.addf %22, %25 : vector<16x512xf32>
    %cst_24 = arith.constant 0.000000e+00 : f32
    %27 = vector.broadcast %cst_24 : f32 to vector<16x512xf32>
    %28 = arith.maximumf %26, %27 : vector<16x512xf32>
    %c0_25 = arith.constant 0 : index
    %c0_26 = arith.constant 0 : index
    %c0_27 = arith.constant 0 : index
    %29 = vector.load %arg6[%c0_25, %c0_26, %c0_27] : memref<3x16x16xbf16, #tpu.memory_space<vmem>>, vector<1x16x16xbf16>
    %30 = vector.shape_cast %29 : vector<1x16x16xbf16> to vector<16x16xbf16>
    %31 = arith.truncf %28 : vector<16x512xf32> to vector<16x512xbf16>
    %cst_28 = arith.constant dense<0.000000e+00> : vector<16x512xf32>
    %32 = tpu.matmul %30, %31, %cst_28 {dimension_numbers = #tpu.dot_dimension_numbers<[1], [0], [0], [1], [0, 0, 1, 1], [], []>} : vector<16x16xbf16>, vector<16x512xbf16>, vector<16x512xf32> -> vector<16x512xf32>
    %33 = arith.addf %0, %32 : vector<16x512xf32>
    %c0_29 = arith.constant 0 : index
    %c0_30 = arith.constant 0 : index
    %c157 = arith.constant 157 : index
    %34 = vector.load %arg1[%c0_29, %c0_30, %c157] : memref<1x16x1024xbf16, #tpu.memory_space<vmem>>, vector<1x16x512xbf16>
    %35 = vector.shape_cast %34 : vector<1x16x512xbf16> to vector<16x512xbf16>
    %c0_31 = arith.constant 0 : index
    %c0_32 = arith.constant 0 : index
    %c160 = arith.constant 160 : index
    %36 = vector.load %arg1[%c0_31, %c0_32, %c160] : memref<1x16x1024xbf16, #tpu.memory_space<vmem>>, vector<1x16x512xbf16>
    %37 = vector.shape_cast %36 : vector<1x16x512xbf16> to vector<16x512xbf16>
    %c0_33 = arith.constant 0 : index
    %c0_34 = arith.constant 0 : index
    %c163 = arith.constant 163 : index
    %38 = vector.load %arg1[%c0_33, %c0_34, %c163] : memref<1x16x1024xbf16, #tpu.memory_space<vmem>>, vector<1x16x512xbf16>
    %39 = vector.shape_cast %38 : vector<1x16x512xbf16> to vector<16x512xbf16>
    %c0_35 = arith.constant 0 : index
    %c0_36 = arith.constant 0 : index
    %c253 = arith.constant 253 : index
    %40 = vector.load %arg1[%c0_35, %c0_36, %c253] : memref<1x16x1024xbf16, #tpu.memory_space<vmem>>, vector<1x16x512xbf16>
    %41 = vector.shape_cast %40 : vector<1x16x512xbf16> to vector<16x512xbf16>
    %c0_37 = arith.constant 0 : index
    %c0_38 = arith.constant 0 : index
    %c256_39 = arith.constant 256 : index
    %42 = vector.load %arg1[%c0_37, %c0_38, %c256_39] : memref<1x16x1024xbf16, #tpu.memory_space<vmem>>, vector<1x16x512xbf16>
    %43 = vector.shape_cast %42 : vector<1x16x512xbf16> to vector<16x512xbf16>
    %c0_40 = arith.constant 0 : index
    %c0_41 = arith.constant 0 : index
    %c259 = arith.constant 259 : index
    %44 = vector.load %arg1[%c0_40, %c0_41, %c259] : memref<1x16x1024xbf16, #tpu.memory_space<vmem>>, vector<1x16x512xbf16>
    %45 = vector.shape_cast %44 : vector<1x16x512xbf16> to vector<16x512xbf16>
    %c0_42 = arith.constant 0 : index
    %c0_43 = arith.constant 0 : index
    %c349 = arith.constant 349 : index
    %46 = vector.load %arg1[%c0_42, %c0_43, %c349] : memref<1x16x1024xbf16, #tpu.memory_space<vmem>>, vector<1x16x512xbf16>
    %47 = vector.shape_cast %46 : vector<1x16x512xbf16> to vector<16x512xbf16>
    %c0_44 = arith.constant 0 : index
    %c0_45 = arith.constant 0 : index
    %c352 = arith.constant 352 : index
    %48 = vector.load %arg1[%c0_44, %c0_45, %c352] : memref<1x16x1024xbf16, #tpu.memory_space<vmem>>, vector<1x16x512xbf16>
    %49 = vector.shape_cast %48 : vector<1x16x512xbf16> to vector<16x512xbf16>
    %c0_46 = arith.constant 0 : index
    %c0_47 = arith.constant 0 : index
    %c355 = arith.constant 355 : index
    %50 = vector.load %arg1[%c0_46, %c0_47, %c355] : memref<1x16x1024xbf16, #tpu.memory_space<vmem>>, vector<1x16x512xbf16>
    %51 = vector.shape_cast %50 : vector<1x16x512xbf16> to vector<16x512xbf16>
    %52 = tpu.concatenate %35, %37, %39, %41, %43, %45, %47, %49, %51 in 0 : vector<16x512xbf16>, vector<16x512xbf16>, vector<16x512xbf16>, vector<16x512xbf16>, vector<16x512xbf16>, vector<16x512xbf16>, vector<16x512xbf16>, vector<16x512xbf16>, vector<16x512xbf16> -> vector<144x512xbf16>
    %c1 = arith.constant 1 : index
    %c0_48 = arith.constant 0 : index
    %c0_49 = arith.constant 0 : index
    %53 = vector.load %arg4[%c1, %c0_48, %c0_49] : memref<3x16x144xbf16, #tpu.memory_space<vmem>>, vector<1x16x144xbf16>
    %54 = vector.shape_cast %53 : vector<1x16x144xbf16> to vector<16x144xbf16>
    %cst_50 = arith.constant dense<0.000000e+00> : vector<16x512xf32>
    %55 = tpu.matmul %54, %52, %cst_50 {dimension_numbers = #tpu.dot_dimension_numbers<[1], [0], [0], [1], [0, 0, 1, 1], [], []>} : vector<16x144xbf16>, vector<144x512xbf16>, vector<16x512xf32> -> vector<16x512xf32>
    %c1_51 = arith.constant 1 : index
    %c0_52 = arith.constant 0 : index
    %c0_53 = arith.constant 0 : index
    %56 = vector.load %arg5[%c1_51, %c0_52, %c0_53] : memref<3x16x1xf32, #tpu.memory_space<vmem>>, vector<1x16x1xf32>
    %57 = vector.shape_cast %56 : vector<1x16x1xf32> to vector<16x1xf32>
    %58 = vector.broadcast %57 : vector<16x1xf32> to vector<16x512xf32>
    %59 = arith.addf %55, %58 : vector<16x512xf32>
    %cst_54 = arith.constant 0.000000e+00 : f32
    %60 = vector.broadcast %cst_54 : f32 to vector<16x512xf32>
    %61 = arith.maximumf %59, %60 : vector<16x512xf32>
    %c1_55 = arith.constant 1 : index
    %c0_56 = arith.constant 0 : index
    %c0_57 = arith.constant 0 : index
    %62 = vector.load %arg6[%c1_55, %c0_56, %c0_57] : memref<3x16x16xbf16, #tpu.memory_space<vmem>>, vector<1x16x16xbf16>
    %63 = vector.shape_cast %62 : vector<1x16x16xbf16> to vector<16x16xbf16>
    %64 = arith.truncf %61 : vector<16x512xf32> to vector<16x512xbf16>
    %cst_58 = arith.constant dense<0.000000e+00> : vector<16x512xf32>
    %65 = tpu.matmul %63, %64, %cst_58 {dimension_numbers = #tpu.dot_dimension_numbers<[1], [0], [0], [1], [0, 0, 1, 1], [], []>} : vector<16x16xbf16>, vector<16x512xbf16>, vector<16x512xf32> -> vector<16x512xf32>
    %66 = arith.addf %33, %65 : vector<16x512xf32>
    %c0_59 = arith.constant 0 : index
    %c0_60 = arith.constant 0 : index
    %c91 = arith.constant 91 : index
    %67 = vector.load %arg1[%c0_59, %c0_60, %c91] : memref<1x16x1024xbf16, #tpu.memory_space<vmem>>, vector<1x16x512xbf16>
    %68 = vector.shape_cast %67 : vector<1x16x512xbf16> to vector<16x512xbf16>
    %c0_61 = arith.constant 0 : index
    %c0_62 = arith.constant 0 : index
    %c96 = arith.constant 96 : index
    %69 = vector.load %arg1[%c0_61, %c0_62, %c96] : memref<1x16x1024xbf16, #tpu.memory_space<vmem>>, vector<1x16x512xbf16>
    %70 = vector.shape_cast %69 : vector<1x16x512xbf16> to vector<16x512xbf16>
    %c0_63 = arith.constant 0 : index
    %c0_64 = arith.constant 0 : index
    %c101 = arith.constant 101 : index
    %71 = vector.load %arg1[%c0_63, %c0_64, %c101] : memref<1x16x1024xbf16, #tpu.memory_space<vmem>>, vector<1x16x512xbf16>
    %72 = vector.shape_cast %71 : vector<1x16x512xbf16> to vector<16x512xbf16>
    %c0_65 = arith.constant 0 : index
    %c0_66 = arith.constant 0 : index
    %c251 = arith.constant 251 : index
    %73 = vector.load %arg1[%c0_65, %c0_66, %c251] : memref<1x16x1024xbf16, #tpu.memory_space<vmem>>, vector<1x16x512xbf16>
    %74 = vector.shape_cast %73 : vector<1x16x512xbf16> to vector<16x512xbf16>
    %c0_67 = arith.constant 0 : index
    %c0_68 = arith.constant 0 : index
    %c256_69 = arith.constant 256 : index
    %75 = vector.load %arg1[%c0_67, %c0_68, %c256_69] : memref<1x16x1024xbf16, #tpu.memory_space<vmem>>, vector<1x16x512xbf16>
    %76 = vector.shape_cast %75 : vector<1x16x512xbf16> to vector<16x512xbf16>
    %c0_70 = arith.constant 0 : index
    %c0_71 = arith.constant 0 : index
    %c261 = arith.constant 261 : index
    %77 = vector.load %arg1[%c0_70, %c0_71, %c261] : memref<1x16x1024xbf16, #tpu.memory_space<vmem>>, vector<1x16x512xbf16>
    %78 = vector.shape_cast %77 : vector<1x16x512xbf16> to vector<16x512xbf16>
    %c0_72 = arith.constant 0 : index
    %c0_73 = arith.constant 0 : index
    %c411 = arith.constant 411 : index
    %79 = vector.load %arg1[%c0_72, %c0_73, %c411] : memref<1x16x1024xbf16, #tpu.memory_space<vmem>>, vector<1x16x512xbf16>
    %80 = vector.shape_cast %79 : vector<1x16x512xbf16> to vector<16x512xbf16>
    %c0_74 = arith.constant 0 : index
    %c0_75 = arith.constant 0 : index
    %c416 = arith.constant 416 : index
    %81 = vector.load %arg1[%c0_74, %c0_75, %c416] : memref<1x16x1024xbf16, #tpu.memory_space<vmem>>, vector<1x16x512xbf16>
    %82 = vector.shape_cast %81 : vector<1x16x512xbf16> to vector<16x512xbf16>
    %c0_76 = arith.constant 0 : index
    %c0_77 = arith.constant 0 : index
    %c421 = arith.constant 421 : index
    %83 = vector.load %arg1[%c0_76, %c0_77, %c421] : memref<1x16x1024xbf16, #tpu.memory_space<vmem>>, vector<1x16x512xbf16>
    %84 = vector.shape_cast %83 : vector<1x16x512xbf16> to vector<16x512xbf16>
    %85 = tpu.concatenate %68, %70, %72, %74, %76, %78, %80, %82, %84 in 0 : vector<16x512xbf16>, vector<16x512xbf16>, vector<16x512xbf16>, vector<16x512xbf16>, vector<16x512xbf16>, vector<16x512xbf16>, vector<16x512xbf16>, vector<16x512xbf16>, vector<16x512xbf16> -> vector<144x512xbf16>
    %c2 = arith.constant 2 : index
    %c0_78 = arith.constant 0 : index
    %c0_79 = arith.constant 0 : index
    %86 = vector.load %arg4[%c2, %c0_78, %c0_79] : memref<3x16x144xbf16, #tpu.memory_space<vmem>>, vector<1x16x144xbf16>
    %87 = vector.shape_cast %86 : vector<1x16x144xbf16> to vector<16x144xbf16>
    %cst_80 = arith.constant dense<0.000000e+00> : vector<16x512xf32>
    %88 = tpu.matmul %87, %85, %cst_80 {dimension_numbers = #tpu.dot_dimension_numbers<[1], [0], [0], [1], [0, 0, 1, 1], [], []>} : vector<16x144xbf16>, vector<144x512xbf16>, vector<16x512xf32> -> vector<16x512xf32>
    %c2_81 = arith.constant 2 : index
    %c0_82 = arith.constant 0 : index
    %c0_83 = arith.constant 0 : index
    %89 = vector.load %arg5[%c2_81, %c0_82, %c0_83] : memref<3x16x1xf32, #tpu.memory_space<vmem>>, vector<1x16x1xf32>
    %90 = vector.shape_cast %89 : vector<1x16x1xf32> to vector<16x1xf32>
    %91 = vector.broadcast %90 : vector<16x1xf32> to vector<16x512xf32>
    %92 = arith.addf %88, %91 : vector<16x512xf32>
    %cst_84 = arith.constant 0.000000e+00 : f32
    %93 = vector.broadcast %cst_84 : f32 to vector<16x512xf32>
    %94 = arith.maximumf %92, %93 : vector<16x512xf32>
    %c2_85 = arith.constant 2 : index
    %c0_86 = arith.constant 0 : index
    %c0_87 = arith.constant 0 : index
    %95 = vector.load %arg6[%c2_85, %c0_86, %c0_87] : memref<3x16x16xbf16, #tpu.memory_space<vmem>>, vector<1x16x16xbf16>
    %96 = vector.shape_cast %95 : vector<1x16x16xbf16> to vector<16x16xbf16>
    %97 = arith.truncf %94 : vector<16x512xf32> to vector<16x512xbf16>
    %cst_88 = arith.constant dense<0.000000e+00> : vector<16x512xf32>
    %98 = tpu.matmul %96, %97, %cst_88 {dimension_numbers = #tpu.dot_dimension_numbers<[1], [0], [0], [1], [0, 0, 1, 1], [], []>} : vector<16x16xbf16>, vector<16x512xbf16>, vector<16x512xf32> -> vector<16x512xf32>
    %99 = arith.addf %66, %98 : vector<16x512xf32>
    %c0_89 = arith.constant 0 : index
    %c0_90 = arith.constant 0 : index
    %100 = vector.load %arg7[%c0_89, %c0_90] : memref<16x1xf32, #tpu.memory_space<vmem>>, vector<16x1xf32>
    %101 = vector.broadcast %100 : vector<16x1xf32> to vector<16x512xf32>
    %102 = arith.addf %99, %101 : vector<16x512xf32>
    %cst_91 = arith.constant 0.000000e+00 : f32
    %103 = vector.broadcast %cst_91 : f32 to vector<16x512xf32>
    %104 = arith.maximumf %102, %103 : vector<16x512xf32>
    %c0_92 = arith.constant 0 : index
    %c0_93 = arith.constant 0 : index
    %c256_94 = arith.constant 256 : index
    %105 = vector.load %arg2[%c0_92, %c0_93, %c256_94] : memref<1x16x1024xbf16, #tpu.memory_space<vmem>>, vector<1x16x512xbf16>
    %106 = vector.shape_cast %105 : vector<1x16x512xbf16> to vector<16x512xbf16>
    %107 = arith.extf %106 : vector<16x512xbf16> to vector<16x512xf32>
    %108 = arith.addf %104, %107 : vector<16x512xf32>
    %c0_95 = arith.constant 0 : index
    %c0_96 = arith.constant 0 : index
    %109 = vector.load %arg8[%c0_95, %c0_96] : memref<16x1xf32, #tpu.memory_space<vmem>>, vector<16x1xf32>
    %110 = vector.broadcast %109 : vector<16x1xf32> to vector<16x512xf32>
    %111 = arith.mulf %108, %110 : vector<16x512xf32>
    %c0_97 = arith.constant 0 : index
    %c0_98 = arith.constant 0 : index
    %112 = vector.load %arg9[%c0_97, %c0_98] : memref<16x1xf32, #tpu.memory_space<vmem>>, vector<16x1xf32>
    %113 = vector.broadcast %112 : vector<16x1xf32> to vector<16x512xf32>
    %114 = arith.addf %111, %113 : vector<16x512xf32>
    %cst_99 = arith.constant 5.000000e-01 : f32
    %115 = vector.broadcast %cst_99 : f32 to vector<16x512xf32>
    %116 = arith.mulf %115, %114 : vector<16x512xf32>
    %cst_100 = arith.constant 4.471500e-02 : f32
    %117 = vector.broadcast %cst_100 : f32 to vector<16x512xf32>
    %118 = arith.mulf %117, %114 : vector<16x512xf32>
    %119 = arith.mulf %118, %114 : vector<16x512xf32>
    %120 = arith.mulf %119, %114 : vector<16x512xf32>
    %121 = arith.addf %114, %120 : vector<16x512xf32>
    %cst_101 = arith.constant 0.797884583 : f32
    %122 = vector.broadcast %cst_101 : f32 to vector<16x512xf32>
    %123 = arith.mulf %122, %121 : vector<16x512xf32>
    %124 = math.tanh %123 : vector<16x512xf32>
    %cst_102 = arith.constant 1.000000e+00 : f32
    %125 = vector.broadcast %cst_102 : f32 to vector<16x512xf32>
    %126 = arith.addf %125, %124 : vector<16x512xf32>
    %127 = arith.mulf %116, %126 : vector<16x512xf32>
    %c0_103 = arith.constant 0 : index
    %c0_104 = arith.constant 0 : index
    %c256_105 = arith.constant 256 : index
    %128 = vector.load %arg3[%c0_103, %c0_104, %c256_105] : memref<1x16x1024xbf16, #tpu.memory_space<vmem>>, vector<1x16x512xbf16>
    %129 = vector.shape_cast %128 : vector<1x16x512xbf16> to vector<16x512xbf16>
    %130 = arith.extf %129 : vector<16x512xbf16> to vector<16x512xf32>
    %131 = arith.addf %127, %130 : vector<16x512xf32>
    %132 = arith.truncf %131 : vector<16x512xf32> to vector<16x512xbf16>
    %c0_106 = arith.constant 0 : index
    %c0_107 = arith.constant 0 : index
    %c0_108 = arith.constant 0 : index
    %133 = vector.load %arg10[%c0_106, %c0_107, %c0_108] : memref<1x16x512xbf16, #tpu.memory_space<vmem>>, vector<1x16x512xbf16>
    %134 = vector.shape_cast %133 : vector<1x16x512xbf16> to vector<16x512xbf16>
    %135 = vector.shape_cast %132 : vector<16x512xbf16> to vector<1x16x512xbf16>
    tpu.vector_store %arg10[%c0_106, %c0_107, %c0_108], %135 {strides = array<i32>} : memref<1x16x512xbf16, #tpu.memory_space<vmem>>, vector<1x16x512xbf16>,
    return
  }
  func.func @transform_0(%arg0: i32) -> (i32, i32, i32) {
    %c0_i32 = arith.constant 0 : i32
    %c0_i32_0 = arith.constant 0 : i32
    %c0_i32_1 = arith.constant 0 : i32
    return %arg0, %c0_i32, %c0_i32_0 : i32, i32, i32
  }
  func.func @transform_1(%arg0: i32) -> (i32, i32, i32) {
    %c0_i32 = arith.constant 0 : i32
    %c0_i32_0 = arith.constant 0 : i32
    %c0_i32_1 = arith.constant 0 : i32
    return %arg0, %c0_i32, %c0_i32_0 : i32, i32, i32
  }
  func.func @transform_2(%arg0: i32) -> (i32, i32, i32) {
    %c0_i32 = arith.constant 0 : i32
    %c0_i32_0 = arith.constant 0 : i32
    %c0_i32_1 = arith.constant 0 : i32
    return %arg0, %c0_i32, %c0_i32_0 : i32, i32, i32
  }
  func.func @transform_3(%arg0: i32) -> (i32, i32, i32) {
    %c0_i32 = arith.constant 0 : i32
    %c0_i32_0 = arith.constant 0 : i32
    %c0_i32_1 = arith.constant 0 : i32
    %c0_i32_2 = arith.constant 0 : i32
    return %c0_i32, %c0_i32_0, %c0_i32_1 : i32, i32, i32
  }
  func.func @transform_4(%arg0: i32) -> (i32, i32, i32) {
    %c0_i32 = arith.constant 0 : i32
    %c0_i32_0 = arith.constant 0 : i32
    %c0_i32_1 = arith.constant 0 : i32
    %c0_i32_2 = arith.constant 0 : i32
    return %c0_i32, %c0_i32_0, %c0_i32_1 : i32, i32, i32
  }
  func.func @transform_5(%arg0: i32) -> (i32, i32, i32) {
    %c0_i32 = arith.constant 0 : i32
    %c0_i32_0 = arith.constant 0 : i32
    %c0_i32_1 = arith.constant 0 : i32
    %c0_i32_2 = arith.constant 0 : i32
    return %c0_i32, %c0_i32_0, %c0_i32_1 : i32, i32, i32
  }
  func.func @transform_6(%arg0: i32) -> (i32, i32) {
    %c0_i32 = arith.constant 0 : i32
    %c0_i32_0 = arith.constant 0 : i32
    %c0_i32_1 = arith.constant 0 : i32
    return %c0_i32, %c0_i32_0 : i32, i32
  }
  func.func @transform_7(%arg0: i32) -> (i32, i32) {
    %c0_i32 = arith.constant 0 : i32
    %c0_i32_0 = arith.constant 0 : i32
    %c0_i32_1 = arith.constant 0 : i32
    return %c0_i32, %c0_i32_0 : i32, i32
  }
  func.func @transform_8(%arg0: i32) -> (i32, i32) {
    %c0_i32 = arith.constant 0 : i32
    %c0_i32_0 = arith.constant 0 : i32
    %c0_i32_1 = arith.constant 0 : i32
    return %c0_i32, %c0_i32_0 : i32, i32
  }
  func.func @transform_9(%arg0: i32) -> (i32, i32, i32) {
    %c0_i32 = arith.constant 0 : i32
    %c0_i32_0 = arith.constant 0 : i32
    %c0_i32_1 = arith.constant 0 : i32
    return %arg0, %c0_i32, %c0_i32_0 : i32, i32, i32
  }
}

module attributes {stable_mosaic.version = 11 : i64} {
  func.func @kernel(%arg0: i32, %arg1: memref<16x256xbf16, #tpu.memory_space<vmem>>, %arg2: memref<16x256xbf16, #tpu.memory_space<vmem>>, %arg3: memref<16x16xbf16, #tpu.memory_space<vmem>>, %arg4: memref<16x16xbf16, #tpu.memory_space<vmem>>, %arg5: memref<16x1xf32, #tpu.memory_space<vmem>>, %arg6: memref<16x256xf32, #tpu.memory_space<vmem>>) attributes {dimension_semantics = [#tpu.dimension_semantics<parallel>], iteration_bounds = array<i64: 2>, scalar_prefetch = 0 : i64, scratch_operands = 0 : i64, tpu.core_type = #tpu.core_type<tc>, window_params = [{transform_indices = @transform_0, window_bounds = array<i64: 16, 256>}, {transform_indices = @transform_1, window_bounds = array<i64: 16, 256>}, {pipeline_mode = #tpu.pipeline_mode<synchronous>, transform_indices = @transform_2, window_bounds = array<i64: 16, 16>}, {pipeline_mode = #tpu.pipeline_mode<synchronous>, transform_indices = @transform_3, window_bounds = array<i64: 16, 16>}, {pipeline_mode = #tpu.pipeline_mode<synchronous>, transform_indices = @transform_4, window_bounds = array<i64: 16, 1>}, {transform_indices = @transform_5, window_bounds = array<i64: 16, 256>}]} {
    %cst = arith.constant 0.000000e+00 : f32
    %0 = vector.broadcast %cst : f32 to vector<16x256xf32>
    %c0 = arith.constant 0 : index
    %c0_0 = arith.constant 0 : index
    %1 = vector.load %arg3[%c0, %c0_0] : memref<16x16xbf16, #tpu.memory_space<vmem>>, vector<16x16xbf16>
    %c0_1 = arith.constant 0 : index
    %c0_2 = arith.constant 0 : index
    %2 = vector.load %arg1[%c0_1, %c0_2] : memref<16x256xbf16, #tpu.memory_space<vmem>>, vector<16x256xbf16>
    %cst_3 = arith.constant dense<0.000000e+00> : vector<16x256xf32>
    %3 = tpu.matmul %1, %2, %cst_3 {dimension_numbers = #tpu.dot_dimension_numbers<[1], [0], [0], [1], [0, 0, 1, 1], [], []>} : vector<16x16xbf16>, vector<16x256xbf16>, vector<16x256xf32> -> vector<16x256xf32>
    %4 = arith.addf %0, %3 : vector<16x256xf32>
    %c0_4 = arith.constant 0 : index
    %c0_5 = arith.constant 0 : index
    %5 = vector.load %arg4[%c0_4, %c0_5] : memref<16x16xbf16, #tpu.memory_space<vmem>>, vector<16x16xbf16>
    %c0_6 = arith.constant 0 : index
    %c0_7 = arith.constant 0 : index
    %6 = vector.load %arg2[%c0_6, %c0_7] : memref<16x256xbf16, #tpu.memory_space<vmem>>, vector<16x256xbf16>
    %cst_8 = arith.constant dense<0.000000e+00> : vector<16x256xf32>
    %7 = tpu.matmul %5, %6, %cst_8 {dimension_numbers = #tpu.dot_dimension_numbers<[1], [0], [0], [1], [0, 0, 1, 1], [], []>} : vector<16x16xbf16>, vector<16x256xbf16>, vector<16x256xf32> -> vector<16x256xf32>
    %8 = arith.addf %4, %7 : vector<16x256xf32>
    %c0_9 = arith.constant 0 : index
    %c0_10 = arith.constant 0 : index
    %9 = vector.load %arg5[%c0_9, %c0_10] : memref<16x1xf32, #tpu.memory_space<vmem>>, vector<16x1xf32>
    %10 = vector.broadcast %9 : vector<16x1xf32> to vector<16x256xf32>
    %11 = arith.addf %8, %10 : vector<16x256xf32>
    %cst_11 = arith.constant 0.000000e+00 : f32
    %12 = vector.broadcast %cst_11 : f32 to vector<16x256xf32>
    %13 = arith.maximumf %11, %12 : vector<16x256xf32>
    %c0_12 = arith.constant 0 : index
    %c0_13 = arith.constant 0 : index
    %14 = vector.load %arg6[%c0_12, %c0_13] : memref<16x256xf32, #tpu.memory_space<vmem>>, vector<16x256xf32>
    tpu.vector_store %arg6[%c0_12, %c0_13], %13 {strides = array<i32>} : memref<16x256xf32, #tpu.memory_space<vmem>>, vector<16x256xf32>,
    return
  }
  func.func @transform_0(%arg0: i32) -> (i32, i32) {
    %c0_i32 = arith.constant 0 : i32
    %c0_i32_0 = arith.constant 0 : i32
    return %c0_i32, %arg0 : i32, i32
  }
  func.func @transform_1(%arg0: i32) -> (i32, i32) {
    %c0_i32 = arith.constant 0 : i32
    %c0_i32_0 = arith.constant 0 : i32
    return %c0_i32, %arg0 : i32, i32
  }
  func.func @transform_2(%arg0: i32) -> (i32, i32) {
    %c0_i32 = arith.constant 0 : i32
    %c0_i32_0 = arith.constant 0 : i32
    %c0_i32_1 = arith.constant 0 : i32
    return %c0_i32, %c0_i32_0 : i32, i32
  }
  func.func @transform_3(%arg0: i32) -> (i32, i32) {
    %c0_i32 = arith.constant 0 : i32
    %c0_i32_0 = arith.constant 0 : i32
    %c0_i32_1 = arith.constant 0 : i32
    return %c0_i32, %c0_i32_0 : i32, i32
  }
  func.func @transform_4(%arg0: i32) -> (i32, i32) {
    %c0_i32 = arith.constant 0 : i32
    %c0_i32_0 = arith.constant 0 : i32
    %c0_i32_1 = arith.constant 0 : i32
    return %c0_i32, %c0_i32_0 : i32, i32
  }
  func.func @transform_5(%arg0: i32) -> (i32, i32) {
    %c0_i32 = arith.constant 0 : i32
    %c0_i32_0 = arith.constant 0 : i32
    return %c0_i32, %arg0 : i32, i32
  }
}

</mosaic_0001>

<bundles_post_ra>
// kernel: c3_dwrseg_forward.6
= control target key start
LH: loop header
LB: loop body
LE: loop exit
PB: predicated region body
PF: predicated region fallthrough
CT: control target
= control target key end

     0   :  { %s505_s12 = smov 0   ;;  %s507_s13 = smov 0   ;;  %s578_s0 = inlined_call_operand.vmem [shape: bf16[16,512], index: 0, kind: input, shape index: {}]   ;;  %s579_s1 = inlined_call_operand.vmem [shape: bf16[16,16], index: 1, kind: input, shape index: {}]   ;;  %s580_s2 = inlined_call_operand.vmem [shape: f32[16,1], index: 2, kind: input, shape index: {}]   ;;  %s581_s3 = inlined_call_operand.vmem [shape: bf16[16,512], index: 3, kind: output, shape index: {}]  }
   0x1   :  { %s509_s14 = smov 0  }
   0x2 LB: > { %s405_s15 = sadd.s32 4294967295, %s482_s14   ;;  %s522_s16 = sadd.s32 1, %s482_s14   ;;  %s482_s14 = sphi %s509_s14, %s585_s14   ;;  %s478_s13 = sphi %s507_s13, %s584_s13   ;;  %s474_s12 = sphi %s505_s12, %s583_s12  }
   0x3   : > { %s17_s17 = ssub.s32 %s482_s14, %s522_s16  ;;  %s20_s18 = sadd.s32 1, %s478_s13 }
   0x4   : > { %p18_p0 = scmp.eq.s32.totalorder %s17_s17, 0  ;;  %p27_p1 = scmp.ne.s32.totalorder %s478_s13, %s474_s12 }
   0x5   : > { %p28_p2 = scmp.eq.s32.totalorder %s482_s14, 0  ;;  %p99_p3 = scmp.eq.s32.totalorder %s405_s15, 1 }
   0x6   : > { %s533_s19 = scalar_select %p18_p0, %s478_s13, %s20_s18  }
   0x7   : > { %p29_p4 = por %p28_p2, %p27_p1  ;;  %p535_p5 = por %p99_p3, %p27_p1 }
   0x8   : > { %p408_p6 = scmp.ge.s32.totalorder %s482_s14, 2 }
   0xa   : > { %127 = sbr.rel (%p408_p6) target bundleno = 24 (0x18), region = 24 }
  0x11   : > { %130 = sbr.rel (!%p29_p4) target bundleno = 24 (0x18), region = 28  ;;  %s132_s21 = sand.u32 (%p29_p4), 1, %s478_s13  }
  0x12   : > { %s426_s22 = sshll.u32 (%p29_p4), %s482_s14, 3  ;;  %s409_s23 = sshll.u32 (%p29_p4), %s132_s21, 4 }
  0x13   : > { %s137_s26 = scalar_lea.vmem (%p29_p4), %s578_s0, %s426_s22  ;;  %s134_s27 = scalar_lea.vmem (%p29_p4), [#allocation2], %s409_s23 }
  0x14   : > { %v167_v0 = vld [vmem:[%s137_s26] sm:$0xff] (%p29_p4)  ;;  %v169_v1 = vld [vmem:[%s137_s26 + $0x10] sm:$0xff] (%p29_p4) }
  0x15   : > { %168 = vst [vmem:[%s134_s27] sm:$0xff] (%p29_p4), %v167_v0  ;;  %170 = vst [vmem:[%s134_s27 + $0x8] sm:$0xff] (%p29_p4), %v169_v1 }
  0x18 PF: > { %p412_p7 = scmp.ge.s32.totalorder %s482_s14, 1  ;;  %p175_p8 = scmp.lt.s32.totalorder %s482_s14, 3 }
  0x1a   : > { %p176_p9 = pnand %p412_p7, %p175_p8 }
  0x1b   : > { %s182_s28 = sand.u32 (!%p176_p9), 1, %s474_s12   ;;  %v484_v2 = vmov (!%p176_p9), 0   ;;  %v211_v3 = vld [vmem:[%s580_s2] sm:$0xff] (!%p176_p9)  ;;  %v212_v4 = vld [vmem:[%s580_s2 + $0x8] sm:$0xff] (!%p176_p9)  ;;  %vm238_vm0 = vcmask (!%p176_p9), 130048  }
  0x1c   : > { %179 = sbr.rel (%p176_p9) target bundleno = 265 (0x109), region = 66  ;;  %s548_s29 = sshll.u32 (!%p176_p9), %s182_s28, 4  ;;  %274 = vmatprep.mubr.bf16.mxu0 (!%p176_p9), %v484_v2  ;;  %455 = vset.pattern.permute.xlu0 (!%p176_p9), %v484_v2  ;;  %v459_v7 = vld [vmem:[%s579_s1] sm:$0xff] (!%p176_p9)  }
  0x1d   : > { %215 = vperm.xlu0 (!%p176_p9), %455, %v211_v3   ;;  %s184_s7 = scalar_lea.vmem (!%p176_p9), [#allocation2], %s548_s29  ;;  %s203_s10 = scalar_lea.vmem (!%p176_p9), [#allocation3], %s548_s29 }
  0x1e   : > { %v456_v5 = vld [vmem:[%s184_s7 + $0x4] ss:$8 sps:$4 sm:$0xff] (!%p176_p9)   ;;  %v458_v6 = vld [vmem:[%s184_s7] ss:$8 sps:$4 sm:$0xff] (!%p176_p9)  }
  0x1f   : > { %242 = vmatprep.subr.bf16.mxu0 (!%p176_p9), %v456_v5 }
  0x20   : > { %243 = vmatpush1.bf16.msra.mxu0 (!%p176_p9), %v458_v6 }
  0x21   : > { %220 = vperm.xlu0 (!%p176_p9), %455, %v212_v4  }
  0x23   : > { %418 = vmatmul.mubr.msk.bf16.vlgmr.msra.gmra.mrb[0].mxu0 %vm238_vm0, %v459_v7  ;;  %s429_s11 = sshll.u32 (%p535_p5), %s405_s15, 3 }
  0x24   : > { %s312_s18 = scalar_lea.vmem (%p535_p5), %s581_s3, %s429_s11 }
  0x9c   : > { %v216_v8 = vpop.permute.xlu0 %215 }
  0xa0   : > { %v221_v12 = vpop.permute.xlu0 %220 }
  0xf6   : > { %v276_v9 = vpop.f32.mrb[0].mxu0 }
  0xf7   : > { %v277_v10 = vadd.f32 %v276_v9, %v216_v8  ;;  %v278_v11 = vpop.f32.mrb[1].mxu0 }
  0xf8   : > { %v279_v13 = vadd.f32 %v278_v11, %v216_v8  ;;  %v280_v14 = vpop.f32.mrb[2].mxu0 }
  0xf9   : > { %v285_v15 = vmax.f32 %v277_v10, 0.0  ;;  %v281_v16 = vadd.f32 %v280_v14, %v221_v12  ;;  %v282_v17 = vpop.f32.mrb[3].mxu0 }
  0xfa   : > { %v286_v18 = vmax.f32 %v279_v13, 0.0  ;;  %v283_v19 = vadd.f32 %v282_v17, %v221_v12  ;;  %309 = sbr.rel (!%p535_p5) target bundleno = 265 (0x109), region = 74 }
  0xfb   : > { %v287_v20 = vmax.f32 %v281_v16, 0.0 }
  0xfc   : > { %v427_v21 = vpack.c.bf16 %v286_v18, %v285_v15  ;;  %v288_v22 = vmax.f32 %v283_v19, 0.0 }
  0xfe   : > { %301 = vst [vmem:[%s203_s10] sm:$0xff] %v427_v21  ;;  %v428_v23 = vpack.c.bf16 %v288_v22, %v287_v20 }
 0x100   : > { %302 = vst [vmem:[%s203_s10 + $0x8] sm:$0xff] %v428_v23 }
 0x105   : > { %v342_v24 = vld [vmem:[%s203_s10] sm:$0xff] }
 0x106   : > { %343 = vst [vmem:[%s312_s18] sm:$0xff] %v342_v24 }
 0x107   : > { %v344_v25 = vld [vmem:[%s203_s10 + $0x8] sm:$0xff] }
 0x108   : > { %345 = vst [vmem:[%s312_s18 + $0x10] sm:$0xff] %v344_v25 }
 0x109 PF: > { %p10_p10 = scmp.ge.s32.totalorder %s522_s16, 4   ;;  %s583_s12 = smov %s478_s13 }
 0x10a   : > { %s584_s13 = smov %s533_s19  ;;  %s585_s14 = smov %s522_s16 }
 0x10b   :  { %12 = sbr.rel (!%p10_p10) target bundleno = 2 (0x2), region = 143 }

// kernel: c3_dwrseg_forward.9
= control target key start
LH: loop header
LB: loop body
LE: loop exit
PB: predicated region body
PF: predicated region fallthrough
CT: control target
= control target key end

     0   :  { %s872_s15 = smov 0   ;;  %s1075_s0 = inlined_call_operand.vmem [shape: bf16[2,16,1024], index: 0, kind: input, shape index: {}]   ;;  %s1076_s1 = inlined_call_operand.vmem [shape: bf16[16,144], index: 1, kind: input, shape index: {}]   ;;  %s1077_s2 = inlined_call_operand.vmem [shape: f32[16,1], index: 2, kind: input, shape index: {}]   ;;  %s1078_s3 = inlined_call_operand.vmem [shape: f32[1,512], index: 3, kind: input, shape index: {}]   ;;  %s1079_s4 = inlined_call_operand.vmem [shape: bf16[2,16,1024], index: 4, kind: output, shape index: {}]  }
   0x1 LB: > { %s771_s16 = sadd.s32 4294967295, %s835_s15   ;;  %p775_p0 = scmp.ge.s32.totalorder %s835_s15, 1  ;;  %s835_s15 = sphi %s872_s15, %s14_s15  }
   0x2   : > { %p162_p1 = scmp.lt.s32.totalorder %s835_s15, 3 }
   0x4   : > { %p163_p2 = pnand %p775_p0, %p162_p1 }
   0x5   : > { %p188_p3 = scmp.lt.s32.totalorder (!%p163_p2), %s771_s16, 1  ;;  %s837_s21 = smov (!%p163_p2), 127   ;;  %vm242_vm0 = vcmask (!%p163_p2), 1039360   ;;  %vm257_vm1 = vcmask (!%p163_p2), 1031168   ;;  %vm272_vm2 = vcmask (!%p163_p2), 785408   ;;  %vm301_vm3 = vcmask (!%p163_p2), 777216  }
   0x6   : > { %166 = sbr.rel (%p163_p2) target bundleno = 587 (0x24b), region = 36  ;;  %s838_s22 = smov (!%p163_p2), 126   ;;  %vm320_vm4 = vcmask (!%p163_p2), 769024   ;;  %vm335_vm5 = vcmask (!%p163_p2), 523264   ;;  %vm350_vm6 = vcmask (!%p163_p2), 515072   ;;  %vm483_vm7 = vcmask (!%p163_p2), 269312  }
   0x7   : > { %s839_s23 = smov (!%p163_p2), 96   ;;  %s840_s24 = smov (!%p163_p2), 95   ;;  %vm365_vm8 = vcmask (!%p163_p2), 506880   ;;  %vm556_vm9 = vcmask (!%p163_p2), 130048  }
   0x8   : > { %s841_s25 = smov (!%p163_p2), 94   ;;  %s842_s26 = smov (!%p163_p2), 64  }
   0x9   : > { %s843_s27 = smov (!%p163_p2), 63   ;;  %s844_s28 = smov (!%p163_p2), 62  }
   0xa   : > { %s845_s29 = smov (!%p163_p2), 33  }
   0xd   : > { %s1081_s16 = smov (!%p188_p3, %s771_s16), 1 }
   0xe   : > { %s800_s17 = sshll.u32 %s1081_s16, 6 }
   0xf   : > { %s888_s20 = scalar_lea.vmem %s1075_s0, %s800_s17  ;;  %s1013_s8 = scalar_lea.vmem %s1079_s4, %s800_s17 }
  0x10   : > { %v200_v0 = vld [vmem:[%s888_s20 + $0xc] sm:$0xff]  ;;  %v199_v2 = vld [vmem:[%s888_s20 + $0x4] sm:$0xff]  ;;  %v201_v5 = vld [vmem:[%s888_s20 + $0x14] sm:$0xf] }
  0x11   : > { %v203_v1 = vld [vmem:[%s888_s20 + $0x2c] sm:$0xff]  ;;  %v202_v4 = vld [vmem:[%s888_s20 + $0x24] sm:$0xff]  ;;  %v204_v6 = vld [vmem:[%s888_s20 + $0x34] sm:$0xf] }
  0x12   : > { %v893_v3 = vcombine.high %v200_v0, %v203_v1  ;;  %v781_v7 = vcombine.high %v199_v2, %v202_v4  ;;  %v899_v8 = vcombine.low %v201_v5, %v204_v6  ;;  %v782_v9 = vcombine.low %v200_v0, %v203_v1  ;;  %v205_v11 = vld [vmem:[%s888_s20 + $0x8] sm:$0xff]  ;;  %v206_v14 = vld [vmem:[%s888_s20 + $0x10] sm:$0xff]  ;;  %v209_v19 = vld [vmem:[%s888_s20 + $0x18] sm:$0xf] }
  0x13   : > { %v780_v10 = vcombine.low %v199_v2, %v202_v4  ;;  %v207_v12 = vld [vmem:[%s888_s20 + $0x28] sm:$0xff]  ;;  %v208_v15 = vld [vmem:[%s888_s20 + $0x30] sm:$0xff]  ;;  %v210_v20 = vld [vmem:[%s888_s20 + $0x38] sm:$0xf] }
  0x14   : > { %238 = vrot.lane.b32.xlu1 %v893_v3, %s837_s21  ;;  %234 = vrot.lane.b32.xlu0 %v781_v7, %s837_s21  ;;  %v785_v13 = vcombine.low %v205_v11, %v207_v12  ;;  %v787_v16 = vcombine.low %v206_v14, %v208_v15  ;;  %v786_v17 = vcombine.high %v205_v11, %v207_v12 }
  0x15   : > { %v788_v18 = vcombine.high %v206_v14, %v208_v15  ;;  %v789_v21 = vcombine.low %v209_v19, %v210_v20 }
  0x18   : > { %240 = vrot.lane.b32.xlu1 %v899_v8, %s837_s21  ;;  %236 = vrot.lane.b32.xlu0 %v782_v9, %s837_s21 }
  0x1c   : > { %249 = vrot.lane.b32.xlu1 %v781_v7, %s838_s22  ;;  %232 = vrot.lane.b32.xlu0 %v780_v10, %s837_s21 }
  0x20   : > { %253 = vrot.lane.b32.xlu1 %v893_v3, %s838_s22  ;;  %251 = vrot.lane.b32.xlu0 %v782_v9, %s838_s22 }
  0x24   : > { %247 = vrot.lane.b32.xlu1 %v780_v10, %s838_s22  ;;  %255 = vrot.lane.b32.xlu0 %v899_v8, %s838_s22 }
  0x28   : > { %266 = vrot.lane.b32.xlu1 %v782_v9, %s839_s23  ;;  %264 = vrot.lane.b32.xlu0 %v781_v7, %s839_s23 }
  0x2c   : > { %270 = vrot.lane.b32.xlu1 %v899_v8, %s839_s23  ;;  %268 = vrot.lane.b32.xlu0 %v893_v3, %s839_s23 }
  0x30   : > { %293 = vrot.lane.b32.xlu1 %v785_v13, %s840_s24  ;;  %262 = vrot.lane.b32.xlu0 %v780_v10, %s839_s23 }
  0x34   : > { %297 = vrot.lane.b32.xlu1 %v787_v16, %s840_s24  ;;  %295 = vrot.lane.b32.xlu0 %v786_v17, %s840_s24 }
  0x38   : > { %310 = vrot.lane.b32.xlu1 %v785_v13, %s841_s25  ;;  %299 = vrot.lane.b32.xlu0 %v788_v18, %s840_s24 }
  0x3c   : > { %314 = vrot.lane.b32.xlu1 %v787_v16, %s841_s25  ;;  %312 = vrot.lane.b32.xlu0 %v786_v17, %s841_s25 }
  0x40   : > { %318 = vrot.lane.b32.xlu1 %v789_v21, %s841_s25  ;;  %316 = vrot.lane.b32.xlu0 %v788_v18, %s841_s25 }
  0x44   : > { %327 = vrot.lane.b32.xlu1 %v786_v17, %s842_s26  ;;  %325 = vrot.lane.b32.xlu0 %v785_v13, %s842_s26 }
  0x48   : > { %331 = vrot.lane.b32.xlu1 %v788_v18, %s842_s26  ;;  %329 = vrot.lane.b32.xlu0 %v787_v16, %s842_s26 }
  0x4c   : > { %340 = vrot.lane.b32.xlu1 %v785_v13, %s843_s27  ;;  %333 = vrot.lane.b32.xlu0 %v789_v21, %s842_s26 }
  0x50   : > { %344 = vrot.lane.b32.xlu1 %v787_v16, %s843_s27  ;;  %342 = vrot.lane.b32.xlu0 %v786_v17, %s843_s27 }
  0x54   : > { %348 = vrot.lane.b32.xlu1 %v789_v21, %s843_s27  ;;  %346 = vrot.lane.b32.xlu0 %v788_v18, %s843_s27 }
  0x58   : > { %357 = vrot.lane.b32.xlu1 %v786_v17, %s844_s28  ;;  %355 = vrot.lane.b32.xlu0 %v785_v13, %s844_s28 }
  0x5c   : > { %361 = vrot.lane.b32.xlu1 %v788_v18, %s844_s28  ;;  %359 = vrot.lane.b32.xlu0 %v787_v16, %s844_s28 }
  0x60   : > { %395 = vrot.lane.b32.xlu1 %v781_v7, %s845_s29  ;;  %363 = vrot.lane.b32.xlu0 %v789_v21, %s844_s28 }
  0x64   : > { %399 = vrot.lane.b32.xlu1 %v893_v3, %s845_s29  ;;  %397 = vrot.lane.b32.xlu0 %v782_v9, %s845_s29 }
  0x68   : > { %393 = vrot.lane.b32.xlu1 %v780_v10, %s845_s29  ;;  %401 = vrot.lane.b32.xlu0 %v899_v8, %s845_s29 }
  0x86   : > { %v239_v22 = vpop.permute.xlu1 %238  ;;  %v235_v23 = vpop.permute.xlu0 %234 }
  0x8a   : > { %v241_v24 = vpop.permute.xlu1 %240  ;;  %v237_v25 = vpop.permute.xlu0 %236 }
  0x8b   : > { %411 = vrot.lane.b32.xlu1 %v241_v24, %s845_s29  ;;  %v245_v39 = vsel %vm242_vm0, %v237_v25, %v239_v22  ;;  %v244_v46 = vsel %vm242_vm0, %v235_v23, %v237_v25  ;;  %v246_v50 = vsel %vm242_vm0, %v239_v22, %v241_v24 }
  0x8e   : > { %v250_v26 = vpop.permute.xlu1 %249  ;;  %v233_v27 = vpop.permute.xlu0 %232 }
  0x8f   : > { %v243_v54 = vsel %vm242_vm0, %v233_v27, %v235_v23 }
  0x92   : > { %v254_v28 = vpop.permute.xlu1 %253  ;;  %v252_v29 = vpop.permute.xlu0 %251 }
  0x93   : > { %v259_v41 = vsel %vm257_vm1, %v250_v26, %v252_v29  ;;  %v260_v58 = vsel %vm257_vm1, %v252_v29, %v254_v28 }
  0x96   : > { %v248_v30 = vpop.permute.xlu1 %247  ;;  %v256_v31 = vpop.permute.xlu0 %255 }
  0x97   : > { %421 = vrot.lane.b32.xlu0 %v256_v31, %s845_s29  ;;  %v261_v44 = vsel %vm257_vm1, %v254_v28, %v256_v31  ;;  %v258_v48 = vsel %vm257_vm1, %v248_v30, %v250_v26 }
  0x9a   : > { %v267_v32 = vpop.permute.xlu1 %266  ;;  %v265_v33 = vpop.permute.xlu0 %264 }
  0x9b   : > { %v274_v62 = vsel %vm272_vm2, %v265_v33, %v267_v32 }
  0x9e   : > { %v271_v34 = vpop.permute.xlu1 %270  ;;  %v269_v35 = vpop.permute.xlu0 %268 }
  0x9f   : > { %431 = vrot.lane.b32.xlu1 %v271_v34, %s845_s29  ;;  %v275_v52 = vsel %vm272_vm2, %v267_v32, %v269_v35  ;;  %v276_v2 = vsel %vm272_vm2, %v269_v35, %v271_v34  ;;  %v828_v34 = vld [vmem:[%s1076_s1 + $0x4] ss:$8 sps:$4 sm:$0xff]  }
  0xa0   : > { %792 = vmatprep.mubr.msk.bf16.mxu0 %vm556_vm9, %v828_v34  ;;  %793 = vmatprep.mubr.msk.bf16.mxu1 %vm556_vm9, %v828_v34 }
  0xa2   : > { %v294_v36 = vpop.permute.xlu1 %293  ;;  %v263_v37 = vpop.permute.xlu0 %262 }
  0xa3   : > { %433 = vrot.lane.b32.xlu1 %v294_v36, %s845_s29  ;;  %v273_v6 = vsel %vm272_vm2, %v263_v37, %v265_v33  ;;  %v846_v37 = vmov 0  }
  0xa4   : > { %825 = vset.pattern.permute.xlu1 %v846_v37  ;;  %684 = vst [vmem:[%s1013_s8] sm:$0xff] %v846_v37  ;;  %685 = vst [vmem:[%s1013_s8 + $0x20] sm:$0xff] %v846_v37  ;;  %824 = vset.pattern.permute.xlu0 %v846_v37 }
  0xa5   : > { %714 = vst [vmem:[%s1013_s8 + $0x18] sm:$0xff] %v846_v37  ;;  %715 = vst [vmem:[%s1013_s8 + $0x38] sm:$0xff] %v846_v37 }
  0xa6   : > { %v298_v38 = vpop.permute.xlu1 %297  ;;  %v296_v40 = vpop.permute.xlu0 %295 }
  0xa7   : > { %407 = vrot.lane.b32.xlu1 %v245_v39, %s845_s29  ;;  %v302_v56 = vsel %vm301_vm3, %v294_v36, %v296_v40  ;;  %v303_v10 = vsel %vm301_vm3, %v296_v40, %v298_v38  ;;  %v373_v36 = vld [vmem:[%s1077_s2 + $0x8] sm:$0xff]  ;;  %v372_v40 = vld [vmem:[%s1077_s2] sm:$0xff] }
  0xaa   : > { %v926_v42 = vpop.permute.xlu1 %310  ;;  %v300_v43 = vpop.permute.xlu0 %299 }
  0xab   : > { %415 = vrot.lane.b32.xlu1 %v259_v41, %s845_s29  ;;  %441 = vrot.lane.b32.xlu0 %v300_v43, %s845_s29  ;;  %v304_v60 = vsel %vm301_vm3, %v298_v38, %v300_v43 }
  0xae   : > { %v315_v45 = vpop.permute.xlu1 %314  ;;  %v313_v47 = vpop.permute.xlu0 %312 }
  0xaf   : > { %419 = vrot.lane.b32.xlu1 %v261_v44, %s845_s29  ;;  %405 = vrot.lane.b32.xlu0 %v244_v46, %s845_s29  ;;  %v322_v0 = vsel %vm320_vm4, %v313_v47, %v315_v45  ;;  %v321_v14 = vsel %vm320_vm4, %v926_v42, %v313_v47 }
  0xb2   : > { %v319_v49 = vpop.permute.xlu1 %318  ;;  %v317_v51 = vpop.permute.xlu0 %316 }
  0xb3   : > { %413 = vrot.lane.b32.xlu1 %v258_v48, %s845_s29  ;;  %409 = vrot.lane.b32.xlu0 %v246_v50, %s845_s29  ;;  %v324_v4 = vsel %vm320_vm4, %v317_v51, %v319_v49  ;;  %v323_v17 = vsel %vm320_vm4, %v315_v45, %v317_v51 }
  0xb6   : > { %v328_v53 = vpop.permute.xlu1 %327  ;;  %v326_v55 = vpop.permute.xlu0 %325 }
  0xb7   : > { %427 = vrot.lane.b32.xlu1 %v275_v52, %s845_s29  ;;  %403 = vrot.lane.b32.xlu0 %v243_v54, %s845_s29  ;;  %v336_v8 = vsel %vm335_vm5, %v326_v55, %v328_v53 }
  0xba   : > { %v943_v57 = vpop.permute.xlu1 %331  ;;  %v330_v59 = vpop.permute.xlu0 %329 }
  0xbb   : > { %435 = vrot.lane.b32.xlu1 %v302_v56, %s845_s29  ;;  %417 = vrot.lane.b32.xlu0 %v260_v58, %s845_s29  ;;  %v338_v12 = vsel %vm335_vm5, %v330_v59, %v943_v57  ;;  %v337_v25 = vsel %vm335_vm5, %v328_v53, %v330_v59 }
  0xbe   : > { %v949_v61 = vpop.permute.xlu1 %340  ;;  %v334_v63 = vpop.permute.xlu0 %333 }
  0xbf   : > { %439 = vrot.lane.b32.xlu1 %v304_v60, %s845_s29  ;;  %425 = vrot.lane.b32.xlu0 %v274_v62, %s845_s29  ;;  %v339_v31 = vsel %vm335_vm5, %v943_v57, %v334_v63 }
  0xc2   : > { %v345_v1 = vpop.permute.xlu1 %344  ;;  %v343_v3 = vpop.permute.xlu0 %342 }
  0xc3   : > { %447 = vrot.lane.b32.xlu1 %v322_v0, %s845_s29  ;;  %429 = vrot.lane.b32.xlu0 %v276_v2, %s845_s29  ;;  %v352_v19 = vsel %vm350_vm6, %v343_v3, %v345_v1  ;;  %v351_v33 = vsel %vm350_vm6, %v949_v61, %v343_v3 }
  0xc6   : > { %v349_v5 = vpop.permute.xlu1 %348  ;;  %v347_v7 = vpop.permute.xlu0 %346 }
  0xc7   : > { %451 = vrot.lane.b32.xlu1 %v324_v4, %s845_s29  ;;  %423 = vrot.lane.b32.xlu0 %v273_v6, %s845_s29  ;;  %v354_v22 = vsel %vm350_vm6, %v347_v7, %v349_v5  ;;  %v353_v35 = vsel %vm350_vm6, %v345_v1, %v347_v7 }
  0xca   : > { %v963_v9 = vpop.permute.xlu1 %357  ;;  %v356_v11 = vpop.permute.xlu0 %355 }
  0xcb   : > { %455 = vrot.lane.b32.xlu1 %v336_v8, %s845_s29  ;;  %437 = vrot.lane.b32.xlu0 %v303_v10, %s845_s29  ;;  %v366_v29 = vsel %vm365_vm8, %v356_v11, %v963_v9 }
  0xce   : > { %v362_v13 = vpop.permute.xlu1 %361  ;;  %v360_v15 = vpop.permute.xlu0 %359 }
  0xcf   : > { %459 = vrot.lane.b32.xlu1 %v338_v12, %s845_s29  ;;  %445 = vrot.lane.b32.xlu0 %v321_v14, %s845_s29  ;;  %v368_v32 = vsel %vm365_vm8, %v360_v15, %v362_v13  ;;  %v367_v38 = vsel %vm365_vm8, %v963_v9, %v360_v15 }
  0xd2   : > { %v396_v16 = vpop.permute.xlu1 %395  ;;  %v364_v18 = vpop.permute.xlu0 %363 }
  0xd3   : > { %453 = vrot.lane.b32.xlu1 %v326_v55, %s845_s29  ;;  %449 = vrot.lane.b32.xlu0 %v323_v17, %s845_s29  ;;  %v369_v39 = vsel %vm365_vm8, %v362_v13, %v364_v18 }
  0xd6   : > { %v400_v20 = vpop.permute.xlu1 %399  ;;  %v398_v21 = vpop.permute.xlu0 %397 }
  0xd7   : > { %467 = vrot.lane.b32.xlu1 %v352_v19, %s845_s29  ;;  %443 = vrot.lane.b32.xlu0 %v926_v42, %s845_s29  ;;  %v485_v23 = vsel %vm483_vm7, %v396_v16, %v398_v21  ;;  %v486_v28 = vsel %vm483_vm7, %v398_v21, %v400_v20 }
  0xd8   : > { %560 = vmatprep.subr.bf16.mxu0 %v485_v23 }
  0xda   : > { %v394_v24 = vpop.permute.xlu1 %393  ;;  %v402_v26 = vpop.permute.xlu0 %401 }
  0xdb   : > { %471 = vrot.lane.b32.xlu1 %v354_v22, %s845_s29  ;;  %v484_v27 = vsel %vm483_vm7, %v394_v24, %v396_v16  ;;  %457 = vrot.lane.b32.xlu0 %v337_v25, %s845_s29  ;;  %v487_v30 = vsel %vm483_vm7, %v400_v20, %v402_v26 }
  0xdc   : > { %561 = vmatpush1.bf16.msra.mxu0 %v484_v27  ;;  %603 = vmatprep.subr.bf16.mxu1 %v487_v30 }
  0xdd   : > { %604 = vmatpush1.bf16.msra.mxu1 %v486_v28 }
  0xdf   : > { %475 = vrot.lane.b32.xlu1 %v366_v29, %s845_s29  ;;  %461 = vrot.lane.b32.xlu0 %v339_v31, %s845_s29 }
  0xe3   : > { %479 = vrot.lane.b32.xlu1 %v368_v32, %s845_s29  ;;  %465 = vrot.lane.b32.xlu0 %v351_v33, %s845_s29 }
  0xe7   : > { %473 = vrot.lane.b32.xlu1 %v356_v11, %s845_s29  ;;  %469 = vrot.lane.b32.xlu0 %v353_v35, %s845_s29 }
  0xeb   : > { %463 = vrot.lane.b32.xlu0 %v949_v61, %s845_s29  ;;  %381 = vperm.xlu1 %825, %v373_v36  }
  0xef   : > { %477 = vrot.lane.b32.xlu0 %v367_v38, %s845_s29 }
  0xf3   : > { %481 = vrot.lane.b32.xlu0 %v369_v39, %s845_s29 }
  0xf7   : > { %376 = vperm.xlu0 %824, %v372_v40  }
  0xfd   : > { %v412_v41 = vpop.permute.xlu1 %411 }
 0x109   : > { %v422_v45 = vpop.permute.xlu0 %421 }
 0x111   : > { %v432_v42 = vpop.permute.xlu1 %431 }
 0x115   : > { %v434_v43 = vpop.permute.xlu1 %433 }
 0x119   : > { %v408_v44 = vpop.permute.xlu1 %407 }
 0x11d   : > { %v416_v46 = vpop.permute.xlu1 %415  ;;  %v442_v47 = vpop.permute.xlu0 %441 }
 0x121   : > { %v420_v48 = vpop.permute.xlu1 %419  ;;  %v406_v49 = vpop.permute.xlu0 %405 }
 0x122   : > { %v489_v50 = vsel %vm483_vm7, %v406_v49, %v408_v44  ;;  %v495_v56 = vsel %vm483_vm7, %v420_v48, %v422_v45 }
 0x123   : > { %562 = vmatprep.subr.bf16.mxu0 %v489_v50  ;;  %v656_v50 = vlaneseq }
 0x125   : > { %v414_v51 = vpop.permute.xlu1 %413  ;;  %v410_v52 = vpop.permute.xlu0 %409 }
 0x126   : > { %v491_v53 = vsel %vm483_vm7, %v410_v52, %v412_v41  ;;  %v490_v54 = vsel %vm483_vm7, %v408_v44, %v410_v52  ;;  %v492_v63 = vsel %vm483_vm7, %v414_v51, %v416_v46  ;;  %v657_v51 = vshrl.u32 %v656_v50, 7 }
 0x127   : > { %605 = vmatprep.subr.bf16.mxu1 %v491_v53  ;;  %v654_v53 = vld [vmem:[%s1078_s3] sm:$0xf] }
 0x128   : > { %606 = vmatpush1.bf16.msra.mxu1 %v490_v54  ;;  %v658_v52 = vsub.s32 0, %v657_v51  ;;  %v662_v54 = vsub.s32 1, %v657_v51 }
 0x129   : > { %v428_v55 = vpop.permute.xlu1 %427  ;;  %607 = vmatprep.subr.bf16.mxu1 %v495_v56  ;;  %v404_v57 = vpop.permute.xlu0 %403 }
 0x12a   : > { %v488_v58 = vsel %vm483_vm7, %v404_v57, %v406_v49 }
 0x12b   : > { %563 = vmatpush1.bf16.msra.mxu0 %v488_v58 }
 0x12d   : > { %v436_v59 = vpop.permute.xlu1 %435  ;;  %v418_v60 = vpop.permute.xlu0 %417 }
 0x12e   : > { %v493_v61 = vsel %vm483_vm7, %v416_v46, %v418_v60  ;;  %v494_v62 = vsel %vm483_vm7, %v418_v60, %v420_v48  ;;  %v500_v15 = vsel %vm483_vm7, %v434_v43, %v436_v59  ;;  %v826_v46 = vld [vmem:[%s1076_s1] ss:$8 sps:$4 sm:$0xff]  }
 0x12f   : > { %564 = vmatprep.subr.bf16.mxu0 %v493_v61  ;;  %608 = vmatpush1.bf16.msra.mxu1 %v494_v62  ;;  %v666_v61 = vsub.s32 2, %v657_v51 }
 0x130   : > { %565 = vmatpush1.bf16.msra.mxu0 %v492_v63  ;;  %v663_v63 = vrot.slane %v654_v53, %v662_v54 }
 0x131   : > { %v440_v0 = vpop.permute.xlu1 %439  ;;  %v426_v1 = vpop.permute.xlu0 %425 }
 0x132   : > { %v497_v2 = vsel %vm483_vm7, %v426_v1, %v428_v55  ;;  %v503_v7 = vsel %vm483_vm7, %v440_v0, %v442_v47 }
 0x133   : > { %566 = vmatprep.subr.bf16.mxu0 %v497_v2 }
 0x135   : > { %v448_v3 = vpop.permute.xlu1 %447  ;;  %v430_v4 = vpop.permute.xlu0 %429 }
 0x136   : > { %v499_v5 = vsel %vm483_vm7, %v430_v4, %v432_v42  ;;  %v498_v6 = vsel %vm483_vm7, %v428_v55, %v430_v4 }
 0x137   : > { %609 = vmatprep.subr.bf16.mxu1 %v499_v5 }
 0x138   : > { %610 = vmatpush1.bf16.msra.mxu1 %v498_v6 }
 0x139   : > { %v452_v8 = vpop.permute.xlu1 %451  ;;  %611 = vmatprep.subr.bf16.mxu1 %v503_v7  ;;  %v424_v9 = vpop.permute.xlu0 %423 }
 0x13a   : > { %v496_v10 = vsel %vm483_vm7, %v424_v9, %v426_v1  ;;  %v670_v1 = vsub.s32 3, %v657_v51 }
 0x13b   : > { %567 = vmatpush1.bf16.msra.mxu0 %v496_v10 }
 0x13d   : > { %v456_v11 = vpop.permute.xlu1 %455  ;;  %v438_v12 = vpop.permute.xlu0 %437 }
 0x13e   : > { %v501_v13 = vsel %vm483_vm7, %v436_v59, %v438_v12  ;;  %v502_v14 = vsel %vm483_vm7, %v438_v12, %v440_v0  ;;  %v659_v59 = vrot.slane %v654_v53, %v658_v52  ;;  %v667_v12 = vrot.slane %v654_v53, %v666_v61 }
 0x13f   : > { %568 = vmatprep.subr.bf16.mxu0 %v501_v13  ;;  %612 = vmatpush1.bf16.msra.mxu1 %v502_v14 }
 0x140   : > { %569 = vmatpush1.bf16.msra.mxu0 %v500_v15 }
 0x141   : > { %v460_v16 = vpop.permute.xlu1 %459  ;;  %v446_v17 = vpop.permute.xlu0 %445 }
 0x142   : > { %v505_v18 = vsel %vm483_vm7, %v446_v17, %v448_v3 }
 0x143   : > { %570 = vmatprep.subr.bf16.mxu0 %v505_v18 }
 0x145   : > { %v454_v19 = vpop.permute.xlu1 %453  ;;  %v450_v20 = vpop.permute.xlu0 %449 }
 0x146   : > { %v507_v21 = vsel %vm483_vm7, %v450_v20, %v452_v8  ;;  %v506_v22 = vsel %vm483_vm7, %v448_v3, %v450_v20  ;;  %v508_v29 = vsel %vm483_vm7, %v454_v19, %v456_v11 }
 0x147   : > { %613 = vmatprep.subr.bf16.mxu1 %v507_v21 }
 0x148   : > { %614 = vmatpush1.bf16.msra.mxu1 %v506_v22 }
 0x149   : > { %v468_v23 = vpop.permute.xlu1 %467  ;;  %v444_v24 = vpop.permute.xlu0 %443 }
 0x14a   : > { %v504_v25 = vsel %vm483_vm7, %v444_v24, %v446_v17 }
 0x14b   : > { %571 = vmatpush1.bf16.msra.mxu0 %v504_v25 }
 0x14d   : > { %v458_v26 = vpop.permute.xlu0 %457  ;;  %v472_v28 = vpop.permute.xlu1 %471 }
 0x14e   : > { %v509_v27 = vsel %vm483_vm7, %v456_v11, %v458_v26  ;;  %v510_v32 = vsel %vm483_vm7, %v458_v26, %v460_v16 }
 0x14f   : > { %572 = vmatprep.subr.bf16.mxu0 %v509_v27 }
 0x150   : > { %573 = vmatpush1.bf16.msra.mxu0 %v508_v29 }
 0x151   : > { %v462_v30 = vpop.permute.xlu0 %461  ;;  %v476_v33 = vpop.permute.xlu1 %475 }
 0x152   : > { %v511_v31 = vsel %vm483_vm7, %v460_v16, %v462_v30  ;;  %v671_v16 = vrot.slane %v654_v53, %v670_v1 }
 0x153   : > { %615 = vmatprep.subr.bf16.mxu1 %v511_v31 }
 0x154   : > { %616 = vmatpush1.bf16.msra.mxu1 %v510_v32 }
 0x155   : > { %v466_v34 = vpop.permute.xlu0 %465  ;;  %v480_v37 = vpop.permute.xlu1 %479 }
 0x156   : > { %v513_v35 = vsel %vm483_vm7, %v466_v34, %v468_v23 }
 0x157   : > { %574 = vmatprep.subr.bf16.mxu0 %v513_v35 }
 0x159   : > { %v470_v36 = vpop.permute.xlu0 %469  ;;  %v474_v42 = vpop.permute.xlu1 %473 }
 0x15a   : > { %v515_v38 = vsel %vm483_vm7, %v470_v36, %v472_v28  ;;  %v514_v39 = vsel %vm483_vm7, %v468_v23, %v470_v36  ;;  %v516_v45 = vsel %vm483_vm7, %v474_v42, %v476_v33 }
 0x15b   : > { %617 = vmatprep.subr.bf16.mxu1 %v515_v38 }
 0x15c   : > { %618 = vmatpush1.bf16.msra.mxu1 %v514_v39 }
 0x15d   : > { %v464_v40 = vpop.permute.xlu0 %463 }
 0x15e   : > { %v512_v41 = vsel %vm483_vm7, %v464_v40, %v466_v34 }
 0x15f   : > { %575 = vmatpush1.bf16.msra.mxu0 %v512_v41 }
 0x161   : > { %v478_v43 = vpop.permute.xlu0 %477 }
 0x162   : > { %v517_v44 = vsel %vm483_vm7, %v476_v33, %v478_v43  ;;  %v518_v49 = vsel %vm483_vm7, %v478_v43, %v480_v37 }
 0x163   : > { %576 = vmatprep.subr.bf16.mxu0 %v517_v44 }
 0x164   : > { %577 = vmatpush1.bf16.msra.mxu0 %v516_v45 }
 0x165   : > { %v482_v47 = vpop.permute.xlu0 %481 }
 0x166   : > { %v519_v48 = vsel %vm483_vm7, %v480_v37, %v482_v47 }
 0x167   : > { %619 = vmatprep.subr.bf16.mxu1 %v519_v48  ;;  %593 = vmatmul.mubr.bf16.vlgmr.msra.gmra.mrb[0].mxu0 %v826_v46 }
 0x168   : > { %620 = vmatpush1.bf16.msra.mxu1 %v518_v49 }
 0x16a   : > { %v382_v57 = vpop.permute.xlu1 %381 }
 0x16b   : > { %636 = vmatmul.mubr.bf16.vlgmr.msra.gmra.mrb[0].mxu1 %v826_v46 }
 0x176   : > { %v377_v55 = vpop.permute.xlu0 %376 }
 0x23a   : > { %v594_v56 = vpop.f32.mrb[0].mxu0 }
 0x23b   : > { %v596_v58 = vpop.f32.mrb[1].mxu0  ;;  %v595_v60 = vadd.f32 %v594_v56, %v377_v55 }
 0x23c   : > { %v598_v62 = vpop.f32.mrb[2].mxu0  ;;  %v597_v0 = vadd.f32 %v596_v58, %v377_v55 }
 0x23d   : > { %v599_v2 = vadd.f32 %v598_v62, %v382_v57  ;;  %v600_v3 = vpop.f32.mrb[3].mxu0  ;;  %v646_v4 = vmax.f32 %v595_v60, 0.0 }
 0x23e   : > { %v601_v5 = vadd.f32 %v600_v3, %v382_v57  ;;  %v637_v6 = vpop.f32.mrb[0].mxu1  ;;  %v647_v7 = vmax.f32 %v597_v0, 0.0 }
 0x23f   : > { %v650_v8 = vmax.f32 %v599_v2, 0.0  ;;  %v638_v9 = vadd.f32 %v637_v6, %v377_v55  ;;  %v676_v10 = vmul.f32 %v659_v59, %v646_v4  ;;  %v639_v11 = vpop.f32.mrb[1].mxu1 }
 0x240   : > { %v651_v13 = vmax.f32 %v601_v5, 0.0  ;;  %v677_v14 = vmul.f32 %v663_v63, %v647_v7  ;;  %v640_v15 = vadd.f32 %v639_v11, %v377_v55  ;;  %v641_v17 = vpop.f32.mrb[2].mxu1 }
 0x241   : > { %v680_v18 = vmul.f32 %v659_v59, %v650_v8  ;;  %v648_v19 = vmax.f32 %v638_v9, 0.0  ;;  %v642_v20 = vadd.f32 %v641_v17, %v382_v57  ;;  %v643_v21 = vpop.f32.mrb[3].mxu1 }
 0x242   : > { %v681_v22 = vmul.f32 %v663_v63, %v651_v13  ;;  %v802_v23 = vpack.c.bf16 %v677_v14, %v676_v10  ;;  %v649_v24 = vmax.f32 %v640_v15, 0.0  ;;  %v644_v25 = vadd.f32 %v643_v21, %v382_v57 }
 0x243   : > { %v678_v26 = vmul.f32 %v667_v12, %v648_v19  ;;  %v652_v27 = vmax.f32 %v642_v20, 0.0 }
 0x244   : > { %v804_v28 = vpack.c.bf16 %v681_v22, %v680_v18  ;;  %710 = vst [vmem:[%s1013_s8 + $0x8] sm:$0xff] %v802_v23  ;;  %v679_v29 = vmul.f32 %v671_v16, %v649_v24  ;;  %v653_v30 = vmax.f32 %v644_v25, 0.0 }
 0x245   : > { %v682_v31 = vmul.f32 %v667_v12, %v652_v27 }
 0x246   : > { %712 = vst [vmem:[%s1013_s8 + $0x28] sm:$0xff] %v804_v28  ;;  %v803_v32 = vpack.c.bf16 %v679_v29, %v678_v26  ;;  %v683_v33 = vmul.f32 %v671_v16, %v653_v30 }
 0x248   : > { %711 = vst [vmem:[%s1013_s8 + $0x10] sm:$0xff] %v803_v32  ;;  %v805_v34 = vpack.c.bf16 %v683_v33, %v682_v31 }
 0x24a   : > { %713 = vst [vmem:[%s1013_s8 + $0x30] sm:$0xff] %v805_v34 }
 0x24b PF: > { %s14_s15 = sadd.s32 1, %s835_s15  }
 0x24c   : > { %p11_p4 = scmp.ge.s32.totalorder %s14_s15, 4  }
 0x24e   :  { %13 = sbr.rel (!%p11_p4) target bundleno = 1 (0x1), region = 66 }

// kernel: c3_dwrseg_forward.8
= control target key start
LH: loop header
LB: loop body
LE: loop exit
PB: predicated region body
PF: predicated region fallthrough
CT: control target
= control target key end

     0   :  { %s1060_s21 = smov 0   ;;  %s1280_s0 = inlined_call_operand.vmem [shape: bf16[2,16,1024], index: 0, kind: input, shape index: {}]   ;;  %s1281_s1 = inlined_call_operand.vmem [shape: bf16[16,144], index: 1, kind: input, shape index: {}]   ;;  %s1282_s2 = inlined_call_operand.vmem [shape: f32[16,1], index: 2, kind: input, shape index: {}]   ;;  %s1283_s3 = inlined_call_operand.vmem [shape: bf16[16,16], index: 3, kind: input, shape index: {}]   ;;  %s1284_s4 = inlined_call_operand.vmem [shape: f32[16,1], index: 4, kind: input, shape index: {}]   ;;  %s1285_s5 = inlined_call_operand.vmem [shape: f32[1,512], index: 5, kind: input, shape index: {}]   ;;  %s1286_s6 = inlined_call_operand.vmem [shape: bf16[2,16,1024], index: 6, kind: output, shape index: {}]  }
   0x1 LB: > { %s945_s22 = sadd.s32 4294967295, %s1013_s21   ;;  %p949_p0 = scmp.ge.s32.totalorder %s1013_s21, 1  ;;  %s1013_s21 = sphi %s1060_s21, %s16_s21  }
   0x2   : > { %p212_p1 = scmp.lt.s32.totalorder %s1013_s21, 3 }
   0x4   : > { %p213_p2 = pnand %p949_p0, %p212_p1 }
   0x5   : > { %p242_p3 = scmp.lt.s32.totalorder (!%p213_p2), %s945_s22, 1  ;;  %s1015_s27 = smov (!%p213_p2), 127   ;;  %vm296_vm0 = vcmask (!%p213_p2), 1039360   ;;  %vm311_vm1 = vcmask (!%p213_p2), 1031168   ;;  %vm326_vm2 = vcmask (!%p213_p2), 785408   ;;  %vm355_vm3 = vcmask (!%p213_p2), 777216  }
   0x6   : > { %216 = sbr.rel (%p213_p2) target bundleno = 812 (0x32c), region = 44  ;;  %s1016_s28 = smov (!%p213_p2), 126   ;;  %vm374_vm4 = vcmask (!%p213_p2), 769024   ;;  %vm389_vm5 = vcmask (!%p213_p2), 523264   ;;  %vm404_vm6 = vcmask (!%p213_p2), 515072   ;;  %vm537_vm7 = vcmask (!%p213_p2), 269312  }
   0x7   : > { %s1017_s29 = smov (!%p213_p2), 96   ;;  %s1018_s30 = smov (!%p213_p2), 95   ;;  %vm419_vm8 = vcmask (!%p213_p2), 506880   ;;  %vm610_vm9 = vcmask (!%p213_p2), 130048  }
   0x8   : > { %s1019_s7 = smov (!%p213_p2), 94   ;;  %s1020_s8 = smov (!%p213_p2), 64  }
   0x9   : > { %s1021_s9 = smov (!%p213_p2), 63   ;;  %s1022_s10 = smov (!%p213_p2), 62  }
   0xa   : > { %s1023_s11 = smov (!%p213_p2), 33  }
   0xd   : > { %s1288_s22 = smov (!%p242_p3, %s945_s22), 1 }
   0xe   : > { %s977_s23 = sshll.u32 %s1288_s22, 6 }
   0xf   : > { %s1076_s26 = scalar_lea.vmem %s1280_s0, %s977_s23 }
  0x10   : > { %v254_v0 = vld [vmem:[%s1076_s26 + $0xc] sm:$0xff]  ;;  %v253_v2 = vld [vmem:[%s1076_s26 + $0x4] sm:$0xff]  ;;  %v255_v5 = vld [vmem:[%s1076_s26 + $0x14] sm:$0xf] }
  0x11   : > { %v257_v1 = vld [vmem:[%s1076_s26 + $0x2c] sm:$0xff]  ;;  %v256_v4 = vld [vmem:[%s1076_s26 + $0x24] sm:$0xff]  ;;  %v258_v6 = vld [vmem:[%s1076_s26 + $0x34] sm:$0xf] }
  0x12   : > { %v1081_v3 = vcombine.high %v254_v0, %v257_v1  ;;  %v955_v7 = vcombine.high %v253_v2, %v256_v4  ;;  %v1087_v8 = vcombine.low %v255_v5, %v258_v6  ;;  %v956_v9 = vcombine.low %v254_v0, %v257_v1  ;;  %v259_v11 = vld [vmem:[%s1076_s26 + $0x8] sm:$0xff]  ;;  %v260_v14 = vld [vmem:[%s1076_s26 + $0x10] sm:$0xff]  ;;  %v263_v19 = vld [vmem:[%s1076_s26 + $0x18] sm:$0xf] }
  0x13   : > { %v954_v10 = vcombine.low %v253_v2, %v256_v4  ;;  %v261_v12 = vld [vmem:[%s1076_s26 + $0x28] sm:$0xff]  ;;  %v262_v15 = vld [vmem:[%s1076_s26 + $0x30] sm:$0xff]  ;;  %v264_v20 = vld [vmem:[%s1076_s26 + $0x38] sm:$0xf] }
  0x14   : > { %292 = vrot.lane.b32.xlu1 %v1081_v3, %s1015_s27  ;;  %288 = vrot.lane.b32.xlu0 %v955_v7, %s1015_s27  ;;  %v959_v13 = vcombine.low %v259_v11, %v261_v12  ;;  %v961_v16 = vcombine.low %v260_v14, %v262_v15  ;;  %v960_v17 = vcombine.high %v259_v11, %v261_v12 }
  0x15   : > { %v962_v18 = vcombine.high %v260_v14, %v262_v15  ;;  %v963_v21 = vcombine.low %v263_v19, %v264_v20 }
  0x18   : > { %294 = vrot.lane.b32.xlu1 %v1087_v8, %s1015_s27  ;;  %290 = vrot.lane.b32.xlu0 %v956_v9, %s1015_s27 }
  0x1c   : > { %303 = vrot.lane.b32.xlu1 %v955_v7, %s1016_s28  ;;  %286 = vrot.lane.b32.xlu0 %v954_v10, %s1015_s27 }
  0x20   : > { %307 = vrot.lane.b32.xlu1 %v1081_v3, %s1016_s28  ;;  %305 = vrot.lane.b32.xlu0 %v956_v9, %s1016_s28 }
  0x24   : > { %301 = vrot.lane.b32.xlu1 %v954_v10, %s1016_s28  ;;  %309 = vrot.lane.b32.xlu0 %v1087_v8, %s1016_s28 }
  0x28   : > { %320 = vrot.lane.b32.xlu1 %v956_v9, %s1017_s29  ;;  %318 = vrot.lane.b32.xlu0 %v955_v7, %s1017_s29 }
  0x2c   : > { %324 = vrot.lane.b32.xlu1 %v1087_v8, %s1017_s29  ;;  %322 = vrot.lane.b32.xlu0 %v1081_v3, %s1017_s29 }
  0x30   : > { %347 = vrot.lane.b32.xlu1 %v959_v13, %s1018_s30  ;;  %316 = vrot.lane.b32.xlu0 %v954_v10, %s1017_s29 }
  0x34   : > { %351 = vrot.lane.b32.xlu1 %v961_v16, %s1018_s30  ;;  %349 = vrot.lane.b32.xlu0 %v960_v17, %s1018_s30 }
  0x38   : > { %364 = vrot.lane.b32.xlu1 %v959_v13, %s1019_s7  ;;  %353 = vrot.lane.b32.xlu0 %v962_v18, %s1018_s30 }
  0x3c   : > { %368 = vrot.lane.b32.xlu1 %v961_v16, %s1019_s7  ;;  %366 = vrot.lane.b32.xlu0 %v960_v17, %s1019_s7 }
  0x40   : > { %372 = vrot.lane.b32.xlu1 %v963_v21, %s1019_s7  ;;  %370 = vrot.lane.b32.xlu0 %v962_v18, %s1019_s7  ;;  %s1260_s7 = scalar_lea.vmem %s1286_s6, %s977_s23 }
  0x44   : > { %381 = vrot.lane.b32.xlu1 %v960_v17, %s1020_s8  ;;  %379 = vrot.lane.b32.xlu0 %v959_v13, %s1020_s8 }
  0x48   : > { %385 = vrot.lane.b32.xlu1 %v962_v18, %s1020_s8  ;;  %383 = vrot.lane.b32.xlu0 %v961_v16, %s1020_s8 }
  0x4c   : > { %394 = vrot.lane.b32.xlu1 %v959_v13, %s1021_s9  ;;  %387 = vrot.lane.b32.xlu0 %v963_v21, %s1020_s8 }
  0x50   : > { %398 = vrot.lane.b32.xlu1 %v961_v16, %s1021_s9  ;;  %396 = vrot.lane.b32.xlu0 %v960_v17, %s1021_s9 }
  0x54   : > { %402 = vrot.lane.b32.xlu1 %v963_v21, %s1021_s9  ;;  %400 = vrot.lane.b32.xlu0 %v962_v18, %s1021_s9 }
  0x58   : > { %411 = vrot.lane.b32.xlu1 %v960_v17, %s1022_s10  ;;  %409 = vrot.lane.b32.xlu0 %v959_v13, %s1022_s10 }
  0x5c   : > { %415 = vrot.lane.b32.xlu1 %v962_v18, %s1022_s10  ;;  %413 = vrot.lane.b32.xlu0 %v961_v16, %s1022_s10 }
  0x60   : > { %449 = vrot.lane.b32.xlu1 %v955_v7, %s1023_s11  ;;  %417 = vrot.lane.b32.xlu0 %v963_v21, %s1022_s10 }
  0x64   : > { %453 = vrot.lane.b32.xlu1 %v1081_v3, %s1023_s11  ;;  %451 = vrot.lane.b32.xlu0 %v956_v9, %s1023_s11 }
  0x68   : > { %447 = vrot.lane.b32.xlu1 %v954_v10, %s1023_s11  ;;  %455 = vrot.lane.b32.xlu0 %v1087_v8, %s1023_s11 }
  0x86   : > { %v293_v22 = vpop.permute.xlu1 %292  ;;  %v289_v23 = vpop.permute.xlu0 %288 }
  0x8a   : > { %v295_v24 = vpop.permute.xlu1 %294  ;;  %v291_v25 = vpop.permute.xlu0 %290 }
  0x8b   : > { %465 = vrot.lane.b32.xlu1 %v295_v24, %s1023_s11  ;;  %v299_v39 = vsel %vm296_vm0, %v291_v25, %v293_v22  ;;  %v298_v46 = vsel %vm296_vm0, %v289_v23, %v291_v25  ;;  %v300_v50 = vsel %vm296_vm0, %v293_v22, %v295_v24 }
  0x8e   : > { %v304_v26 = vpop.permute.xlu1 %303  ;;  %v287_v27 = vpop.permute.xlu0 %286 }
  0x8f   : > { %v297_v54 = vsel %vm296_vm0, %v287_v27, %v289_v23 }
  0x92   : > { %v308_v28 = vpop.permute.xlu1 %307  ;;  %v306_v29 = vpop.permute.xlu0 %305 }
  0x93   : > { %v313_v41 = vsel %vm311_vm1, %v304_v26, %v306_v29  ;;  %v314_v58 = vsel %vm311_vm1, %v306_v29, %v308_v28 }
  0x96   : > { %v302_v30 = vpop.permute.xlu1 %301  ;;  %v310_v31 = vpop.permute.xlu0 %309 }
  0x97   : > { %475 = vrot.lane.b32.xlu0 %v310_v31, %s1023_s11  ;;  %v315_v44 = vsel %vm311_vm1, %v308_v28, %v310_v31  ;;  %v312_v48 = vsel %vm311_vm1, %v302_v30, %v304_v26 }
  0x9a   : > { %v321_v32 = vpop.permute.xlu1 %320  ;;  %v319_v33 = vpop.permute.xlu0 %318 }
  0x9b   : > { %v328_v62 = vsel %vm326_vm2, %v319_v33, %v321_v32 }
  0x9e   : > { %v325_v34 = vpop.permute.xlu1 %324  ;;  %v323_v35 = vpop.permute.xlu0 %322 }
  0x9f   : > { %485 = vrot.lane.b32.xlu1 %v325_v34, %s1023_s11  ;;  %v329_v52 = vsel %vm326_vm2, %v321_v32, %v323_v35  ;;  %v330_v2 = vsel %vm326_vm2, %v323_v35, %v325_v34  ;;  %v1005_v34 = vld [vmem:[%s1281_s1 + $0x4] ss:$8 sps:$4 sm:$0xff]  }
  0xa0   : > { %966 = vmatprep.mubr.msk.bf16.mxu0 %vm610_vm9, %v1005_v34  ;;  %967 = vmatprep.mubr.msk.bf16.mxu1 %vm610_vm9, %v1005_v34 }
  0xa2   : > { %v348_v36 = vpop.permute.xlu1 %347  ;;  %v317_v37 = vpop.permute.xlu0 %316 }
  0xa3   : > { %487 = vrot.lane.b32.xlu1 %v348_v36, %s1023_s11  ;;  %v327_v6 = vsel %vm326_vm2, %v317_v37, %v319_v33  ;;  %v1024_v37 = vmov 0  }
  0xa4   : > { %1002 = vset.pattern.permute.xlu1 %v1024_v37  ;;  %1001 = vset.pattern.permute.xlu0 %v1024_v37  ;;  %858 = vst [vmem:[%s1260_s7] sm:$0xff] %v1024_v37  ;;  %859 = vst [vmem:[%s1260_s7 + $0x20] sm:$0xff] %v1024_v37 }
  0xa5   : > { %888 = vst [vmem:[%s1260_s7 + $0x18] sm:$0xff] %v1024_v37  ;;  %889 = vst [vmem:[%s1260_s7 + $0x38] sm:$0xff] %v1024_v37 }
  0xa6   : > { %v352_v38 = vpop.permute.xlu1 %351  ;;  %v350_v40 = vpop.permute.xlu0 %349 }
  0xa7   : > { %461 = vrot.lane.b32.xlu1 %v299_v39, %s1023_s11  ;;  %v356_v56 = vsel %vm355_vm3, %v348_v36, %v350_v40  ;;  %v357_v10 = vsel %vm355_vm3, %v350_v40, %v352_v38  ;;  %v427_v36 = vld [vmem:[%s1282_s2 + $0x8] sm:$0xff]  ;;  %v714_v39 = vld [vmem:[%s1284_s4] sm:$0xff] }
  0xaa   : > { %v1114_v42 = vpop.permute.xlu1 %364  ;;  %v354_v43 = vpop.permute.xlu0 %353 }
  0xab   : > { %469 = vrot.lane.b32.xlu1 %v313_v41, %s1023_s11  ;;  %495 = vrot.lane.b32.xlu0 %v354_v43, %s1023_s11  ;;  %v358_v60 = vsel %vm355_vm3, %v352_v38, %v354_v43  ;;  %v426_v41 = vld [vmem:[%s1282_s2] sm:$0xff] }
  0xae   : > { %v369_v45 = vpop.permute.xlu1 %368  ;;  %v367_v47 = vpop.permute.xlu0 %366 }
  0xaf   : > { %473 = vrot.lane.b32.xlu1 %v315_v44, %s1023_s11  ;;  %459 = vrot.lane.b32.xlu0 %v298_v46, %s1023_s11  ;;  %v376_v0 = vsel %vm374_vm4, %v367_v47, %v369_v45  ;;  %v375_v14 = vsel %vm374_vm4, %v1114_v42, %v367_v47 }
  0xb2   : > { %v373_v49 = vpop.permute.xlu1 %372  ;;  %v371_v51 = vpop.permute.xlu0 %370 }
  0xb3   : > { %467 = vrot.lane.b32.xlu1 %v312_v48, %s1023_s11  ;;  %463 = vrot.lane.b32.xlu0 %v300_v50, %s1023_s11  ;;  %v378_v4 = vsel %vm374_vm4, %v371_v51, %v373_v49  ;;  %v377_v17 = vsel %vm374_vm4, %v369_v45, %v371_v51 }
  0xb6   : > { %v382_v53 = vpop.permute.xlu1 %381  ;;  %v380_v55 = vpop.permute.xlu0 %379 }
  0xb7   : > { %481 = vrot.lane.b32.xlu1 %v329_v52, %s1023_s11  ;;  %457 = vrot.lane.b32.xlu0 %v297_v54, %s1023_s11  ;;  %v390_v8 = vsel %vm389_vm5, %v380_v55, %v382_v53 }
  0xba   : > { %v1131_v57 = vpop.permute.xlu1 %385  ;;  %v384_v59 = vpop.permute.xlu0 %383 }
  0xbb   : > { %489 = vrot.lane.b32.xlu1 %v356_v56, %s1023_s11  ;;  %471 = vrot.lane.b32.xlu0 %v314_v58, %s1023_s11  ;;  %v392_v12 = vsel %vm389_vm5, %v384_v59, %v1131_v57  ;;  %v391_v25 = vsel %vm389_vm5, %v382_v53, %v384_v59 }
  0xbe   : > { %v1137_v61 = vpop.permute.xlu1 %394  ;;  %v388_v63 = vpop.permute.xlu0 %387 }
  0xbf   : > { %493 = vrot.lane.b32.xlu1 %v358_v60, %s1023_s11  ;;  %479 = vrot.lane.b32.xlu0 %v328_v62, %s1023_s11  ;;  %v393_v31 = vsel %vm389_vm5, %v1131_v57, %v388_v63 }
  0xc2   : > { %v399_v1 = vpop.permute.xlu1 %398  ;;  %v397_v3 = vpop.permute.xlu0 %396 }
  0xc3   : > { %501 = vrot.lane.b32.xlu1 %v376_v0, %s1023_s11  ;;  %483 = vrot.lane.b32.xlu0 %v330_v2, %s1023_s11  ;;  %v406_v19 = vsel %vm404_vm6, %v397_v3, %v399_v1  ;;  %v405_v33 = vsel %vm404_vm6, %v1137_v61, %v397_v3 }
  0xc6   : > { %v403_v5 = vpop.permute.xlu1 %402  ;;  %v401_v7 = vpop.permute.xlu0 %400 }
  0xc7   : > { %505 = vrot.lane.b32.xlu1 %v378_v4, %s1023_s11  ;;  %477 = vrot.lane.b32.xlu0 %v327_v6, %s1023_s11  ;;  %v408_v22 = vsel %vm404_vm6, %v401_v7, %v403_v5  ;;  %v407_v35 = vsel %vm404_vm6, %v399_v1, %v401_v7 }
  0xca   : > { %v412_v9 = vpop.permute.xlu1 %411  ;;  %v410_v11 = vpop.permute.xlu0 %409 }
  0xcb   : > { %509 = vrot.lane.b32.xlu1 %v390_v8, %s1023_s11  ;;  %491 = vrot.lane.b32.xlu0 %v357_v10, %s1023_s11  ;;  %v420_v29 = vsel %vm419_vm8, %v410_v11, %v412_v9 }
  0xce   : > { %v416_v13 = vpop.permute.xlu1 %415  ;;  %v414_v15 = vpop.permute.xlu0 %413 }
  0xcf   : > { %513 = vrot.lane.b32.xlu1 %v392_v12, %s1023_s11  ;;  %499 = vrot.lane.b32.xlu0 %v375_v14, %s1023_s11  ;;  %v422_v32 = vsel %vm419_vm8, %v414_v15, %v416_v13  ;;  %v421_v38 = vsel %vm419_vm8, %v412_v9, %v414_v15 }
  0xd2   : > { %v450_v16 = vpop.permute.xlu1 %449  ;;  %v418_v18 = vpop.permute.xlu0 %417 }
  0xd3   : > { %507 = vrot.lane.b32.xlu1 %v380_v55, %s1023_s11  ;;  %503 = vrot.lane.b32.xlu0 %v377_v17, %s1023_s11  ;;  %v423_v40 = vsel %vm419_vm8, %v416_v13, %v418_v18 }
  0xd6   : > { %v454_v20 = vpop.permute.xlu1 %453  ;;  %v452_v21 = vpop.permute.xlu0 %451 }
  0xd7   : > { %521 = vrot.lane.b32.xlu1 %v406_v19, %s1023_s11  ;;  %497 = vrot.lane.b32.xlu0 %v1114_v42, %s1023_s11  ;;  %v539_v23 = vsel %vm537_vm7, %v450_v16, %v452_v21  ;;  %v540_v28 = vsel %vm537_vm7, %v452_v21, %v454_v20  ;;  %v715_v42 = vld [vmem:[%s1284_s4 + $0x8] sm:$0xff] }
  0xd8   : > { %614 = vmatprep.subr.bf16.mxu0 %v539_v23 }
  0xda   : > { %v448_v24 = vpop.permute.xlu1 %447  ;;  %v456_v26 = vpop.permute.xlu0 %455 }
  0xdb   : > { %525 = vrot.lane.b32.xlu1 %v408_v22, %s1023_s11  ;;  %v538_v27 = vsel %vm537_vm7, %v448_v24, %v450_v16  ;;  %511 = vrot.lane.b32.xlu0 %v391_v25, %s1023_s11  ;;  %v541_v30 = vsel %vm537_vm7, %v454_v20, %v456_v26 }
  0xdc   : > { %615 = vmatpush1.bf16.msra.mxu0 %v538_v27  ;;  %657 = vmatprep.subr.bf16.mxu1 %v541_v30 }
  0xdd   : > { %658 = vmatpush1.bf16.msra.mxu1 %v540_v28 }
  0xdf   : > { %529 = vrot.lane.b32.xlu1 %v420_v29, %s1023_s11  ;;  %515 = vrot.lane.b32.xlu0 %v393_v31, %s1023_s11 }
  0xe3   : > { %533 = vrot.lane.b32.xlu1 %v422_v32, %s1023_s11  ;;  %519 = vrot.lane.b32.xlu0 %v405_v33, %s1023_s11 }
  0xe7   : > { %527 = vrot.lane.b32.xlu1 %v410_v11, %s1023_s11  ;;  %523 = vrot.lane.b32.xlu0 %v407_v35, %s1023_s11 }
  0xeb   : > { %517 = vrot.lane.b32.xlu0 %v1137_v61, %s1023_s11  ;;  %435 = vperm.xlu1 %1002, %v427_v36  }
  0xef   : > { %531 = vrot.lane.b32.xlu0 %v421_v38, %s1023_s11  ;;  %718 = vperm.xlu1 %1002, %v714_v39  }
  0xf3   : > { %535 = vrot.lane.b32.xlu0 %v423_v40, %s1023_s11 }
  0xf7   : > { %430 = vperm.xlu0 %1001, %v426_v41  }
  0xfb   : > { %723 = vperm.xlu0 %1001, %v715_v42  }
  0xfd   : > { %v466_v43 = vpop.permute.xlu1 %465 }
 0x109   : > { %v476_v47 = vpop.permute.xlu0 %475 }
 0x111   : > { %v486_v44 = vpop.permute.xlu1 %485 }
 0x115   : > { %v488_v45 = vpop.permute.xlu1 %487 }
 0x119   : > { %v462_v46 = vpop.permute.xlu1 %461 }
 0x11d   : > { %v470_v48 = vpop.permute.xlu1 %469  ;;  %v496_v49 = vpop.permute.xlu0 %495 }
 0x121   : > { %v474_v50 = vpop.permute.xlu1 %473  ;;  %v460_v51 = vpop.permute.xlu0 %459 }
 0x122   : > { %v543_v52 = vsel %vm537_vm7, %v460_v51, %v462_v46  ;;  %v549_v58 = vsel %vm537_vm7, %v474_v50, %v476_v47 }
 0x123   : > { %616 = vmatprep.subr.bf16.mxu0 %v543_v52 }
 0x125   : > { %v468_v53 = vpop.permute.xlu1 %467  ;;  %v464_v54 = vpop.permute.xlu0 %463 }
 0x126   : > { %v545_v55 = vsel %vm537_vm7, %v464_v54, %v466_v43  ;;  %v544_v56 = vsel %vm537_vm7, %v462_v46, %v464_v54  ;;  %v546_v1 = vsel %vm537_vm7, %v468_v53, %v470_v48 }
 0x127   : > { %659 = vmatprep.subr.bf16.mxu1 %v545_v55 }
 0x128   : > { %660 = vmatpush1.bf16.msra.mxu1 %v544_v56 }
 0x129   : > { %v482_v57 = vpop.permute.xlu1 %481  ;;  %661 = vmatprep.subr.bf16.mxu1 %v549_v58  ;;  %v458_v59 = vpop.permute.xlu0 %457 }
 0x12a   : > { %v542_v60 = vsel %vm537_vm7, %v458_v59, %v460_v51 }
 0x12b   : > { %617 = vmatpush1.bf16.msra.mxu0 %v542_v60 }
 0x12d   : > { %v490_v61 = vpop.permute.xlu1 %489  ;;  %v472_v62 = vpop.permute.xlu0 %471 }
 0x12e   : > { %v547_v63 = vsel %vm537_vm7, %v470_v48, %v472_v62  ;;  %v548_v0 = vsel %vm537_vm7, %v472_v62, %v474_v50  ;;  %v554_v17 = vsel %vm537_vm7, %v488_v45, %v490_v61 }
 0x12f   : > { %618 = vmatprep.subr.bf16.mxu0 %v547_v63  ;;  %662 = vmatpush1.bf16.msra.mxu1 %v548_v0 }
 0x130   : > { %619 = vmatpush1.bf16.msra.mxu0 %v546_v1 }
 0x131   : > { %v494_v2 = vpop.permute.xlu1 %493  ;;  %v480_v3 = vpop.permute.xlu0 %479 }
 0x132   : > { %v551_v4 = vsel %vm537_vm7, %v480_v3, %v482_v57  ;;  %v557_v9 = vsel %vm537_vm7, %v494_v2, %v496_v49  ;;  %v1003_v49 = vld [vmem:[%s1281_s1] ss:$8 sps:$4 sm:$0xff]  }
 0x133   : > { %620 = vmatprep.subr.bf16.mxu0 %v551_v4 }
 0x135   : > { %v502_v5 = vpop.permute.xlu1 %501  ;;  %v484_v6 = vpop.permute.xlu0 %483 }
 0x136   : > { %v553_v7 = vsel %vm537_vm7, %v484_v6, %v486_v44  ;;  %v552_v8 = vsel %vm537_vm7, %v482_v57, %v484_v6 }
 0x137   : > { %663 = vmatprep.subr.bf16.mxu1 %v553_v7 }
 0x138   : > { %664 = vmatpush1.bf16.msra.mxu1 %v552_v8 }
 0x139   : > { %v506_v10 = vpop.permute.xlu1 %505  ;;  %665 = vmatprep.subr.bf16.mxu1 %v557_v9  ;;  %v478_v11 = vpop.permute.xlu0 %477 }
 0x13a   : > { %v550_v12 = vsel %vm537_vm7, %v478_v11, %v480_v3 }
 0x13b   : > { %621 = vmatpush1.bf16.msra.mxu0 %v550_v12 }
 0x13d   : > { %v510_v13 = vpop.permute.xlu1 %509  ;;  %v492_v14 = vpop.permute.xlu0 %491 }
 0x13e   : > { %v555_v15 = vsel %vm537_vm7, %v490_v61, %v492_v14  ;;  %v556_v16 = vsel %vm537_vm7, %v492_v14, %v494_v2 }
 0x13f   : > { %622 = vmatprep.subr.bf16.mxu0 %v555_v15  ;;  %666 = vmatpush1.bf16.msra.mxu1 %v556_v16 }
 0x140   : > { %623 = vmatpush1.bf16.msra.mxu0 %v554_v17  ;;  %v1006_v17 = vld [vmem:[%s1283_s3] sm:$0xff]  }
 0x141   : > { %v514_v18 = vpop.permute.xlu1 %513  ;;  %v500_v19 = vpop.permute.xlu0 %499 }
 0x142   : > { %v559_v20 = vsel %vm537_vm7, %v500_v19, %v502_v5 }
 0x143   : > { %624 = vmatprep.subr.bf16.mxu0 %v559_v20  ;;  %v830_v20 = vlaneseq }
 0x145   : > { %v508_v21 = vpop.permute.xlu1 %507  ;;  %v504_v22 = vpop.permute.xlu0 %503 }
 0x146   : > { %v561_v23 = vsel %vm537_vm7, %v504_v22, %v506_v10  ;;  %v560_v24 = vsel %vm537_vm7, %v502_v5, %v504_v22  ;;  %v562_v31 = vsel %vm537_vm7, %v508_v21, %v510_v13  ;;  %v831_v21 = vshrl.u32 %v830_v20, 7 }
 0x147   : > { %667 = vmatprep.subr.bf16.mxu1 %v561_v23  ;;  %v828_v23 = vld [vmem:[%s1285_s5] sm:$0xf] }
 0x148   : > { %668 = vmatpush1.bf16.msra.mxu1 %v560_v24  ;;  %v832_v22 = vsub.s32 0, %v831_v21  ;;  %v836_v24 = vsub.s32 1, %v831_v21 }
 0x149   : > { %v522_v25 = vpop.permute.xlu1 %521  ;;  %v498_v26 = vpop.permute.xlu0 %497 }
 0x14a   : > { %v558_v27 = vsel %vm537_vm7, %v498_v26, %v500_v19 }
 0x14b   : > { %625 = vmatpush1.bf16.msra.mxu0 %v558_v27 }
 0x14d   : > { %v512_v28 = vpop.permute.xlu0 %511  ;;  %v526_v30 = vpop.permute.xlu1 %525 }
 0x14e   : > { %v563_v29 = vsel %vm537_vm7, %v510_v13, %v512_v28  ;;  %v564_v34 = vsel %vm537_vm7, %v512_v28, %v514_v18  ;;  %v833_v28 = vrot.slane %v828_v23, %v832_v22 }
 0x14f   : > { %626 = vmatprep.subr.bf16.mxu0 %v563_v29 }
 0x150   : > { %627 = vmatpush1.bf16.msra.mxu0 %v562_v31 }
 0x151   : > { %v516_v32 = vpop.permute.xlu0 %515  ;;  %v530_v35 = vpop.permute.xlu1 %529 }
 0x152   : > { %v565_v33 = vsel %vm537_vm7, %v514_v18, %v516_v32 }
 0x153   : > { %669 = vmatprep.subr.bf16.mxu1 %v565_v33  ;;  %v837_v33 = vrot.slane %v828_v23, %v836_v24 }
 0x154   : > { %670 = vmatpush1.bf16.msra.mxu1 %v564_v34 }
 0x155   : > { %v520_v36 = vpop.permute.xlu0 %519  ;;  %v534_v40 = vpop.permute.xlu1 %533 }
 0x156   : > { %v567_v38 = vsel %vm537_vm7, %v520_v36, %v522_v25 }
 0x157   : > { %628 = vmatprep.subr.bf16.mxu0 %v567_v38 }
 0x159   : > { %v524_v39 = vpop.permute.xlu0 %523  ;;  %v528_v45 = vpop.permute.xlu1 %527 }
 0x15a   : > { %v569_v41 = vsel %vm537_vm7, %v524_v39, %v526_v30  ;;  %v568_v42 = vsel %vm537_vm7, %v522_v25, %v524_v39  ;;  %v570_v48 = vsel %vm537_vm7, %v528_v45, %v530_v35  ;;  %v840_v30 = vsub.s32 2, %v831_v21 }
 0x15b   : > { %671 = vmatprep.subr.bf16.mxu1 %v569_v41 }
 0x15c   : > { %672 = vmatpush1.bf16.msra.mxu1 %v568_v42  ;;  %v841_v45 = vrot.slane %v828_v23, %v840_v30 }
 0x15d   : > { %v518_v43 = vpop.permute.xlu0 %517 }
 0x15e   : > { %v566_v44 = vsel %vm537_vm7, %v518_v43, %v520_v36 }
 0x15f   : > { %629 = vmatpush1.bf16.msra.mxu0 %v566_v44 }
 0x161   : > { %v532_v46 = vpop.permute.xlu0 %531 }
 0x162   : > { %v571_v47 = vsel %vm537_vm7, %v530_v35, %v532_v46  ;;  %v572_v52 = vsel %vm537_vm7, %v532_v46, %v534_v40  ;;  %v844_v35 = vsub.s32 3, %v831_v21 }
 0x163   : > { %630 = vmatprep.subr.bf16.mxu0 %v571_v47 }
 0x164   : > { %631 = vmatpush1.bf16.msra.mxu0 %v570_v48 }
 0x165   : > { %v536_v50 = vpop.permute.xlu0 %535 }
 0x166   : > { %v573_v51 = vsel %vm537_vm7, %v534_v40, %v536_v50  ;;  %v845_v50 = vrot.slane %v828_v23, %v844_v35 }
 0x167   : > { %647 = vmatmul.mubr.bf16.vlgmr.msra.gmra.mrb[0].mxu0 %v1003_v49  ;;  %673 = vmatprep.subr.bf16.mxu1 %v573_v51 }
 0x168   : > { %674 = vmatpush1.bf16.msra.mxu1 %v572_v52  ;;  %766 = vmatprep.mubr.bf16.mxu0 %v1024_v37 }
 0x16a   : > { %v436_v55 = vpop.permute.xlu1 %435 }
 0x16b   : > { %690 = vmatmul.mubr.bf16.vlgmr.msra.gmra.mrb[0].mxu1 %v1003_v49 }
 0x16c   : > { %809 = vmatprep.mubr.bf16.mxu1 %v1024_v37 }
 0x16e   : > { %v719_v25 = vpop.permute.xlu1 %718 }
 0x176   : > { %v431_v53 = vpop.permute.xlu0 %430 }
 0x17a   : > { %v724_v31 = vpop.permute.xlu0 %723 }
 0x23a   : > { %v648_v54 = vpop.f32.mrb[0].mxu0 }
 0x23b   : > { %v650_v56 = vpop.f32.mrb[1].mxu0  ;;  %v649_v57 = vadd.f32 %v648_v54, %v431_v53 }
 0x23c   : > { %v652_v58 = vpop.f32.mrb[2].mxu0  ;;  %v651_v59 = vadd.f32 %v650_v56, %v431_v53 }
 0x23d   : > { %v653_v60 = vadd.f32 %v652_v58, %v436_v55  ;;  %v654_v61 = vpop.f32.mrb[3].mxu0  ;;  %v700_v62 = vmax.f32 %v649_v57, 0.0 }
 0x23e   : > { %v655_v63 = vadd.f32 %v654_v61, %v436_v55  ;;  %v691_v0 = vpop.f32.mrb[0].mxu1  ;;  %v701_v1 = vmax.f32 %v651_v59, 0.0 }
 0x23f   : > { %v704_v2 = vmax.f32 %v653_v60, 0.0  ;;  %v692_v3 = vadd.f32 %v691_v0, %v431_v53  ;;  %v693_v4 = vpop.f32.mrb[1].mxu1 }
 0x240   : > { %v705_v5 = vmax.f32 %v655_v63, 0.0  ;;  %v694_v6 = vadd.f32 %v693_v4, %v431_v53  ;;  %v695_v7 = vpop.f32.mrb[2].mxu1 }
 0x241   : > { %v696_v8 = vadd.f32 %v695_v7, %v436_v55  ;;  %v697_v9 = vpop.f32.mrb[3].mxu1  ;;  %v710_v10 = vpack.c.bf16 %v704_v2, %v700_v62  ;;  %v702_v13 = vmax.f32 %v692_v3, 0.0 }
 0x242   : > { %v698_v11 = vadd.f32 %v697_v9, %v436_v55  ;;  %v711_v12 = vpack.c.bf16 %v705_v5, %v701_v1  ;;  %v703_v15 = vmax.f32 %v694_v6, 0.0 }
 0x243   : > { %v706_v14 = vmax.f32 %v696_v8, 0.0 }
 0x244   : > { %v707_v16 = vmax.f32 %v698_v11, 0.0  ;;  %734 = vmatprep.subr.bf16.mxu0 %v711_v12 }
 0x245   : > { %v712_v18 = vpack.c.bf16 %v706_v14, %v702_v13  ;;  %735 = vmatpush1.bf16.msra.mxu0 %v710_v10 }
 0x246   : > { %v713_v19 = vpack.c.bf16 %v707_v16, %v703_v15 }
 0x248   : > { %969 = vmatmul.mubr.msk.bf16.vlgmr.msra.gmra.mrb[4].mxu0 %vm610_vm9, %v1006_v17  ;;  %777 = vmatprep.subr.bf16.mxu1 %v713_v19 }
 0x249   : > { %778 = vmatpush1.bf16.msra.mxu1 %v712_v18 }
 0x24c   : > { %970 = vmatmul.mubr.msk.bf16.vlgmr.msra.gmra.mrb[4].mxu1 %vm610_vm9, %v1006_v17 }
 0x31b   : > { %v768_v26 = vpop.f32.mrb[4].mxu0 }
 0x31c   : > { %v769_v27 = vadd.f32 %v768_v26, %v719_v25  ;;  %v770_v29 = vpop.f32.mrb[5].mxu0 }
 0x31d   : > { %v771_v32 = vadd.f32 %v770_v29, %v719_v25  ;;  %v772_v34 = vpop.f32.mrb[6].mxu0 }
 0x31e   : > { %v820_v37 = vmax.f32 %v769_v27, 0.0  ;;  %v773_v36 = vadd.f32 %v772_v34, %v724_v31  ;;  %v774_v38 = vpop.f32.mrb[7].mxu0 }
 0x31f   : > { %v821_v39 = vmax.f32 %v771_v32, 0.0  ;;  %v775_v40 = vadd.f32 %v774_v38, %v724_v31  ;;  %v811_v41 = vpop.f32.mrb[4].mxu1 }
 0x320   : > { %v850_v42 = vmul.f32 %v833_v28, %v820_v37  ;;  %v824_v43 = vmax.f32 %v773_v36, 0.0  ;;  %v812_v44 = vadd.f32 %v811_v41, %v719_v25  ;;  %v813_v46 = vpop.f32.mrb[5].mxu1 }
 0x321   : > { %v851_v47 = vmul.f32 %v837_v33, %v821_v39  ;;  %v825_v48 = vmax.f32 %v775_v40, 0.0  ;;  %v814_v49 = vadd.f32 %v813_v46, %v719_v25  ;;  %v815_v51 = vpop.f32.mrb[6].mxu1 }
 0x322   : > { %v854_v52 = vmul.f32 %v833_v28, %v824_v43  ;;  %v822_v53 = vmax.f32 %v812_v44, 0.0  ;;  %v816_v54 = vadd.f32 %v815_v51, %v724_v31  ;;  %v817_v55 = vpop.f32.mrb[7].mxu1 }
 0x323   : > { %v979_v56 = vpack.c.bf16 %v851_v47, %v850_v42  ;;  %v855_v57 = vmul.f32 %v837_v33, %v825_v48  ;;  %v823_v58 = vmax.f32 %v814_v49, 0.0  ;;  %v818_v59 = vadd.f32 %v817_v55, %v724_v31 }
 0x324   : > { %v852_v60 = vmul.f32 %v841_v45, %v822_v53  ;;  %v826_v61 = vmax.f32 %v816_v54, 0.0 }
 0x325   : > { %884 = vst [vmem:[%s1260_s7 + $0x8] sm:$0xff] %v979_v56  ;;  %v981_v62 = vpack.c.bf16 %v855_v57, %v854_v52  ;;  %v853_v63 = vmul.f32 %v845_v50, %v823_v58  ;;  %v827_v0 = vmax.f32 %v818_v59, 0.0 }
 0x326   : > { %v856_v1 = vmul.f32 %v841_v45, %v826_v61 }
 0x327   : > { %886 = vst [vmem:[%s1260_s7 + $0x28] sm:$0xff] %v981_v62  ;;  %v980_v2 = vpack.c.bf16 %v853_v63, %v852_v60  ;;  %v857_v3 = vmul.f32 %v845_v50, %v827_v0 }
 0x329   : > { %885 = vst [vmem:[%s1260_s7 + $0x10] sm:$0xff] %v980_v2  ;;  %v982_v4 = vpack.c.bf16 %v857_v3, %v856_v1 }
 0x32b   : > { %887 = vst [vmem:[%s1260_s7 + $0x30] sm:$0xff] %v982_v4 }
 0x32c PF: > { %s16_s21 = sadd.s32 1, %s1013_s21  }
 0x32d   : > { %p13_p4 = scmp.ge.s32.totalorder %s16_s21, 4  }
 0x32f   :  { %15 = sbr.rel (!%p13_p4) target bundleno = 1 (0x1), region = 74 }

// kernel: c3_dwrseg_forward.11
= control target key start
LH: loop header
LB: loop body
LE: loop exit
PB: predicated region body
PF: predicated region fallthrough
CT: control target
= control target key end

     0   :  { %s706_s18 = smov 0   ;;  %s708_s19 = smov 0   ;;  %s791_s0 = inlined_call_operand.vmem [shape: bf16[16,512], index: 0, kind: input, shape index: {}]   ;;  %s792_s1 = inlined_call_operand.vmem [shape: bf16[16,512], index: 1, kind: input, shape index: {}]   ;;  %s793_s2 = inlined_call_operand.vmem [shape: bf16[16,16], index: 2, kind: input, shape index: {}]   ;;  %s794_s3 = inlined_call_operand.vmem [shape: bf16[16,16], index: 3, kind: input, shape index: {}]   ;;  %s795_s4 = inlined_call_operand.vmem [shape: f32[16,1], index: 4, kind: input, shape index: {}]   ;;  %s796_s5 = inlined_call_operand.vmem [shape: f32[16,512], index: 5, kind: output, shape index: {}]  }
   0x1   :  { %s710_s20 = smov 0  }
   0x2 LB: > { %s583_s21 = sadd.s32 4294967295, %s673_s20   ;;  %s723_s22 = sadd.s32 1, %s673_s20   ;;  %s673_s20 = sphi %s710_s20, %s801_s20   ;;  %s669_s19 = sphi %s708_s19, %s800_s19   ;;  %s665_s18 = sphi %s706_s18, %s799_s18  }
   0x3   : > { %s19_s23 = ssub.s32 %s673_s20, %s723_s22  ;;  %s22_s24 = sadd.s32 1, %s669_s19 }
   0x4   : > { %p20_p0 = scmp.eq.s32.totalorder %s19_s23, 0  ;;  %p29_p1 = scmp.ne.s32.totalorder %s669_s19, %s665_s18 }
   0x5   : > { %p30_p2 = scmp.eq.s32.totalorder %s673_s20, 0  ;;  %p148_p3 = scmp.eq.s32.totalorder %s583_s21, 1 }
   0x6   : > { %s734_s25 = scalar_select %p20_p0, %s669_s19, %s22_s24  }
   0x7   : > { %p736_p4 = por %p30_p2, %p29_p1  ;;  %p740_p5 = por %p148_p3, %p29_p1 }
   0x8   : > { %p586_p6 = scmp.ge.s32.totalorder %s673_s20, 2 }
   0xa   : > { %179 = sbr.rel (%p586_p6) target bundleno = 31 (0x1f), region = 28 }
  0x11   : > { %182 = sbr.rel (!%p736_p4) target bundleno = 24 (0x18), region = 32  ;;  %s184_s28 = sand.u32 (%p736_p4), 1, %s669_s19  }
  0x12   : > { %s610_s29 = sshll.u32 (%p736_p4), %s673_s20, 3  ;;  %s587_s30 = sshll.u32 (%p736_p4), %s184_s28, 4 }
  0x13   : > { %s189_s8 = scalar_lea.vmem (%p736_p4), %s791_s0, %s610_s29  ;;  %s186_s9 = scalar_lea.vmem (%p736_p4), [#allocation2], %s587_s30 }
  0x14   : > { %v219_v0 = vld [vmem:[%s189_s8] sm:$0xff] (%p736_p4)  ;;  %v221_v1 = vld [vmem:[%s189_s8 + $0x10] sm:$0xff] (%p736_p4) }
  0x15   : > { %220 = vst [vmem:[%s186_s9] sm:$0xff] (%p736_p4), %v219_v0  ;;  %222 = vst [vmem:[%s186_s9 + $0x8] sm:$0xff] (%p736_p4), %v221_v1 }
  0x18 PF: > { %228 = sbr.rel (!%p736_p4) target bundleno = 31 (0x1f), region = 70  ;;  %s230_s10 = sand.u32 (%p736_p4), 1, %s669_s19  }
  0x19   : > { %s611_s11 = sshll.u32 (%p736_p4), %s673_s20, 3  ;;  %s590_s12 = sshll.u32 (%p736_p4), %s230_s10, 4 }
  0x1a   : > { %s235_s15 = scalar_lea.vmem (%p736_p4), %s792_s1, %s611_s11  ;;  %s232_s16 = scalar_lea.vmem (%p736_p4), [#allocation3], %s590_s12 }
  0x1b   : > { %v265_v2 = vld [vmem:[%s235_s15] sm:$0xff] (%p736_p4)  ;;  %v267_v3 = vld [vmem:[%s235_s15 + $0x10] sm:$0xff] (%p736_p4) }
  0x1c   : > { %266 = vst [vmem:[%s232_s16] sm:$0xff] (%p736_p4), %v265_v2  ;;  %268 = vst [vmem:[%s232_s16 + $0x8] sm:$0xff] (%p736_p4), %v267_v3 }
  0x1f PF: > { %p593_p7 = scmp.ge.s32.totalorder %s673_s20, 1  ;;  %p273_p8 = scmp.lt.s32.totalorder %s673_s20, 3 }
  0x21   : > { %p274_p9 = pnand %p593_p7, %p273_p8 }
  0x22   : > { %s280_s17 = sand.u32 (!%p274_p9), 1, %s665_s18   ;;  %v675_v4 = vmov (!%p274_p9), 0   ;;  %v452_v5 = vld [vmem:[%s795_s4] sm:$0xff] (!%p274_p9)  ;;  %v453_v10 = vld [vmem:[%s795_s4 + $0x8] sm:$0xff] (!%p274_p9)  ;;  %vm344_vm0 = vcmask (!%p274_p9), 130048  }
  0x23   : > { %277 = sbr.rel (%p274_p9) target bundleno = 273 (0x111), region = 108  ;;  %s594_s23 = sshll.u32 (!%p274_p9), %s280_s17, 4  ;;  %380 = vmatprep.mubr.bf16.mxu1 (!%p274_p9), %v675_v4  ;;  %441 = vmatprep.mubr.bf16.mxu0 (!%p274_p9), %v675_v4  ;;  %v649_v11 = vld [vmem:[%s794_s3] sm:$0xff] (!%p274_p9)  }
  0x24   : > { %642 = vset.pattern.permute.xlu0 (!%p274_p9), %v675_v4  ;;  %s289_s28 = scalar_lea.vmem (!%p274_p9), [#allocation3], %s594_s23  ;;  %s282_s29 = scalar_lea.vmem (!%p274_p9), [#allocation2], %s594_s23  ;;  %v650_v12 = vld [vmem:[%s793_s2] sm:$0xff] (!%p274_p9)  }
  0x25   : > { %v643_v6 = vld [vmem:[%s289_s28 + $0x4] ss:$8 sps:$4 sm:$0xff] (!%p274_p9)   ;;  %456 = vperm.xlu0 (!%p274_p9), %642, %v452_v5   ;;  %v647_v8 = vld [vmem:[%s289_s28] ss:$8 sps:$4 sm:$0xff] (!%p274_p9)   ;;  %s596_s10 = sshll.u32 (!%p274_p9), %s280_s17, 5 }
  0x26   : > { %v645_v7 = vld [vmem:[%s282_s29 + $0x4] ss:$8 sps:$4 sm:$0xff] (!%p274_p9)   ;;  %348 = vmatprep.subr.bf16.mxu1 (!%p274_p9), %v643_v6  ;;  %v648_v9 = vld [vmem:[%s282_s29] ss:$8 sps:$4 sm:$0xff] (!%p274_p9)   ;;  %s316_s11 = scalar_lea.vmem (!%p274_p9), [#allocation4], %s596_s10 }
  0x27   : > { %409 = vmatprep.subr.bf16.mxu0 (!%p274_p9), %v645_v7  ;;  %349 = vmatpush1.bf16.msra.mxu1 (!%p274_p9), %v647_v8 }
  0x28   : > { %410 = vmatpush1.bf16.msra.mxu0 (!%p274_p9), %v648_v9 }
  0x29   : > { %461 = vperm.xlu0 (!%p274_p9), %642, %v453_v10  }
  0x2a   : > { %600 = vmatmul.mubr.msk.bf16.vlgmr.msra.gmra.mrb[0].mxu1 %vm344_vm0, %v649_v11  ;;  %s612_s12 = sshll.u32 (%p740_p5), %s583_s21, 4 }
  0x2b   : > { %604 = vmatmul.mubr.msk.bf16.vlgmr.msra.gmra.mrb[0].mxu0 %vm344_vm0, %v650_v12  ;;  %s485_s15 = scalar_lea.vmem (%p740_p5), %s796_s5, %s612_s12 }
  0xa4   : > { %v457_v13 = vpop.permute.xlu0 %456 }
  0xa8   : > { %v462_v26 = vpop.permute.xlu0 %461 }
  0xfd   : > { %v382_v14 = vpop.f32.mrb[0].mxu1 }
  0xfe   : > { %v443_v15 = vpop.f32.mrb[0].mxu0  ;;  %v384_v17 = vpop.f32.mrb[1].mxu1 }
  0xff   : > { %v444_v16 = vadd.f32 %v443_v15, %v382_v14  ;;  %v445_v18 = vpop.f32.mrb[1].mxu0  ;;  %v386_v20 = vpop.f32.mrb[2].mxu1 }
 0x100   : > { %v446_v19 = vadd.f32 %v445_v18, %v384_v17  ;;  %v447_v21 = vpop.f32.mrb[2].mxu0  ;;  %v388_v24 = vpop.f32.mrb[3].mxu1 }
 0x101   : > { %v464_v22 = vadd.f32 %v457_v13, %v444_v16  ;;  %v448_v23 = vadd.f32 %v447_v21, %v386_v20  ;;  %v449_v25 = vpop.f32.mrb[3].mxu0 }
 0x102   : > { %v465_v27 = vadd.f32 %v457_v13, %v446_v19  ;;  %v450_v28 = vadd.f32 %v449_v25, %v388_v24  ;;  %482 = sbr.rel (!%p740_p5) target bundleno = 273 (0x111), region = 120 }
 0x103   : > { %v468_v29 = vmax.f32 %v464_v22, 0.0  ;;  %v466_v30 = vadd.f32 %v462_v26, %v448_v23 }
 0x104   : > { %v469_v31 = vmax.f32 %v465_v27, 0.0  ;;  %v467_v32 = vadd.f32 %v462_v26, %v450_v28 }
 0x105   : > { %472 = vst [vmem:[%s316_s11] sm:$0xff] %v468_v29  ;;  %v470_v33 = vmax.f32 %v466_v30, 0.0 }
 0x106   : > { %473 = vst [vmem:[%s316_s11 + $0x8] sm:$0xff] %v469_v31  ;;  %v471_v34 = vmax.f32 %v467_v32, 0.0 }
 0x107   : > { %474 = vst [vmem:[%s316_s11 + $0x10] sm:$0xff] %v470_v33 }
 0x108   : > { %475 = vst [vmem:[%s316_s11 + $0x18] sm:$0xff] %v471_v34 }
 0x10c   : > { %v498_v35 = vld [vmem:[%s316_s11] sm:$0xff] }
 0x10d   : > { %v500_v36 = vld [vmem:[%s316_s11 + $0x8] sm:$0xff]  ;;  %499 = vst [vmem:[%s485_s15] sm:$0xff] %v498_v35 }
 0x10e   : > { %v502_v37 = vld [vmem:[%s316_s11 + $0x10] sm:$0xff]  ;;  %501 = vst [vmem:[%s485_s15 + $0x8] sm:$0xff] %v500_v36 }
 0x10f   : > { %v504_v38 = vld [vmem:[%s316_s11 + $0x18] sm:$0xff]  ;;  %503 = vst [vmem:[%s485_s15 + $0x20] sm:$0xff] %v502_v37 }
 0x110   : > { %505 = vst [vmem:[%s485_s15 + $0x28] sm:$0xff] %v504_v38 }
 0x111 PF: > { %p12_p10 = scmp.ge.s32.totalorder %s723_s22, 4   ;;  %s799_s18 = smov %s669_s19 }
 0x112   : > { %s800_s19 = smov %s734_s25  ;;  %s801_s20 = smov %s723_s22 }
 0x113   :  { %14 = sbr.rel (!%p12_p10) target bundleno = 2 (0x2), region = 182 }

// kernel: c3_dwrseg_forward.10
= control target key start
LH: loop header
LB: loop body
LE: loop exit
PB: predicated region body
PF: predicated region fallthrough
CT: control target
= control target key end

     0   :  { %s2495_s30 = smov 0   ;;  %s3516_s0 = inlined_call_operand.vmem [shape: bf16[2,16,1024], index: 0, kind: input, shape index: {}]   ;;  %s3517_s1 = inlined_call_operand.vmem [shape: bf16[2,16,1024], index: 1, kind: input, shape index: {}]   ;;  %s3518_s2 = inlined_call_operand.vmem [shape: bf16[2,16,1024], index: 2, kind: input, shape index: {}]   ;;  %s3519_s3 = inlined_call_operand.vmem [shape: bf16[3,16,144], index: 3, kind: input, shape index: {}]   ;;  %s3520_s4 = inlined_call_operand.vmem [shape: f32[3,16,1], index: 4, kind: input, shape index: {}]   ;;  %s3521_s5 = inlined_call_operand.vmem [shape: bf16[3,16,16], index: 5, kind: input, shape index: {}]   ;;  %s3522_s6 = inlined_call_operand.vmem [shape: f32[16,1], index: 6, kind: input, shape index: {}]   ;;  %s3523_s7 = inlined_call_operand.vmem [shape: f32[16,1], index: 7, kind: input, shape index: {}]   ;;  %s3524_s8 = inlined_call_operand.vmem [shape: f32[16,1], index: 8, kind: input, shape index: {}]   ;;  %s3525_s9 = inlined_call_operand.vmem [shape: bf16[2,16,512], index: 9, kind: output, shape index: {}]  }
   0x1 LB: > { %s2253_s10 = sadd.s32 4294967295, %s2418_s30   ;;  %p2257_p0 = scmp.ge.s32.totalorder %s2418_s30, 1  ;;  %s2418_s30 = sphi %s2495_s30, %s19_s30  }
   0x2   : > { %p307_p1 = scmp.lt.s32.totalorder %s2418_s30, 3 }
   0x4   : > { %p308_p2 = pnand %p2257_p0, %p307_p1 }
   0x5   : > { %p353_p3 = scmp.lt.s32.totalorder (!%p308_p2), %s2253_s10, 1  ;;  %s2420_s15 = smov (!%p308_p2), 127   ;;  %vm417_vm0 = vcmask (!%p308_p2), 1039360   ;;  %vm432_vm1 = vcmask (!%p308_p2), 1031168   ;;  %vm447_vm2 = vcmask (!%p308_p2), 785408   ;;  %vm476_vm3 = vcmask (!%p308_p2), 777216  }
   0x6   : > { %311 = sbr.rel (%p308_p2) target bundleno = 1218 (0x4c2), region = 56  ;;  %s2421_s16 = smov (!%p308_p2), 126   ;;  %vm495_vm4 = vcmask (!%p308_p2), 769024   ;;  %vm510_vm5 = vcmask (!%p308_p2), 523264   ;;  %vm525_vm6 = vcmask (!%p308_p2), 515072   ;;  %vm540_vm7 = vcmask (!%p308_p2), 506880  }
   0x7   : > { %s2422_s17 = smov (!%p308_p2), 96   ;;  %s2423_s18 = smov (!%p308_p2), 95   ;;  %vm731_vm8 = vcmask (!%p308_p2), 130048   ;;  %vm845_vm9 = vcmask (!%p308_p2), 1022976   ;;  %vm658_vm10 = vcmask (!%p308_p2), 269312   ;;  %vm860_vm11 = vcmask (!%p308_p2), 998400  }
   0x8   : > { %s2424_s19 = smov (!%p308_p2), 94   ;;  %s2425_s20 = smov (!%p308_p2), 64   ;;  %vm875_vm12 = vcmask (!%p308_p2), 261120   ;;  %vm888_vm13 = vcmask (!%p308_p2), 236544   ;;  %vm902_vm14 = vcmask (!%p308_p2), 211968   ;;  %vm917_vm15 = vcmask (!%p308_p2), 498688  }
   0x9   : > { %s2426_s21 = smov (!%p308_p2), 63   ;;  %s2427_s22 = smov (!%p308_p2), 62  }
   0xa   : > { %s2428_s23 = smov (!%p308_p2), 125   ;;  %s2429_s24 = smov (!%p308_p2), 122  }
   0xb   : > { %s2430_s25 = smov (!%p308_p2), 32   ;;  %s2431_s26 = smov (!%p308_p2), 29  }
   0xc   : > { %s2432_s27 = smov (!%p308_p2), 26   ;;  %s2433_s28 = smov (!%p308_p2), 33  }
   0xd   : > { %s3527_s10 = smov (!%p353_p3, %s2253_s10), 1  ;;  %s2434_s29 = smov 61  }
   0xe   : > { %s2506_s11 = sshll.u32 %s3527_s10, 6  ;;  %s2435_s12 = smov 58  }
   0xf   : > { %s2512_s14 = scalar_lea.vmem %s3516_s0, %s2506_s11 }
  0x10   : > { %v375_v0 = vld [vmem:[%s2512_s14 + $0xc] sm:$0xff]  ;;  %v374_v2 = vld [vmem:[%s2512_s14 + $0x4] sm:$0xff]  ;;  %v376_v5 = vld [vmem:[%s2512_s14 + $0x14] sm:$0xf] }
  0x11   : > { %v378_v1 = vld [vmem:[%s2512_s14 + $0x2c] sm:$0xff]  ;;  %v377_v4 = vld [vmem:[%s2512_s14 + $0x24] sm:$0xff]  ;;  %v379_v6 = vld [vmem:[%s2512_s14 + $0x34] sm:$0xf] }
  0x12   : > { %v2517_v3 = vcombine.high %v375_v0, %v378_v1  ;;  %v2522_v7 = vcombine.high %v374_v2, %v377_v4  ;;  %v2525_v8 = vcombine.low %v376_v5, %v379_v6  ;;  %v2528_v9 = vcombine.low %v375_v0, %v378_v1  ;;  %v380_v11 = vld [vmem:[%s2512_s14 + $0x8] sm:$0xff]  ;;  %v381_v14 = vld [vmem:[%s2512_s14 + $0x10] sm:$0xff]  ;;  %v384_v19 = vld [vmem:[%s2512_s14 + $0x18] sm:$0xf] }
  0x13   : > { %v2532_v10 = vcombine.low %v374_v2, %v377_v4  ;;  %v382_v12 = vld [vmem:[%s2512_s14 + $0x28] sm:$0xff]  ;;  %v383_v15 = vld [vmem:[%s2512_s14 + $0x30] sm:$0xff]  ;;  %v385_v20 = vld [vmem:[%s2512_s14 + $0x38] sm:$0xf] }
  0x14   : > { %413 = vrot.lane.b32.xlu1 %v2517_v3, %s2420_s15  ;;  %409 = vrot.lane.b32.xlu0 %v2522_v7, %s2420_s15  ;;  %v2545_v13 = vcombine.low %v380_v11, %v382_v12  ;;  %v2551_v16 = vcombine.low %v381_v14, %v383_v15  ;;  %v2554_v17 = vcombine.high %v380_v11, %v382_v12 }
  0x15   : > { %v2558_v18 = vcombine.high %v381_v14, %v383_v15  ;;  %v2565_v21 = vcombine.low %v384_v19, %v385_v20 }
  0x18   : > { %415 = vrot.lane.b32.xlu1 %v2525_v8, %s2420_s15  ;;  %411 = vrot.lane.b32.xlu0 %v2528_v9, %s2420_s15 }
  0x1c   : > { %424 = vrot.lane.b32.xlu1 %v2522_v7, %s2421_s16  ;;  %407 = vrot.lane.b32.xlu0 %v2532_v10, %s2420_s15  ;;  %s3490_s15 = scalar_lea.vmem %s3518_s2, %s2506_s11 }
  0x20   : > { %428 = vrot.lane.b32.xlu1 %v2517_v3, %s2421_s16  ;;  %426 = vrot.lane.b32.xlu0 %v2528_v9, %s2421_s16 }
  0x24   : > { %422 = vrot.lane.b32.xlu1 %v2532_v10, %s2421_s16  ;;  %430 = vrot.lane.b32.xlu0 %v2525_v8, %s2421_s16  ;;  %s2436_s16 = smov 99  }
  0x28   : > { %441 = vrot.lane.b32.xlu1 %v2528_v9, %s2422_s17  ;;  %439 = vrot.lane.b32.xlu0 %v2522_v7, %s2422_s17 }
  0x2c   : > { %445 = vrot.lane.b32.xlu1 %v2525_v8, %s2422_s17  ;;  %443 = vrot.lane.b32.xlu0 %v2517_v3, %s2422_s17 }
  0x30   : > { %468 = vrot.lane.b32.xlu1 %v2545_v13, %s2423_s18  ;;  %437 = vrot.lane.b32.xlu0 %v2532_v10, %s2422_s17  ;;  %s2438_s17 = smov 123  }
  0x34   : > { %472 = vrot.lane.b32.xlu1 %v2551_v16, %s2423_s18  ;;  %470 = vrot.lane.b32.xlu0 %v2554_v17, %s2423_s18 }
  0x38   : > { %485 = vrot.lane.b32.xlu1 %v2545_v13, %s2424_s19  ;;  %474 = vrot.lane.b32.xlu0 %v2558_v18, %s2423_s18  ;;  %s2439_s18 = smov 118  }
  0x3c   : > { %489 = vrot.lane.b32.xlu1 %v2551_v16, %s2424_s19  ;;  %487 = vrot.lane.b32.xlu0 %v2554_v17, %s2424_s19 }
  0x40   : > { %493 = vrot.lane.b32.xlu1 %v2565_v21, %s2424_s19  ;;  %491 = vrot.lane.b32.xlu0 %v2558_v18, %s2424_s19  ;;  %s2440_s19 = smov 91  }
  0x44   : > { %502 = vrot.lane.b32.xlu1 %v2554_v17, %s2425_s20  ;;  %500 = vrot.lane.b32.xlu0 %v2545_v13, %s2425_s20 }
  0x48   : > { %506 = vrot.lane.b32.xlu1 %v2558_v18, %s2425_s20  ;;  %504 = vrot.lane.b32.xlu0 %v2551_v16, %s2425_s20 }
  0x4c   : > { %515 = vrot.lane.b32.xlu1 %v2545_v13, %s2426_s21  ;;  %508 = vrot.lane.b32.xlu0 %v2565_v21, %s2425_s20 }
  0x50   : > { %519 = vrot.lane.b32.xlu1 %v2551_v16, %s2426_s21  ;;  %517 = vrot.lane.b32.xlu0 %v2554_v17, %s2426_s21 }
  0x54   : > { %523 = vrot.lane.b32.xlu1 %v2565_v21, %s2426_s21  ;;  %521 = vrot.lane.b32.xlu0 %v2558_v18, %s2426_s21 }
  0x58   : > { %532 = vrot.lane.b32.xlu1 %v2554_v17, %s2427_s22  ;;  %530 = vrot.lane.b32.xlu0 %v2545_v13, %s2427_s22 }
  0x5c   : > { %536 = vrot.lane.b32.xlu1 %v2558_v18, %s2427_s22  ;;  %534 = vrot.lane.b32.xlu0 %v2551_v16, %s2427_s22 }
  0x60   : > { %837 = vrot.lane.b32.xlu1 %v2522_v7, %s2428_s23  ;;  %538 = vrot.lane.b32.xlu0 %v2565_v21, %s2427_s22 }
  0x64   : > { %841 = vrot.lane.b32.xlu1 %v2517_v3, %s2428_s23  ;;  %839 = vrot.lane.b32.xlu0 %v2528_v9, %s2428_s23 }
  0x68   : > { %835 = vrot.lane.b32.xlu1 %v2532_v10, %s2428_s23  ;;  %843 = vrot.lane.b32.xlu0 %v2525_v8, %s2428_s23 }
  0x6c   : > { %854 = vrot.lane.b32.xlu1 %v2528_v9, %s2429_s24  ;;  %852 = vrot.lane.b32.xlu0 %v2522_v7, %s2429_s24 }
  0x70   : > { %858 = vrot.lane.b32.xlu1 %v2525_v8, %s2429_s24  ;;  %856 = vrot.lane.b32.xlu0 %v2517_v3, %s2429_s24 }
  0x74   : > { %867 = vrot.lane.b32.xlu1 %v2522_v7, %s2430_s25  ;;  %850 = vrot.lane.b32.xlu0 %v2532_v10, %s2429_s24 }
  0x78   : > { %871 = vrot.lane.b32.xlu1 %v2517_v3, %s2430_s25  ;;  %869 = vrot.lane.b32.xlu0 %v2528_v9, %s2430_s25 }
  0x7c   : > { %865 = vrot.lane.b32.xlu1 %v2532_v10, %s2430_s25  ;;  %873 = vrot.lane.b32.xlu0 %v2525_v8, %s2430_s25  ;;  %s2441_s25 = smov 86  }
  0x80   : > { %882 = vrot.lane.b32.xlu1 %v2554_v17, %s2431_s26  ;;  %880 = vrot.lane.b32.xlu0 %v2545_v13, %s2431_s26 }
  0x84   : > { %886 = vrot.lane.b32.xlu1 %v2558_v18, %s2431_s26  ;;  %884 = vrot.lane.b32.xlu0 %v2551_v16, %s2431_s26  ;;  %s2442_s26 = smov 59  }
  0x86   : > { %v414_v22 = vpop.permute.xlu1 %413  ;;  %v410_v23 = vpop.permute.xlu0 %409 }
  0x88   : > { %894 = vrot.lane.b32.xlu1 %v2554_v17, %s2432_s27  ;;  %892 = vrot.lane.b32.xlu0 %v2545_v13, %s2432_s27 }
  0x8a   : > { %v416_v24 = vpop.permute.xlu1 %415  ;;  %v412_v25 = vpop.permute.xlu0 %411 }
  0x8b   : > { %v420_v34 = vsel %vm417_vm0, %v412_v25, %v414_v22  ;;  %v419_v35 = vsel %vm417_vm0, %v410_v23, %v412_v25  ;;  %v421_v38 = vsel %vm417_vm0, %v414_v22, %v416_v24 }
  0x8c   : > { %898 = vrot.lane.b32.xlu1 %v2558_v18, %s2432_s27  ;;  %896 = vrot.lane.b32.xlu0 %v2551_v16, %s2432_s27 }
  0x8e   : > { %v425_v26 = vpop.permute.xlu1 %424  ;;  %v408_v27 = vpop.permute.xlu0 %407 }
  0x8f   : > { %v418_v41 = vsel %vm417_vm0, %v408_v27, %v410_v23  ;;  %vm932_vm0 = vcmask 474112  }
  0x90   : > { %570 = vrot.lane.b32.xlu1 %v2522_v7, %s2433_s28  ;;  %900 = vrot.lane.b32.xlu0 %v2565_v21, %s2432_s27 }
  0x92   : > { %v429_v28 = vpop.permute.xlu1 %428  ;;  %v427_v29 = vpop.permute.xlu0 %426 }
  0x93   : > { %v435_v48 = vsel %vm432_vm1, %v427_v29, %v429_v28  ;;  %v434_v49 = vsel %vm432_vm1, %v425_v26, %v427_v29 }
  0x94   : > { %574 = vrot.lane.b32.xlu1 %v2517_v3, %s2433_s28  ;;  %572 = vrot.lane.b32.xlu0 %v2528_v9, %s2433_s28 }
  0x96   : > { %v423_v30 = vpop.permute.xlu1 %422  ;;  %v431_v31 = vpop.permute.xlu0 %430 }
  0x97   : > { %v436_v52 = vsel %vm432_vm1, %v429_v28, %v431_v31  ;;  %v433_v55 = vsel %vm432_vm1, %v423_v30, %v425_v26  ;;  %vm1052_vm1 = vcmask 809984  }
  0x98   : > { %568 = vrot.lane.b32.xlu1 %v2532_v10, %s2433_s28  ;;  %576 = vrot.lane.b32.xlu0 %v2525_v8, %s2433_s28 }
  0x9a   : > { %v442_v32 = vpop.permute.xlu1 %441  ;;  %v2624_v33 = vpop.permute.xlu0 %439 }
  0x9b   : > { %v2677_v63 = vsel %vm447_vm2, %v2624_v33, %v442_v32 }
  0x9c   : > { %582 = vrot.lane.b32.xlu1 %v420_v34, %s2433_s28  ;;  %580 = vrot.lane.b32.xlu0 %v419_v35, %s2433_s28 }
  0x9e   : > { %v2630_v36 = vpop.permute.xlu1 %445  ;;  %v444_v37 = vpop.permute.xlu0 %443 }
  0x9f   : > { %v2673_v62 = vsel %vm447_vm2, %v442_v32, %v444_v37  ;;  %v2687_v2 = vsel %vm447_vm2, %v444_v37, %v2630_v36 }
  0xa0   : > { %586 = vrot.lane.b32.xlu1 %v416_v24, %s2433_s28  ;;  %584 = vrot.lane.b32.xlu0 %v421_v38, %s2433_s28 }
  0xa2   : > { %v2635_v39 = vpop.permute.xlu1 %468  ;;  %v438_v40 = vpop.permute.xlu0 %437 }
  0xa3   : > { %v2700_v11 = vsel %vm447_vm2, %v438_v40, %v2624_v33  ;;  %vm1460_vm2 = vcmask 1006592  }
  0xa4   : > { %909 = vrot.lane.b32.xlu1 %v2554_v17, %s2434_s29  ;;  %578 = vrot.lane.b32.xlu0 %v418_v41, %s2433_s28 }
  0xa6   : > { %v473_v42 = vpop.permute.xlu1 %472  ;;  %v471_v43 = vpop.permute.xlu0 %470 }
  0xa7   : > { %v477_v6 = vsel %vm476_vm3, %v2635_v39, %v471_v43  ;;  %v478_v19 = vsel %vm476_vm3, %v471_v43, %v473_v42 }
  0xa8   : > { %913 = vrot.lane.b32.xlu1 %v2558_v18, %s2434_s29  ;;  %911 = vrot.lane.b32.xlu0 %v2551_v16, %s2434_s29 }
  0xaa   : > { %v2642_v44 = vpop.permute.xlu1 %485  ;;  %v475_v45 = vpop.permute.xlu0 %474 }
  0xab   : > { %v479_v15 = vsel %vm476_vm3, %v473_v42, %v475_v45  ;;  %vm1475_vm3 = vcmask 965632  }
  0xac   : > { %907 = vrot.lane.b32.xlu1 %v2545_v13, %s2434_s29  ;;  %915 = vrot.lane.b32.xlu0 %v2565_v21, %s2434_s29  ;;  %s2443_s29 = smov 54  }
  0xae   : > { %v2646_v46 = vpop.permute.xlu1 %489  ;;  %v488_v47 = vpop.permute.xlu0 %487 }
  0xaf   : > { %v497_v25 = vsel %vm495_vm4, %v488_v47, %v2646_v46  ;;  %v496_v26 = vsel %vm495_vm4, %v2642_v44, %v488_v47 }
  0xb0   : > { %592 = vrot.lane.b32.xlu1 %v435_v48, %s2433_s28  ;;  %590 = vrot.lane.b32.xlu0 %v434_v49, %s2433_s28 }
  0xb2   : > { %v494_v50 = vpop.permute.xlu1 %493  ;;  %v492_v51 = vpop.permute.xlu0 %491 }
  0xb3   : > { %v499_v29 = vsel %vm495_vm4, %v492_v51, %v494_v50  ;;  %v498_v30 = vsel %vm495_vm4, %v2646_v46, %v492_v51  ;;  %vm1488_vm4 = vcmask 744448  }
  0xb4   : > { %596 = vrot.lane.b32.xlu1 %v431_v31, %s2433_s28  ;;  %594 = vrot.lane.b32.xlu0 %v436_v52, %s2433_s28 }
  0xb6   : > { %v2652_v53 = vpop.permute.xlu1 %502  ;;  %v2654_v54 = vpop.permute.xlu0 %500 }
  0xb7   : > { %v2740_v33 = vsel %vm510_vm5, %v2654_v54, %v2652_v53 }
  0xb8   : > { %924 = vrot.lane.b32.xlu1 %v2554_v17, %s2435_s12  ;;  %588 = vrot.lane.b32.xlu0 %v433_v55, %s2433_s28 }
  0xba   : > { %v2658_v56 = vpop.permute.xlu1 %506  ;;  %v505_v57 = vpop.permute.xlu0 %504 }
  0xbb   : > { %v2752_v37 = vsel %vm510_vm5, %v505_v57, %v2658_v56  ;;  %v2758_v38 = vsel %vm510_vm5, %v2652_v53, %v505_v57 }
  0xbc   : > { %928 = vrot.lane.b32.xlu1 %v2558_v18, %s2435_s12  ;;  %926 = vrot.lane.b32.xlu0 %v2551_v16, %s2435_s12 }
  0xbe   : > { %v2662_v58 = vpop.permute.xlu1 %515  ;;  %v2664_v59 = vpop.permute.xlu0 %508 }
  0xbf   : > { %v2771_v41 = vsel %vm510_vm5, %v2658_v56, %v2664_v59  ;;  %v2386_v56 = vld [vmem:[%s3519_s3 + $0x4] ss:$8 sps:$4 sm:$0xff]  }
  0xc0   : > { %922 = vrot.lane.b32.xlu1 %v2545_v13, %s2435_s12  ;;  %930 = vrot.lane.b32.xlu0 %v2565_v21, %s2435_s12 }
  0xc1   : > { %2279 = vmatprep.mubr.msk.bf16.mxu1 %vm731_vm8, %v2386_v56  ;;  %2278 = vmatprep.mubr.msk.bf16.mxu0 %vm731_vm8, %v2386_v56 }
  0xc2   : > { %v2668_v60 = vpop.permute.xlu1 %519  ;;  %v2670_v61 = vpop.permute.xlu0 %517 }
  0xc4   : > { %602 = vrot.lane.b32.xlu1 %v2673_v62, %s2433_s28  ;;  %600 = vrot.lane.b32.xlu0 %v2677_v63, %s2433_s28 }
  0xc6   : > { %v524_v0 = vpop.permute.xlu1 %523  ;;  %v2683_v1 = vpop.permute.xlu0 %521 }
  0xc7   : > { %v529_v48 = vsel %vm525_vm6, %v2683_v1, %v524_v0  ;;  %v528_v49 = vsel %vm525_vm6, %v2668_v60, %v2683_v1 }
  0xc8   : > { %606 = vrot.lane.b32.xlu1 %v2630_v36, %s2433_s28  ;;  %604 = vrot.lane.b32.xlu0 %v2687_v2, %s2433_s28 }
  0xca   : > { %v2693_v4 = vpop.permute.xlu1 %532  ;;  %v2695_v5 = vpop.permute.xlu0 %530 }
  0xcb   : > { %v541_v52 = vsel %vm540_vm7, %v2695_v5, %v2693_v4 }
  0xcc   : > { %610 = vrot.lane.b32.xlu1 %v477_v6, %s2433_s28  ;;  %598 = vrot.lane.b32.xlu0 %v2700_v11, %s2433_s28 }
  0xce   : > { %v2705_v12 = vpop.permute.xlu1 %536  ;;  %v2707_v14 = vpop.permute.xlu0 %534 }
  0xcf   : > { %v543_v55 = vsel %vm540_vm7, %v2707_v14, %v2705_v12  ;;  %v542_v57 = vsel %vm540_vm7, %v2693_v4, %v2707_v14 }
  0xd0   : > { %614 = vrot.lane.b32.xlu1 %v479_v15, %s2433_s28  ;;  %612 = vrot.lane.b32.xlu0 %v478_v19, %s2433_s28 }
  0xd2   : > { %v2711_v20 = vpop.permute.xlu1 %837  ;;  %v2713_v22 = vpop.permute.xlu0 %538 }
  0xd4   : > { %608 = vrot.lane.b32.xlu1 %v2635_v39, %s2433_s28  ;;  %616 = vrot.lane.b32.xlu0 %v475_v45, %s2433_s28  ;;  %v526_v45 = vsel %vm525_vm6, %v2662_v58, %v2670_v61 }
  0xd6   : > { %v2718_v23 = vpop.permute.xlu1 %841  ;;  %v2720_v24 = vpop.permute.xlu0 %839 }
  0xd7   : > { %v848_v19 = vsel %vm845_vm9, %v2720_v24, %v2718_v23 }
  0xd8   : > { %622 = vrot.lane.b32.xlu1 %v497_v25, %s2433_s28  ;;  %620 = vrot.lane.b32.xlu0 %v496_v26, %s2433_s28 }
  0xda   : > { %v2726_v27 = vpop.permute.xlu1 %835  ;;  %v2728_v28 = vpop.permute.xlu0 %843 }
  0xdb   : > { %v846_v26 = vsel %vm845_vm9, %v2726_v27, %v2711_v20 }
  0xdc   : > { %626 = vrot.lane.b32.xlu1 %v499_v29, %s2433_s28  ;;  %624 = vrot.lane.b32.xlu0 %v498_v30, %s2433_s28 }
  0xde   : > { %v2733_v31 = vpop.permute.xlu1 %854  ;;  %v2735_v32 = vpop.permute.xlu0 %852 }
  0xe0   : > { %630 = vrot.lane.b32.xlu1 %v2740_v33, %s2433_s28  ;;  %618 = vrot.lane.b32.xlu0 %v2642_v44, %s2433_s28  ;;  %v527_v44 = vsel %vm525_vm6, %v2670_v61, %v2668_v60  ;;  %v544_v61 = vsel %vm540_vm7, %v2705_v12, %v2713_v22  ;;  %vm1502_vm6 = vcmask 703488   ;;  %vm1552_vm7 = vcmask 482304  }
  0xe2   : > { %v2746_v34 = vpop.permute.xlu1 %858  ;;  %v2748_v35 = vpop.permute.xlu0 %856 }
  0xe4   : > { %634 = vrot.lane.b32.xlu1 %v2752_v37, %s2433_s28  ;;  %632 = vrot.lane.b32.xlu0 %v2758_v38, %s2433_s28 }
  0xe6   : > { %v2762_v39 = vpop.permute.xlu1 %867  ;;  %v2764_v40 = vpop.permute.xlu0 %850 }
  0xe8   : > { %628 = vrot.lane.b32.xlu1 %v2654_v54, %s2433_s28  ;;  %636 = vrot.lane.b32.xlu0 %v2771_v41, %s2433_s28 }
  0xea   : > { %v2775_v42 = vpop.permute.xlu1 %871  ;;  %v2777_v43 = vpop.permute.xlu0 %869 }
  0xec   : > { %642 = vrot.lane.b32.xlu1 %v527_v44, %s2433_s28  ;;  %640 = vrot.lane.b32.xlu0 %v526_v45, %s2433_s28  ;;  %v863_v44 = vsel %vm860_vm11, %v2733_v31, %v2748_v35 }
  0xee   : > { %v2785_v46 = vpop.permute.xlu1 %865  ;;  %v2787_v47 = vpop.permute.xlu0 %873 }
  0xf0   : > { %646 = vrot.lane.b32.xlu1 %v529_v48, %s2433_s28  ;;  %644 = vrot.lane.b32.xlu0 %v528_v49, %s2433_s28  ;;  %v2437_v48 = vmov 0  }
  0xf1   : > { %2382 = vset.pattern.permute.xlu0 %v2437_v48  ;;  %2383 = vset.pattern.permute.xlu1 %v2437_v48 }
  0xf2   : > { %v2794_v50 = vpop.permute.xlu1 %882  ;;  %v2796_v51 = vpop.permute.xlu0 %880 }
  0xf4   : > { %650 = vrot.lane.b32.xlu1 %v541_v52, %s2433_s28  ;;  %638 = vrot.lane.b32.xlu0 %v2662_v58, %s2433_s28 }
  0xf6   : > { %v2804_v53 = vpop.permute.xlu1 %886  ;;  %v2806_v54 = vpop.permute.xlu0 %884 }
  0xf8   : > { %654 = vrot.lane.b32.xlu1 %v543_v55, %s2433_s28  ;;  %652 = vrot.lane.b32.xlu0 %v542_v57, %s2433_s28  ;;  %v877_v57 = vsel %vm875_vm12, %v2762_v39, %v2777_v43 }
  0xfa   : > { %v2820_v58 = vpop.permute.xlu1 %894  ;;  %v2823_v60 = vpop.permute.xlu0 %892 }
  0xfc   : > { %648 = vrot.lane.b32.xlu1 %v2695_v5, %s2433_s28  ;;  %656 = vrot.lane.b32.xlu0 %v544_v61, %s2433_s28 }
  0xfe   : > { %v2831_v0 = vpop.permute.xlu1 %898  ;;  %v2833_v1 = vpop.permute.xlu0 %896 }
 0x100   : > { %966 = vrot.lane.b32.xlu1 %v2528_v9, %s2436_s16  ;;  %964 = vrot.lane.b32.xlu0 %v2522_v7, %s2436_s16  ;;  %v847_v9 = vsel %vm845_vm9, %v2711_v20, %v2720_v24  ;;  %v862_v20 = vsel %vm860_vm11, %v2735_v32, %v2733_v31  ;;  %v864_v31 = vsel %vm860_vm11, %v2748_v35, %v2746_v34 }
 0x101   : > { %v861_v35 = vsel %vm860_vm11, %v2764_v40, %v2735_v32  ;;  %v876_v40 = vsel %vm875_vm12, %v2785_v46, %v2762_v39 }
 0x102   : > { %v571_v4 = vpop.permute.xlu1 %570  ;;  %v2839_v6 = vpop.permute.xlu0 %900 }
 0x104   : > { %970 = vrot.lane.b32.xlu1 %v2525_v8, %s2436_s16  ;;  %968 = vrot.lane.b32.xlu0 %v2517_v3, %s2436_s16  ;;  %v849_v3 = vsel %vm845_vm9, %v2718_v23, %v2728_v28  ;;  %vm1687_vm9 = vcmask 302080  }
 0x106   : > { %v575_v5 = vpop.permute.xlu1 %574  ;;  %v573_v12 = vpop.permute.xlu0 %572 }
 0x107   : > { %v660_v7 = vsel %vm658_vm10, %v571_v4, %v573_v12 }
 0x108   : > { %974 = vrot.lane.b32.xlu1 %v847_v9, %s2436_s16  ;;  %962 = vrot.lane.b32.xlu0 %v2532_v10, %s2436_s16  ;;  %v661_v10 = vsel %vm658_vm10, %v573_v12, %v575_v5 }
 0x109   : > { %735 = vmatprep.subr.bf16.mxu0 %v660_v7  ;;  %v890_v7 = vsel %vm888_vm13, %v2794_v50, %v2806_v54 }
 0x10a   : > { %v569_v14 = vpop.permute.xlu1 %568  ;;  %v577_v8 = vpop.permute.xlu0 %576 }
 0x10b   : > { %v659_v15 = vsel %vm658_vm10, %v569_v14, %v571_v4  ;;  %v662_v22 = vsel %vm658_vm10, %v575_v5, %v577_v8  ;;  %v879_v4 = vsel %vm875_vm12, %v2775_v42, %v2787_v47  ;;  %v878_v5 = vsel %vm875_vm12, %v2777_v43, %v2775_v42 }
 0x10c   : > { %978 = vrot.lane.b32.xlu1 %v849_v3, %s2436_s16  ;;  %736 = vmatpush1.bf16.msra.mxu0 %v659_v15  ;;  %v889_v14 = vsel %vm888_vm13, %v2796_v51, %v2794_v50  ;;  %v891_v3 = vsel %vm888_vm13, %v2806_v54, %v2804_v53 }
 0x10d   : > { %976 = vrot.lane.b32.xlu0 %v848_v19, %s2436_s16  ;;  %778 = vmatprep.subr.bf16.mxu1 %v662_v22  ;;  %v903_v22 = vsel %vm902_vm14, %v2823_v60, %v2820_v58 }
 0x10e   : > { %779 = vmatpush1.bf16.msra.mxu1 %v661_v10  ;;  %v583_v25 = vpop.permute.xlu1 %582  ;;  %v581_v29 = vpop.permute.xlu0 %580  ;;  %v905_v10 = vsel %vm902_vm14, %v2833_v1, %v2831_v0 }
 0x10f   : > { %v664_v23 = vsel %vm658_vm10, %v581_v29, %v583_v25 }
 0x110   : > { %972 = vrot.lane.b32.xlu1 %v846_v26, %s2436_s16  ;;  %737 = vmatprep.subr.bf16.mxu0 %v664_v23 }
 0x111   : > { %980 = vrot.lane.b32.xlu0 %v2728_v28, %s2436_s16 }
 0x112   : > { %v587_v24 = vpop.permute.xlu1 %586  ;;  %v585_v30 = vpop.permute.xlu0 %584 }
 0x113   : > { %v666_v27 = vsel %vm658_vm10, %v585_v30, %v587_v24  ;;  %v665_v45 = vsel %vm658_vm10, %v583_v25, %v585_v30  ;;  %v904_v25 = vsel %vm902_vm14, %v2820_v58, %v2833_v1 }
 0x114   : > { %986 = vrot.lane.b32.xlu1 %v863_v44, %s2436_s16  ;;  %780 = vmatprep.subr.bf16.mxu1 %v666_v27 }
 0x115   : > { %984 = vrot.lane.b32.xlu0 %v862_v20, %s2436_s16  ;;  %781 = vmatpush1.bf16.msra.mxu1 %v665_v45 }
 0x116   : > { %v2881_v28 = vpop.permute.xlu1 %909  ;;  %v579_v49 = vpop.permute.xlu0 %578 }
 0x117   : > { %v663_v52 = vsel %vm658_vm10, %v579_v49, %v581_v29 }
 0x118   : > { %990 = vrot.lane.b32.xlu1 %v2746_v34, %s2436_s16  ;;  %738 = vmatpush1.bf16.msra.mxu0 %v663_v52 }
 0x119   : > { %988 = vrot.lane.b32.xlu0 %v864_v31, %s2436_s16 }
 0x11a   : > { %v2891_v55 = vpop.permute.xlu1 %913  ;;  %v2893_v56 = vpop.permute.xlu0 %911 }
 0x11b   : > { %v920_v49 = vsel %vm917_vm15, %v2893_v56, %v2891_v55 }
 0x11c   : > { %994 = vrot.lane.b32.xlu1 %v877_v57, %s2436_s16 }
 0x11d   : > { %982 = vrot.lane.b32.xlu0 %v861_v35, %s2436_s16 }
 0x11e   : > { %v2903_v34 = vpop.permute.xlu1 %907  ;;  %v2905_v61 = vpop.permute.xlu0 %915 }
 0x11f   : > { %v918_v57 = vsel %vm917_vm15, %v2903_v34, %v2881_v28 }
 0x120   : > { %998 = vrot.lane.b32.xlu1 %v879_v4, %s2436_s16 }
 0x121   : > { %996 = vrot.lane.b32.xlu0 %v878_v5, %s2436_s16 }
 0x122   : > { %v593_v32 = vpop.permute.xlu1 %592  ;;  %v591_v12 = vpop.permute.xlu0 %590 }
 0x123   : > { %v668_v9 = vsel %vm658_vm10, %v591_v12, %v593_v32 }
 0x124   : > { %992 = vrot.lane.b32.xlu1 %v876_v40, %s2436_s16  ;;  %739 = vmatprep.subr.bf16.mxu0 %v668_v9  ;;  %v1420_v40 = vld [vmem:[%s2512_s14 + $0x20] sm:$0xff] }
 0x125   : > { %1000 = vrot.lane.b32.xlu0 %v2787_v47, %s2436_s16 }
 0x126   : > { %v597_v42 = vpop.permute.xlu1 %596  ;;  %v595_v43 = vpop.permute.xlu0 %594 }
 0x127   : > { %v670_v39 = vsel %vm658_vm10, %v595_v43, %v597_v42  ;;  %v669_v46 = vsel %vm658_vm10, %v593_v32, %v595_v43 }
 0x128   : > { %1006 = vrot.lane.b32.xlu1 %v890_v7, %s2436_s16  ;;  %782 = vmatprep.subr.bf16.mxu1 %v670_v39 }
 0x129   : > { %1004 = vrot.lane.b32.xlu0 %v889_v14, %s2436_s16  ;;  %783 = vmatpush1.bf16.msra.mxu1 %v669_v46 }
 0x12a   : > { %v2930_v47 = vpop.permute.xlu1 %924  ;;  %v589_v8 = vpop.permute.xlu0 %588 }
 0x12b   : > { %v667_v50 = vsel %vm658_vm10, %v589_v8, %v591_v12 }
 0x12c   : > { %1010 = vrot.lane.b32.xlu1 %v2804_v53, %s2436_s16  ;;  %740 = vmatpush1.bf16.msra.mxu0 %v667_v50  ;;  %v1419_v50 = vld [vmem:[%s2512_s14 + $0x10] sm:$0xf] }
 0x12d   : > { %1008 = vrot.lane.b32.xlu0 %v891_v3, %s2436_s16 }
 0x12e   : > { %v2938_v15 = vpop.permute.xlu1 %928  ;;  %v2940_v19 = vpop.permute.xlu0 %926 }
 0x12f   : > { %v935_v5 = vsel %vm932_vm0, %v2940_v19, %v2938_v15 }
 0x130   : > { %1014 = vrot.lane.b32.xlu1 %v903_v22, %s2436_s16 }
 0x131   : > { %1002 = vrot.lane.b32.xlu0 %v2796_v51, %s2436_s16  ;;  %v906_v51 = vsel %vm902_vm14, %v2831_v0, %v2839_v6 }
 0x132   : > { %v2948_v54 = vpop.permute.xlu1 %922  ;;  %v2950_v53 = vpop.permute.xlu0 %930 }
 0x133   : > { %v936_v42 = vsel %vm932_vm0, %v2938_v15, %v2950_v53  ;;  %v933_v46 = vsel %vm932_vm0, %v2948_v54, %v2930_v47  ;;  %v1422_v15 = vld [vmem:[%s2512_s14 + $0x30] sm:$0xf] }
 0x134   : > { %1018 = vrot.lane.b32.xlu1 %v905_v10, %s2436_s16  ;;  %v3039_v10 = vcombine.low %v1419_v50, %v1422_v15 }
 0x135   : > { %1016 = vrot.lane.b32.xlu0 %v904_v25, %s2436_s16 }
 0x136   : > { %v603_v26 = vpop.permute.xlu1 %602  ;;  %v601_v29 = vpop.permute.xlu0 %600 }
 0x137   : > { %v672_v23 = vsel %vm658_vm10, %v601_v29, %v603_v26 }
 0x138   : > { %1012 = vrot.lane.b32.xlu1 %v2823_v60, %s2436_s16  ;;  %741 = vmatprep.subr.bf16.mxu0 %v672_v23 }
 0x139   : > { %1020 = vrot.lane.b32.xlu0 %v906_v51, %s2436_s16 }
 0x13a   : > { %v607_v24 = vpop.permute.xlu1 %606  ;;  %v605_v30 = vpop.permute.xlu0 %604 }
 0x13b   : > { %v674_v58 = vsel %vm658_vm10, %v605_v30, %v607_v24  ;;  %v673_v1 = vsel %vm658_vm10, %v603_v26, %v605_v30 }
 0x13c   : > { %1026 = vrot.lane.b32.xlu1 %v2752_v37, %s2436_s16  ;;  %784 = vmatprep.subr.bf16.mxu1 %v674_v58 }
 0x13d   : > { %1024 = vrot.lane.b32.xlu0 %v2758_v38, %s2436_s16  ;;  %785 = vmatpush1.bf16.msra.mxu1 %v673_v1  ;;  %v919_v38 = vsel %vm917_vm15, %v2881_v28, %v2893_v56  ;;  %v934_v28 = vsel %vm932_vm0, %v2930_v47, %v2940_v19 }
 0x13e   : > { %v611_v60 = vpop.permute.xlu1 %610  ;;  %v599_v0 = vpop.permute.xlu0 %598 }
 0x13f   : > { %v671_v6 = vsel %vm658_vm10, %v599_v0, %v601_v29 }
 0x140   : > { %1030 = vrot.lane.b32.xlu1 %v2664_v59, %s2436_s16  ;;  %742 = vmatpush1.bf16.msra.mxu0 %v671_v6 }
 0x141   : > { %1028 = vrot.lane.b32.xlu0 %v2771_v41, %s2436_s16  ;;  %v921_v41 = vsel %vm917_vm15, %v2891_v55, %v2905_v61 }
 0x142   : > { %v615_v37 = vpop.permute.xlu1 %614  ;;  %v613_v44 = vpop.permute.xlu0 %612 }
 0x143   : > { %v676_v20 = vsel %vm658_vm10, %v611_v60, %v613_v44 }
 0x144   : > { %1034 = vrot.lane.b32.xlu1 %v919_v38, %s2436_s16  ;;  %743 = vmatprep.subr.bf16.mxu0 %v676_v20 }
 0x145   : > { %1022 = vrot.lane.b32.xlu0 %v2740_v33, %s2436_s16  ;;  %v677_v33 = vsel %vm658_vm10, %v613_v44, %v615_v37 }
 0x146   : > { %v609_v59 = vpop.permute.xlu1 %608  ;;  %v617_v27 = vpop.permute.xlu0 %616 }
 0x147   : > { %v675_v45 = vsel %vm658_vm10, %v609_v59, %v611_v60  ;;  %v678_v31 = vsel %vm658_vm10, %v615_v37, %v617_v27 }
 0x148   : > { %1038 = vrot.lane.b32.xlu1 %v921_v41, %s2436_s16  ;;  %744 = vmatpush1.bf16.msra.mxu0 %v675_v45  ;;  %v2384_v41 = vld [vmem:[%s3519_s3] ss:$8 sps:$4 sm:$0xff]  }
 0x149   : > { %1036 = vrot.lane.b32.xlu0 %v920_v49, %s2436_s16  ;;  %786 = vmatprep.subr.bf16.mxu1 %v678_v31  ;;  %v2387_v49 = vld [vmem:[%s3519_s3 + $0x14] ss:$8 sps:$4 sm:$0xff]  }
 0x14a   : > { %787 = vmatpush1.bf16.msra.mxu1 %v677_v33  ;;  %v623_v52 = vpop.permute.xlu1 %622  ;;  %v621_v35 = vpop.permute.xlu0 %620 }
 0x14b   : > { %v680_v55 = vsel %vm658_vm10, %v621_v35, %v623_v52 }
 0x14c   : > { %1032 = vrot.lane.b32.xlu1 %v918_v57, %s2436_s16  ;;  %745 = vmatprep.subr.bf16.mxu0 %v680_v55 }
 0x14d   : > { %1040 = vrot.lane.b32.xlu0 %v2905_v61, %s2436_s16  ;;  %v1417_v61 = vld [vmem:[%s2512_s14] sm:$0xff] }
 0x14e   : > { %v627_v56 = vpop.permute.xlu1 %626  ;;  %v625_v4 = vpop.permute.xlu0 %624  ;;  %v3021_v7 = vcombine.high %v1417_v61, %v1420_v40  ;;  %v3035_v47 = vcombine.low %v1417_v61, %v1420_v40  ;;  %v1424_v61 = vld [vmem:[%s2512_s14 + $0x14] sm:$0xff] }
 0x14f   : > { %v682_v34 = vsel %vm658_vm10, %v625_v4, %v627_v56  ;;  %v681_v32 = vsel %vm658_vm10, %v623_v52, %v625_v4  ;;  %v1423_v56 = vld [vmem:[%s2512_s14 + $0xc] sm:$0xff]  ;;  %v1427_v40 = vld [vmem:[%s2512_s14 + $0x34] sm:$0xff] }
 0x150   : > { %1046 = vrot.lane.b32.xlu1 %v935_v5, %s2436_s16  ;;  %788 = vmatprep.subr.bf16.mxu1 %v682_v34  ;;  %v1426_v4 = vld [vmem:[%s2512_s14 + $0x2c] sm:$0xff] }
 0x151   : > { %1044 = vrot.lane.b32.xlu0 %v934_v28, %s2436_s16  ;;  %789 = vmatpush1.bf16.msra.mxu1 %v681_v32  ;;  %v2301_v32 = vcombine.low %v1423_v56, %v1426_v4 }
 0x152   : > { %v631_v12 = vpop.permute.xlu1 %630  ;;  %v619_v9 = vpop.permute.xlu0 %618 }
 0x153   : > { %v679_v43 = vsel %vm658_vm10, %v619_v9, %v621_v35 }
 0x154   : > { %1050 = vrot.lane.b32.xlu1 %v2950_v53, %s2436_s16  ;;  %746 = vmatpush1.bf16.msra.mxu0 %v679_v43  ;;  %v2304_v43 = vcombine.high %v1424_v61, %v1427_v40 }
 0x155   : > { %1048 = vrot.lane.b32.xlu0 %v936_v42, %s2436_s16 }
 0x156   : > { %v635_v14 = vpop.permute.xlu1 %634  ;;  %v633_v39 = vpop.permute.xlu0 %632 }
 0x157   : > { %v684_v8 = vsel %vm658_vm10, %v631_v12, %v633_v39  ;;  %v685_v54 = vsel %vm658_vm10, %v633_v39, %v635_v14  ;;  %v1425_v39 = vld [vmem:[%s2512_s14 + $0x1c] sm:$0xf] }
 0x158   : > { %1452 = vrot.lane.b32.xlu1 %v3021_v7, %s2438_s17  ;;  %747 = vmatprep.subr.bf16.mxu0 %v684_v8 }
 0x159   : > { %1042 = vrot.lane.b32.xlu0 %v933_v46, %s2436_s16  ;;  %v1428_v46 = vld [vmem:[%s2512_s14 + $0x3c] sm:$0xf] }
 0x15a   : > { %v629_v3 = vpop.permute.xlu1 %628  ;;  %v637_v19 = vpop.permute.xlu0 %636  ;;  %v2305_v15 = vcombine.low %v1425_v39, %v1428_v46 }
 0x15b   : > { %v683_v22 = vsel %vm658_vm10, %v629_v3, %v631_v12  ;;  %v686_v53 = vsel %vm658_vm10, %v635_v14, %v637_v19 }
 0x15c   : > { %1456 = vrot.lane.b32.xlu1 %v2554_v17, %s2438_s17  ;;  %748 = vmatpush1.bf16.msra.mxu0 %v683_v22 }
 0x15d   : > { %1454 = vrot.lane.b32.xlu0 %v2545_v13, %s2438_s17  ;;  %790 = vmatprep.subr.bf16.mxu1 %v686_v53 }
 0x15e   : > { %791 = vmatpush1.bf16.msra.mxu1 %v685_v54  ;;  %v643_v25 = vpop.permute.xlu1 %642  ;;  %v641_v26 = vpop.permute.xlu0 %640 }
 0x15f   : > { %v688_v29 = vsel %vm658_vm10, %v641_v26, %v643_v25 }
 0x160   : > { %1450 = vrot.lane.b32.xlu1 %v3035_v47, %s2438_s17  ;;  %749 = vmatprep.subr.bf16.mxu0 %v688_v29 }
 0x161   : > { %1458 = vrot.lane.b32.xlu0 %v3039_v10, %s2438_s17  ;;  %s2444_s17 = smov 37  }
 0x162   : > { %v647_v51 = vpop.permute.xlu1 %646  ;;  %v645_v23 = vpop.permute.xlu0 %644 }
 0x163   : > { %v690_v24 = vsel %vm658_vm10, %v645_v23, %v647_v51  ;;  %v689_v30 = vsel %vm658_vm10, %v643_v25, %v645_v23 }
 0x164   : > { %1469 = vrot.lane.b32.xlu1 %v2545_v13, %s2439_s18  ;;  %792 = vmatprep.subr.bf16.mxu1 %v690_v24 }
 0x165   : > { %1467 = vrot.lane.b32.xlu0 %v3021_v7, %s2439_s18  ;;  %793 = vmatpush1.bf16.msra.mxu1 %v689_v30  ;;  %v2283_v30 = vld [vmem:[%s3520_s4 + $0x18] sm:$0xff] }
 0x166   : > { %v651_v58 = vpop.permute.xlu1 %650  ;;  %v639_v1 = vpop.permute.xlu0 %638 }
 0x167   : > { %v687_v60 = vsel %vm658_vm10, %v639_v1, %v641_v26  ;;  %v2282_v1 = vld [vmem:[%s3520_s4 + $0x10] sm:$0xff] }
 0x168   : > { %1473 = vrot.lane.b32.xlu1 %v3039_v10, %s2439_s18  ;;  %750 = vmatpush1.bf16.msra.mxu0 %v687_v60 }
 0x169   : > { %1471 = vrot.lane.b32.xlu0 %v2554_v17, %s2439_s18 }
 0x16a   : > { %v655_v0 = vpop.permute.xlu1 %654  ;;  %v653_v6 = vpop.permute.xlu0 %652 }
 0x16b   : > { %v692_v37 = vsel %vm658_vm10, %v651_v58, %v653_v6  ;;  %v693_v27 = vsel %vm658_vm10, %v653_v6, %v655_v0 }
 0x16c   : > { %1480 = vrot.lane.b32.xlu1 %v2545_v13, %s2440_s19  ;;  %751 = vmatprep.subr.bf16.mxu0 %v692_v37 }
 0x16d   : > { %1465 = vrot.lane.b32.xlu0 %v3035_v47, %s2439_s18 }
 0x16e   : > { %v649_v44 = vpop.permute.xlu1 %648  ;;  %v657_v38 = vpop.permute.xlu0 %656 }
 0x16f   : > { %v691_v20 = vsel %vm658_vm10, %v649_v44, %v651_v58  ;;  %v694_v59 = vsel %vm658_vm10, %v655_v0, %v657_v38 }
 0x170   : > { %1484 = vrot.lane.b32.xlu1 %v2551_v16, %s2440_s19  ;;  %752 = vmatpush1.bf16.msra.mxu0 %v691_v20 }
 0x171   : > { %1482 = vrot.lane.b32.xlu0 %v2554_v17, %s2440_s19  ;;  %794 = vmatprep.subr.bf16.mxu1 %v694_v59 }
 0x172   : > { %795 = vmatpush1.bf16.msra.mxu1 %v693_v27  ;;  %v967_v45 = vpop.permute.xlu1 %966  ;;  %v965_v31 = vpop.permute.xlu0 %964 }
 0x173   : > { %768 = vmatmul.mubr.bf16.vlgmr.msra.gmra.mrb[0].mxu0 %v2384_v41  ;;  %v1054_v33 = vsel %vm1052_vm1, %v965_v31, %v967_v45 }
 0x174   : > { %1492 = vrot.lane.b32.xlu1 %v2545_v13, %s2441_s25  ;;  %2286 = vmatprep.mubr.msk.bf16.mxu0 %vm731_vm8, %v2387_v49 }
 0x175   : > { %1486 = vrot.lane.b32.xlu0 %v2558_v18, %s2440_s19  ;;  %1128 = vmatprep.subr.bf16.mxu0 %v1054_v33 }
 0x176   : > { %v971_v52 = vpop.permute.xlu1 %970  ;;  %811 = vmatmul.mubr.bf16.vlgmr.msra.gmra.mrb[0].mxu1 %v2384_v41  ;;  %v969_v57 = vpop.permute.xlu0 %968 }
 0x177   : > { %2287 = vmatprep.mubr.msk.bf16.mxu1 %vm731_vm8, %v2387_v49  ;;  %v1056_v35 = vsel %vm1052_vm1, %v969_v57, %v971_v52  ;;  %v1055_v55 = vsel %vm1052_vm1, %v967_v45, %v969_v57  ;;  %v547_v49 = vld [vmem:[%s3520_s4] sm:$0xff]  ;;  %v548_v57 = vld [vmem:[%s3520_s4 + $0x8] sm:$0xff] }
 0x178   : > { %1496 = vrot.lane.b32.xlu1 %v2551_v16, %s2441_s25  ;;  %1171 = vmatprep.subr.bf16.mxu1 %v1056_v35  ;;  %v3078_v16 = vcombine.high %v1423_v56, %v1426_v4 }
 0x179   : > { %1494 = vrot.lane.b32.xlu0 %v2554_v17, %s2441_s25  ;;  %1172 = vmatpush1.bf16.msra.mxu1 %v1055_v55 }
 0x17a   : > { %v975_v5 = vpop.permute.xlu1 %974  ;;  %v963_v28 = vpop.permute.xlu0 %962 }
 0x17b   : > { %v1053_v34 = vsel %vm1052_vm1, %v963_v28, %v965_v31 }
 0x17c   : > { %1500 = vrot.lane.b32.xlu1 %v2565_v21, %s2441_s25  ;;  %1129 = vmatpush1.bf16.msra.mxu0 %v1053_v34  ;;  %v2303_v21 = vcombine.low %v1424_v61, %v1427_v40 }
 0x17d   : > { %1498 = vrot.lane.b32.xlu0 %v2558_v18, %s2441_s25 }
 0x17e   : > { %v979_v12 = vpop.permute.xlu1 %978 }
 0x17f   : > { %v977_v9 = vpop.permute.xlu0 %976 }
 0x180   : > { %1530 = vrot.lane.b32.xlu1 %v3078_v16, %s2425_s20  ;;  %v1058_v42 = vsel %vm1052_vm1, %v975_v5, %v977_v9  ;;  %v1059_v50 = vsel %vm1052_vm1, %v977_v9, %v979_v12 }
 0x181   : > { %1528 = vrot.lane.b32.xlu0 %v2301_v32, %s2425_s20  ;;  %1130 = vmatprep.subr.bf16.mxu0 %v1058_v42 }
 0x182   : > { %v973_v14 = vpop.permute.xlu1 %972 }
 0x183   : > { %v1057_v18 = vsel %vm1052_vm1, %v973_v14, %v975_v5  ;;  %v981_v8 = vpop.permute.xlu0 %980 }
 0x184   : > { %1534 = vrot.lane.b32.xlu1 %v2304_v43, %s2425_s20  ;;  %1131 = vmatpush1.bf16.msra.mxu0 %v1057_v18  ;;  %v1060_v3 = vsel %vm1052_vm1, %v979_v12, %v981_v8 }
 0x185   : > { %1532 = vrot.lane.b32.xlu0 %v2303_v21, %s2425_s20  ;;  %1173 = vmatprep.subr.bf16.mxu1 %v1060_v3 }
 0x186   : > { %1174 = vmatpush1.bf16.msra.mxu1 %v1059_v50  ;;  %v987_v19 = vpop.permute.xlu1 %986 }
 0x187   : > { %v985_v22 = vpop.permute.xlu0 %984 }
 0x188   : > { %1542 = vrot.lane.b32.xlu1 %v2301_v32, %s2442_s26  ;;  %v1062_v53 = vsel %vm1052_vm1, %v985_v22, %v987_v19 }
 0x189   : > { %1536 = vrot.lane.b32.xlu0 %v2305_v15, %s2425_s20  ;;  %1132 = vmatprep.subr.bf16.mxu0 %v1062_v53 }
 0x18a   : > { %v991_v54 = vpop.permute.xlu1 %990 }
 0x18b   : > { %v989_v25 = vpop.permute.xlu0 %988 }
 0x18c   : > { %1546 = vrot.lane.b32.xlu1 %v2303_v21, %s2442_s26  ;;  %v1064_v26 = vsel %vm1052_vm1, %v989_v25, %v991_v54  ;;  %v1063_v29 = vsel %vm1052_vm1, %v987_v19, %v989_v25 }
 0x18d   : > { %1544 = vrot.lane.b32.xlu0 %v3078_v16, %s2442_s26  ;;  %1175 = vmatprep.subr.bf16.mxu1 %v1064_v26 }
 0x18e   : > { %1176 = vmatpush1.bf16.msra.mxu1 %v1063_v29  ;;  %v995_v51 = vpop.permute.xlu1 %994 }
 0x18f   : > { %v983_v23 = vpop.permute.xlu0 %982 }
 0x190   : > { %v1061_v24 = vsel %vm1052_vm1, %v983_v23, %v985_v22  ;;  %1550 = vrot.lane.b32.xlu1 %v2305_v15, %s2442_s26 }
 0x191   : > { %1548 = vrot.lane.b32.xlu0 %v2304_v43, %s2442_s26  ;;  %1133 = vmatpush1.bf16.msra.mxu0 %v1061_v24 }
 0x192   : > { %v999_v58 = vpop.permute.xlu1 %998 }
 0x193   : > { %v997_v60 = vpop.permute.xlu0 %996 }
 0x194   : > { %950 = vperm.xlu1 %2383, %v2283_v30   ;;  %v1066_v0 = vsel %vm1052_vm1, %v995_v51, %v997_v60  ;;  %v1067_v20 = vsel %vm1052_vm1, %v997_v60, %v999_v58 }
 0x195   : > { %945 = vperm.xlu0 %2382, %v2282_v1   ;;  %1134 = vmatprep.subr.bf16.mxu0 %v1066_v0 }
 0x196   : > { %v993_v6 = vpop.permute.xlu1 %992 }
 0x197   : > { %v1065_v37 = vsel %vm1052_vm1, %v993_v6, %v995_v51  ;;  %v1001_v44 = vpop.permute.xlu0 %1000  ;;  %v2389_v51 = vld [vmem:[%s3519_s3 + $0x10] ss:$8 sps:$4 sm:$0xff]  }
 0x198   : > { %1135 = vmatpush1.bf16.msra.mxu0 %v1065_v37  ;;  %v1068_v38 = vsel %vm1052_vm1, %v999_v58, %v1001_v44  ;;  %1557 = vrot.lane.b32.xlu1 %v2301_v32, %s2443_s29 }
 0x199   : > { %1177 = vmatprep.subr.bf16.mxu1 %v1068_v38  ;;  %1559 = vrot.lane.b32.xlu0 %v3078_v16, %s2443_s29 }
 0x19a   : > { %1178 = vmatpush1.bf16.msra.mxu1 %v1067_v20  ;;  %v1007_v59 = vpop.permute.xlu1 %1006 }
 0x19b   : > { %v1005_v27 = vpop.permute.xlu0 %1004 }
 0x19c   : > { %v1070_v41 = vsel %vm1052_vm1, %v1005_v27, %v1007_v59  ;;  %1561 = vrot.lane.b32.xlu1 %v2303_v21, %s2443_s29 }
 0x19d   : > { %1136 = vmatprep.subr.bf16.mxu0 %v1070_v41  ;;  %1563 = vrot.lane.b32.xlu0 %v2304_v43, %s2443_s29 }
 0x19e   : > { %v1011_v45 = vpop.permute.xlu1 %1010 }
 0x19f   : > { %v1009_v31 = vpop.permute.xlu0 %1008 }
 0x1a0   : > { %v1072_v33 = vsel %vm1052_vm1, %v1009_v31, %v1011_v45  ;;  %v1071_v52 = vsel %vm1052_vm1, %v1007_v59, %v1009_v31  ;;  %1565 = vrot.lane.b32.xlu1 %v2305_v15, %s2443_s29  ;;  %s362_s29 = scalar_lea.vmem %s3517_s1, %s2506_s11  ;;  %s2328_s11 = sshll.u32 %s3527_s10, 5 }
 0x1a1   : > { %1179 = vmatprep.subr.bf16.mxu1 %v1072_v33  ;;  %551 = vperm.xlu0 %2382, %v547_v49   ;;  %s372_s10 = scalar_lea.vmem %s3525_s9, %s2328_s11 }
 0x1a2   : > { %1180 = vmatpush1.bf16.msra.mxu1 %v1071_v52  ;;  %v1015_v35 = vpop.permute.xlu1 %1014 }
 0x1a3   : > { %v1003_v55 = vpop.permute.xlu0 %1002 }
 0x1a4   : > { %v1069_v56 = vsel %vm1052_vm1, %v1003_v55, %v1005_v27  ;;  %556 = vperm.xlu1 %2383, %v548_v57  }
 0x1a5   : > { %1137 = vmatpush1.bf16.msra.mxu0 %v1069_v56  ;;  %1599 = vrot.lane.b32.xlu0 %v3021_v7, %s2444_s17 }
 0x1a6   : > { %v1019_v4 = vpop.permute.xlu1 %1018 }
 0x1a7   : > { %v1017_v5 = vpop.permute.xlu0 %1016 }
 0x1a8   : > { %v1074_v28 = vsel %vm1052_vm1, %v1015_v35, %v1017_v5  ;;  %1601 = vrot.lane.b32.xlu1 %v2545_v13, %s2444_s17  ;;  %v1075_v7 = vsel %vm1052_vm1, %v1017_v5, %v1019_v4 }
 0x1a9   : > { %1138 = vmatprep.subr.bf16.mxu0 %v1074_v28  ;;  %1603 = vrot.lane.b32.xlu0 %v2554_v17, %s2444_s17 }
 0x1aa   : > { %v1013_v34 = vpop.permute.xlu1 %1012 }
 0x1ab   : > { %v1073_v16 = vsel %vm1052_vm1, %v1013_v34, %v1015_v35  ;;  %v1021_v32 = vpop.permute.xlu0 %1020 }
 0x1ac   : > { %1139 = vmatpush1.bf16.msra.mxu0 %v1073_v16  ;;  %v1076_v61 = vsel %vm1052_vm1, %v1019_v4, %v1021_v32  ;;  %1605 = vrot.lane.b32.xlu1 %v3039_v10, %s2444_s17 }
 0x1ad   : > { %1181 = vmatprep.subr.bf16.mxu1 %v1076_v61  ;;  %1597 = vrot.lane.b32.xlu0 %v3035_v47, %s2444_s17 }
 0x1ae   : > { %1182 = vmatpush1.bf16.msra.mxu1 %v1075_v7  ;;  %v1027_v13 = vpop.permute.xlu1 %1026 }
 0x1af   : > { %v1025_v40 = vpop.permute.xlu0 %1024 }
 0x1b0   : > { %v1078_v17 = vsel %vm1052_vm1, %v1025_v40, %v1027_v13 }
 0x1b1   : > { %1140 = vmatprep.subr.bf16.mxu0 %v1078_v17 }
 0x1b2   : > { %v1031_v12 = vpop.permute.xlu1 %1030 }
 0x1b3   : > { %v1029_v9 = vpop.permute.xlu0 %1028 }
 0x1b4   : > { %v1080_v42 = vsel %vm1052_vm1, %v1029_v9, %v1031_v12  ;;  %v1079_v43 = vsel %vm1052_vm1, %v1027_v13, %v1029_v9 }
 0x1b5   : > { %1183 = vmatprep.subr.bf16.mxu1 %v1080_v42 }
 0x1b6   : > { %1184 = vmatpush1.bf16.msra.mxu1 %v1079_v43  ;;  %v1035_v10 = vpop.permute.xlu1 %1034 }
 0x1b7   : > { %v1023_v21 = vpop.permute.xlu0 %1022 }
 0x1b8   : > { %v1077_v14 = vsel %vm1052_vm1, %v1023_v21, %v1025_v40 }
 0x1b9   : > { %1141 = vmatpush1.bf16.msra.mxu0 %v1077_v14 }
 0x1ba   : > { %v1039_v47 = vpop.permute.xlu1 %1038 }
 0x1bb   : > { %v1037_v39 = vpop.permute.xlu0 %1036 }
 0x1bc   : > { %v1082_v46 = vsel %vm1052_vm1, %v1035_v10, %v1037_v39  ;;  %v1083_v15 = vsel %vm1052_vm1, %v1037_v39, %v1039_v47 }
 0x1bd   : > { %1142 = vmatprep.subr.bf16.mxu0 %v1082_v46 }
 0x1be   : > { %v1033_v18 = vpop.permute.xlu1 %1032 }
 0x1bf   : > { %v1081_v8 = vsel %vm1052_vm1, %v1033_v18, %v1035_v10  ;;  %v1041_v3 = vpop.permute.xlu0 %1040 }
 0x1c0   : > { %1143 = vmatpush1.bf16.msra.mxu0 %v1081_v8  ;;  %v1084_v50 = vsel %vm1052_vm1, %v1039_v47, %v1041_v3 }
 0x1c1   : > { %1185 = vmatprep.subr.bf16.mxu1 %v1084_v50 }
 0x1c2   : > { %1186 = vmatpush1.bf16.msra.mxu1 %v1083_v15  ;;  %v1047_v19 = vpop.permute.xlu1 %1046 }
 0x1c3   : > { %v1045_v22 = vpop.permute.xlu0 %1044 }
 0x1c4   : > { %v1086_v53 = vsel %vm1052_vm1, %v1045_v22, %v1047_v19 }
 0x1c5   : > { %1144 = vmatprep.subr.bf16.mxu0 %v1086_v53 }
 0x1c6   : > { %v1051_v54 = vpop.permute.xlu1 %1050 }
 0x1c7   : > { %v1049_v25 = vpop.permute.xlu0 %1048 }
 0x1c8   : > { %v1087_v26 = vsel %vm1052_vm1, %v1047_v19, %v1049_v25  ;;  %v1088_v29 = vsel %vm1052_vm1, %v1049_v25, %v1051_v54 }
 0x1c9   : > { %1187 = vmatprep.subr.bf16.mxu1 %v1088_v29 }
 0x1ca   : > { %1188 = vmatpush1.bf16.msra.mxu1 %v1087_v26  ;;  %v1453_v23 = vpop.permute.xlu1 %1452 }
 0x1cb   : > { %v1043_v24 = vpop.permute.xlu0 %1042 }
 0x1cc   : > { %v1085_v30 = vsel %vm1052_vm1, %v1043_v24, %v1045_v22 }
 0x1cd   : > { %1145 = vmatpush1.bf16.msra.mxu0 %v1085_v30  ;;  %1204 = vmatmul.mubr.bf16.vlgmr.msra.gmra.mrb[4].mxu1 %v2389_v51  ;;  %v2308_v30 = vld [vmem:[%s3520_s4 + $0x20] sm:$0xff] }
 0x1ce   : > { %v1457_v58 = vpop.permute.xlu1 %1456  ;;  %1312 = vmatprep.mubr.bf16.mxu1 %v2437_v48 }
 0x1cf   : > { %v1455_v1 = vpop.permute.xlu0 %1454 }
 0x1d0   : > { %v1462_v60 = vsel %vm1460_vm2, %v1453_v23, %v1455_v1  ;;  %v1463_v0 = vsel %vm1460_vm2, %v1455_v1, %v1457_v58  ;;  %1161 = vmatmul.mubr.bf16.vlgmr.msra.gmra.mrb[4].mxu0 %v2389_v51  ;;  %v1966_v1 = vld [vmem:[%s3522_s6] sm:$0xff] }
 0x1d1   : > { %1611 = vrot.lane.b32.xlu0 %v1463_v0, %s2444_s17  ;;  %1609 = vrot.lane.b32.xlu1 %v1462_v60, %s2444_s17  ;;  %v1967_v60 = vld [vmem:[%s3522_s6 + $0x8] sm:$0xff]  ;;  %v2014_v0 = vld [vmem:[%s3523_s7] sm:$0xff] }
 0x1d2   : > { %v1451_v6 = vpop.permute.xlu1 %1450  ;;  %1269 = vmatprep.mubr.bf16.mxu0 %v2437_v48 }
 0x1d3   : > { %v1459_v37 = vpop.permute.xlu0 %1458  ;;  %v1461_v38 = vsel %vm1460_vm2, %v1451_v6, %v1453_v23  ;;  %v2015_v6 = vld [vmem:[%s3523_s7 + $0x8] sm:$0xff] }
 0x1d4   : > { %v1464_v44 = vsel %vm1460_vm2, %v1457_v58, %v1459_v37  ;;  %v2309_v58 = vld [vmem:[%s3520_s4 + $0x28] sm:$0xff] }
 0x1d5   : > { %1613 = vrot.lane.b32.xlu1 %v1464_v44, %s2444_s17  ;;  %1615 = vrot.lane.b32.xlu0 %v1459_v37, %s2444_s17  ;;  %v2034_v37 = vld [vmem:[%s3524_s8] sm:$0xff]  ;;  %v2035_v44 = vld [vmem:[%s3524_s8 + $0x8] sm:$0xff] }
 0x1d6   : > { %v1470_v20 = vpop.permute.xlu1 %1469 }
 0x1d7   : > { %v1468_v59 = vpop.permute.xlu0 %1467 }
 0x1d8   : > { %v1477_v27 = vsel %vm1475_vm3, %v1468_v59, %v1470_v20 }
 0x1d9   : > { %1607 = vrot.lane.b32.xlu1 %v1461_v38, %s2444_s17  ;;  %1619 = vrot.lane.b32.xlu0 %v1477_v27, %s2444_s17 }
 0x1da   : > { %v1474_v41 = vpop.permute.xlu1 %1473 }
 0x1db   : > { %v1472_v45 = vpop.permute.xlu0 %1471 }
 0x1dc   : > { %v1478_v49 = vsel %vm1475_vm3, %v1470_v20, %v1472_v45  ;;  %v1479_v31 = vsel %vm1475_vm3, %v1472_v45, %v1474_v41 }
 0x1dd   : > { %1623 = vrot.lane.b32.xlu0 %v1479_v31, %s2444_s17  ;;  %1621 = vrot.lane.b32.xlu1 %v1478_v49, %s2444_s17 }
 0x1de   : > { %v1481_v33 = vpop.permute.xlu1 %1480 }
 0x1df   : > { %v1466_v52 = vpop.permute.xlu0 %1465 }
 0x1e0   : > { %v1476_v57 = vsel %vm1475_vm3, %v1466_v52, %v1468_v59 }
 0x1e1   : > { %1625 = vrot.lane.b32.xlu1 %v1474_v41, %s2444_s17  ;;  %1617 = vrot.lane.b32.xlu0 %v1476_v57, %s2444_s17 }
 0x1e2   : > { %v1485_v35 = vpop.permute.xlu1 %1484 }
 0x1e3   : > { %v1483_v55 = vpop.permute.xlu0 %1482 }
 0x1e4   : > { %v1489_v5 = vsel %vm1488_vm4, %v1481_v33, %v1483_v55 }
 0x1e5   : > { %1629 = vrot.lane.b32.xlu1 %v2677_v63, %s2444_s17  ;;  %1631 = vrot.lane.b32.xlu0 %v2673_v62, %s2444_s17  ;;  %v1490_v63 = vsel %vm1488_vm4, %v1483_v55, %v1485_v35 }
 0x1e6   : > { %v1493_v56 = vpop.permute.xlu1 %1492 }
 0x1e7   : > { %v1487_v4 = vpop.permute.xlu0 %1486 }
 0x1e8   : > { %v1491_v16 = vsel %vm1488_vm4, %v1485_v35, %v1487_v4 }
 0x1e9   : > { %1633 = vrot.lane.b32.xlu1 %v2687_v2, %s2444_s17  ;;  %1635 = vrot.lane.b32.xlu0 %v2630_v36, %s2444_s17 }
 0x1ea   : > { %v1497_v28 = vpop.permute.xlu1 %1496 }
 0x1eb   : > { %v1495_v34 = vpop.permute.xlu0 %1494 }
 0x1ec   : > { %v1503_v61 = vsel %vm1502_vm6, %v1493_v56, %v1495_v34  ;;  %v1504_v7 = vsel %vm1502_vm6, %v1495_v34, %v1497_v28 }
 0x1ed   : > { %1627 = vrot.lane.b32.xlu1 %v2700_v11, %s2444_s17  ;;  %1639 = vrot.lane.b32.xlu0 %v1489_v5, %s2444_s17 }
 0x1ee   : > { %v1501_v62 = vpop.permute.xlu1 %1500 }
 0x1ef   : > { %v1499_v32 = vpop.permute.xlu0 %1498 }
 0x1f0   : > { %v1505_v11 = vsel %vm1502_vm6, %v1497_v28, %v1499_v32  ;;  %v1506_v13 = vsel %vm1502_vm6, %v1499_v32, %v1501_v62 }
 0x1f1   : > { %1641 = vrot.lane.b32.xlu1 %v1490_v63, %s2444_s17  ;;  %1643 = vrot.lane.b32.xlu0 %v1491_v16, %s2444_s17 }
 0x1f2   : > { %v1531_v36 = vpop.permute.xlu1 %1530 }
 0x1f3   : > { %v1529_v2 = vpop.permute.xlu0 %1528 }
 0x1f4   : > { %v1538_v12 = vsel %vm510_vm5, %v1529_v2, %v1531_v36 }
 0x1f5   : > { %1637 = vrot.lane.b32.xlu0 %v1481_v33, %s2444_s17  ;;  %1645 = vrot.lane.b32.xlu1 %v1487_v4, %s2444_s17 }
 0x1f6   : > { %v1535_v40 = vpop.permute.xlu1 %1534 }
 0x1f7   : > { %v1533_v17 = vpop.permute.xlu0 %1532 }
 0x1f8   : > { %v1539_v43 = vsel %vm510_vm5, %v1531_v36, %v1533_v17  ;;  %v1540_v10 = vsel %vm510_vm5, %v1533_v17, %v1535_v40 }
 0x1f9   : > { %1651 = vrot.lane.b32.xlu0 %v1504_v7, %s2444_s17  ;;  %1649 = vrot.lane.b32.xlu1 %v1503_v61, %s2444_s17 }
 0x1fa   : > { %v1543_v9 = vpop.permute.xlu1 %1542 }
 0x1fb   : > { %v1537_v42 = vpop.permute.xlu0 %1536 }
 0x1fc   : > { %v1541_v21 = vsel %vm510_vm5, %v1535_v40, %v1537_v42  ;;  %vm1567_vm5 = vcmask 441344  }
 0x1fd   : > { %1655 = vrot.lane.b32.xlu0 %v1506_v13, %s2444_s17  ;;  %1653 = vrot.lane.b32.xlu1 %v1505_v11, %s2444_s17 }
 0x1fe   : > { %v1547_v14 = vpop.permute.xlu1 %1546 }
 0x1ff   : > { %v1545_v47 = vpop.permute.xlu0 %1544 }
 0x200   : > { %v1553_v39 = vsel %vm1552_vm7, %v1543_v9, %v1545_v47  ;;  %v1554_v46 = vsel %vm1552_vm7, %v1545_v47, %v1547_v14 }
 0x201   : > { %1647 = vrot.lane.b32.xlu1 %v1493_v56, %s2444_s17  ;;  %1659 = vrot.lane.b32.xlu0 %v1538_v12, %s2444_s17 }
 0x202   : > { %v1551_v18 = vpop.permute.xlu1 %1550 }
 0x203   : > { %v1549_v8 = vpop.permute.xlu0 %1548 }
 0x204   : > { %v1555_v3 = vsel %vm1552_vm7, %v1547_v14, %v1549_v8  ;;  %v1556_v50 = vsel %vm1552_vm7, %v1549_v8, %v1551_v18 }
 0x205   : > { %1663 = vrot.lane.b32.xlu0 %v1540_v10, %s2444_s17  ;;  %1661 = vrot.lane.b32.xlu1 %v1539_v43, %s2444_s17 }
 0x209   : > { %1657 = vrot.lane.b32.xlu0 %v1529_v2, %s2444_s17  ;;  %1665 = vrot.lane.b32.xlu1 %v1541_v21, %s2444_s17 }
 0x20d   : > { %1671 = vrot.lane.b32.xlu0 %v1554_v46, %s2444_s17  ;;  %1669 = vrot.lane.b32.xlu1 %v1553_v39, %s2444_s17 }
 0x211   : > { %1675 = vrot.lane.b32.xlu0 %v1556_v50, %s2444_s17  ;;  %1673 = vrot.lane.b32.xlu1 %v1555_v3, %s2444_s17 }
 0x213   : > { %v3199_v15 = vpop.permute.xlu1 %950 }
 0x214   : > { %v3201_v19 = vpop.permute.xlu0 %945 }
 0x215   : > { %1667 = vrot.lane.b32.xlu1 %v1543_v9, %s2444_s17 }
 0x217   : > { %v1558_v22 = vpop.permute.xlu1 %1557 }
 0x218   : > { %v1560_v53 = vpop.permute.xlu0 %1559 }
 0x219   : > { %v1568_v54 = vsel %vm1567_vm5, %v1558_v22, %v1560_v53 }
 0x21a   : > { %1679 = vrot.lane.b32.xlu0 %v1568_v54, %s2444_s17 }
 0x21b   : > { %v1562_v25 = vpop.permute.xlu1 %1561 }
 0x21c   : > { %v1569_v26 = vsel %vm1567_vm5, %v1560_v53, %v1562_v25  ;;  %v1564_v29 = vpop.permute.xlu0 %1563 }
 0x21d   : > { %v1570_v51 = vsel %vm1567_vm5, %v1562_v25, %v1564_v29  ;;  %1681 = vrot.lane.b32.xlu1 %v1569_v26, %s2444_s17 }
 0x21e   : > { %1683 = vrot.lane.b32.xlu0 %v1570_v51, %s2444_s17 }
 0x21f   : > { %v1566_v23 = vpop.permute.xlu1 %1565 }
 0x220   : > { %v1571_v24 = vsel %vm1567_vm5, %v1564_v29, %v1566_v23  ;;  %v552_v38 = vpop.permute.xlu0 %551 }
 0x221   : > { %1685 = vrot.lane.b32.xlu1 %v1571_v24, %s2444_s17 }
 0x222   : > { %1677 = vrot.lane.b32.xlu0 %v1558_v22, %s2444_s17 }
 0x223   : > { %v557_v27 = vpop.permute.xlu1 %556 }
 0x224   : > { %v3239_v12 = vpop.permute.xlu0 %1599 }
 0x225   : > { %1580 = vperm.xlu1 %2383, %v2308_v30  }
 0x226   : > { %1585 = vperm.xlu0 %2382, %v2309_v58  }
 0x227   : > { %v3241_v9 = vpop.permute.xlu1 %1601 }
 0x228   : > { %v3243_v42 = vpop.permute.xlu0 %1603 }
 0x229   : > { %1970 = vperm.xlu1 %2383, %v1966_v1  }
 0x22a   : > { %1975 = vperm.xlu0 %2382, %v1967_v60  }
 0x22b   : > { %v3245_v43 = vpop.permute.xlu1 %1605 }
 0x22c   : > { %v3247_v10 = vpop.permute.xlu0 %1597 }
 0x22d   : > { %2018 = vperm.xlu1 %2383, %v2014_v0  }
 0x22e   : > { %2023 = vperm.xlu0 %2382, %v2015_v6  }
 0x231   : > { %2038 = vperm.xlu1 %2383, %v2034_v37  }
 0x232   : > { %2043 = vperm.xlu0 %2382, %v2035_v44  }
 0x243   : > { %v3249_v21 = vpop.permute.xlu1 %1609  ;;  %v3251_v14 = vpop.permute.xlu0 %1611 }
 0x246   : > { %v769_v20 = vpop.f32.mrb[0].mxu0 }
 0x247   : > { %v770_v59 = vadd.f32 %v769_v20, %v552_v38  ;;  %v771_v41 = vpop.f32.mrb[1].mxu0  ;;  %v3253_v47 = vpop.permute.xlu1 %1613 }
 0x248   : > { %v772_v49 = vadd.f32 %v771_v41, %v552_v38  ;;  %v773_v31 = vpop.f32.mrb[2].mxu0  ;;  %v3255_v39 = vpop.permute.xlu0 %1615 }
 0x249   : > { %v812_v45 = vpop.f32.mrb[0].mxu1  ;;  %v821_v33 = vmax.f32 %v770_v59, 0.0  ;;  %v774_v35 = vadd.f32 %v773_v31, %v557_v27  ;;  %v775_v55 = vpop.f32.mrb[3].mxu0 }
 0x24a   : > { %v813_v52 = vadd.f32 %v812_v45, %v552_v38  ;;  %v814_v57 = vpop.f32.mrb[1].mxu1  ;;  %v822_v56 = vmax.f32 %v772_v49, 0.0  ;;  %v776_v5 = vadd.f32 %v775_v55, %v557_v27 }
 0x24b   : > { %v815_v4 = vadd.f32 %v814_v57, %v552_v38  ;;  %v825_v28 = vmax.f32 %v774_v35, 0.0  ;;  %v816_v34 = vpop.f32.mrb[2].mxu1  ;;  %v3257_v46 = vpop.permute.xlu1 %1607 }
 0x24c   : > { %v823_v63 = vmax.f32 %v813_v52, 0.0  ;;  %v817_v16 = vadd.f32 %v816_v34, %v557_v27  ;;  %v826_v62 = vmax.f32 %v776_v5, 0.0  ;;  %v818_v32 = vpop.f32.mrb[3].mxu1  ;;  %v3259_v18 = vpop.permute.xlu0 %1619 }
 0x24d   : > { %v824_v36 = vmax.f32 %v815_v4, 0.0  ;;  %v3233_v2 = vpack.c.bf16 %v825_v28, %v821_v33  ;;  %v819_v61 = vadd.f32 %v818_v32, %v557_v27 }
 0x24e   : > { %v827_v7 = vmax.f32 %v817_v16, 0.0  ;;  %v3235_v11 = vpack.c.bf16 %v826_v62, %v822_v56 }
 0x24f   : > { %v828_v13 = vmax.f32 %v819_v61, 0.0  ;;  %v3261_v8 = vpop.permute.xlu1 %1621 }
 0x250   : > { %v3237_v40 = vpack.c.bf16 %v827_v7, %v823_v63  ;;  %v3263_v3 = vpop.permute.xlu0 %1623 }
 0x251   : > { %v834_v17 = vpack.c.bf16 %v828_v13, %v824_v36 }
 0x253   : > { %v3265_v50 = vpop.permute.xlu1 %1625 }
 0x254   : > { %v3267_v22 = vpop.permute.xlu0 %1617 }
 0x257   : > { %v3269_v53 = vpop.permute.xlu1 %1629 }
 0x258   : > { %v3271_v54 = vpop.permute.xlu0 %1631 }
 0x25b   : > { %v3273_v25 = vpop.permute.xlu1 %1633 }
 0x25c   : > { %v3275_v26 = vpop.permute.xlu0 %1635 }
 0x25f   : > { %v3277_v29 = vpop.permute.xlu1 %1627 }
 0x260   : > { %v3279_v51 = vpop.permute.xlu0 %1639 }
 0x263   : > { %v3281_v23 = vpop.permute.xlu1 %1641 }
 0x264   : > { %v3283_v24 = vpop.permute.xlu0 %1643 }
 0x267   : > { %v3285_v30 = vpop.permute.xlu1 %1645 }
 0x268   : > { %v3287_v58 = vpop.permute.xlu0 %1637 }
 0x26b   : > { %v3289_v1 = vpop.permute.xlu1 %1649 }
 0x26c   : > { %v3292_v37 = vpop.permute.xlu0 %1651 }
 0x26f   : > { %v3296_v41 = vpop.permute.xlu1 %1653 }
 0x270   : > { %v3303_v61 = vpop.permute.xlu0 %1655 }
 0x273   : > { %v3305_v7 = vpop.permute.xlu1 %1647 }
 0x2a0   : > { %v1205_v60 = vpop.f32.mrb[4].mxu1 }
 0x2a1   : > { %v1206_v0 = vadd.f32 %v1205_v60, %v3201_v19  ;;  %v1207_v6 = vpop.f32.mrb[5].mxu1 }
 0x2a2   : > { %v1208_v44 = vadd.f32 %v1207_v6, %v3201_v19  ;;  %v1209_v38 = vpop.f32.mrb[6].mxu1  ;;  %v3318_v6 = vpop.permute.xlu1 %1661 }
 0x2a3   : > { %v1210_v20 = vadd.f32 %v1209_v38, %v3199_v15  ;;  %v1162_v59 = vpop.f32.mrb[4].mxu0  ;;  %v1211_v27 = vpop.f32.mrb[7].mxu1  ;;  %v1216_v33 = vmax.f32 %v1206_v0, 0.0  ;;  %v1695_v38 = vsel %vm1687_vm9, %v3253_v47, %v3255_v39  ;;  %v1699_v39 = vsel %vm1687_vm9, %v3263_v3, %v3265_v50 }
 0x2a4   : > { %v1163_v45 = vadd.f32 %v1162_v59, %v3201_v19  ;;  %v1212_v49 = vadd.f32 %v1211_v27, %v3199_v15  ;;  %v1164_v31 = vpop.f32.mrb[5].mxu0  ;;  %v1217_v55 = vmax.f32 %v1208_v44, 0.0  ;;  %v3316_v0 = vpop.permute.xlu0 %1659  ;;  %v2392_v44 = vld [vmem:[%s3519_s3 + $0x24] ss:$8 sps:$4 sm:$0xff]   ;;  %v1688_v27 = vsel %vm1687_vm9, %v3247_v10, %v3239_v12 }
 0x2a5   : > { %v1220_v52 = vmax.f32 %v1210_v20, 0.0  ;;  %v1165_v57 = vadd.f32 %v1164_v31, %v3201_v19  ;;  %v1166_v35 = vpop.f32.mrb[6].mxu0  ;;  %v2390_v19 = vld [vmem:[%s3521_s5 + $0x8] sm:$0xff]   ;;  %v1698_v10 = vsel %vm1687_vm9, %v3261_v8, %v3263_v3  ;;  %v1703_v50 = vsel %vm1687_vm9, %v3273_v25, %v3275_v26 }
 0x2a6   : > { %v1221_v56 = vmax.f32 %v1212_v49, 0.0  ;;  %v1167_v4 = vadd.f32 %v1166_v35, %v3199_v15  ;;  %v1168_v5 = vpop.f32.mrb[7].mxu0  ;;  %v1214_v63 = vmax.f32 %v1163_v45, 0.0  ;;  %v1707_v3 = vsel %vm1687_vm9, %v3283_v24, %v3285_v30 }
 0x2a7   : > { %v1227_v28 = vpack.c.bf16 %v1220_v52, %v1216_v33  ;;  %v1169_v34 = vadd.f32 %v1168_v5, %v3199_v15  ;;  %v1215_v32 = vmax.f32 %v1165_v57, 0.0  ;;  %v1691_v15 = vsel %vm1687_vm9, %v3243_v42, %v3245_v43  ;;  %v2391_v43 = vld [vmem:[%s3521_s5] sm:$0xff]  }
 0x2a8   : > { %v1228_v16 = vpack.c.bf16 %v1221_v56, %v1217_v55  ;;  %v1218_v62 = vmax.f32 %v1167_v4, 0.0 }
 0x2a9   : > { %v1219_v36 = vmax.f32 %v1169_v34, 0.0 }
 0x2aa   : > { %v1225_v13 = vpack.c.bf16 %v1218_v62, %v1214_v63  ;;  %1280 = vmatprep.subr.bf16.mxu1 %v1228_v16 }
 0x2ab   : > { %v1226_v60 = vpack.c.bf16 %v1219_v36, %v1215_v32  ;;  %1281 = vmatpush1.bf16.msra.mxu1 %v1227_v28  ;;  %v2394_v28 = vld [vmem:[%s3519_s3 + $0x20] ss:$8 sps:$4 sm:$0xff]  }
 0x2ac   : > { %1374 = vmatprep.subr.bf16.mxu1 %v834_v17  ;;  %v1666_v17 = vpop.permute.xlu1 %1665 }
 0x2ad   : > { %1237 = vmatprep.subr.bf16.mxu0 %v1226_v60 }
 0x2ae   : > { %1238 = vmatpush1.bf16.msra.mxu0 %v1225_v13  ;;  %2292 = vmatmul.mubr.msk.bf16.vlgmr.msra.gmra.mrb[8].mxu1 %vm731_vm8, %v2390_v19 }
 0x2af   : > { %1331 = vmatprep.subr.bf16.mxu0 %v3235_v11  ;;  %1375 = vmatpush1.bf16.msra.mxu1 %v3237_v40  ;;  %v1689_v11 = vsel %vm1687_vm9, %v3239_v12, %v3241_v9  ;;  %v1664_v40 = vpop.permute.xlu0 %1663  ;;  %v1692_v12 = vsel %vm1687_vm9, %v3257_v46, %v3249_v21  ;;  %v1702_v46 = vsel %vm1687_vm9, %v3271_v54, %v3273_v25 }
 0x2b0   : > { %1806 = vmatprep.subr.bf16.mxu1 %v1691_v15  ;;  %1406 = vmatprep.mubr.bf16.mxu1 %v2437_v48  ;;  %v3341_v59 = vpop.permute.xlu1 %1669  ;;  %v1711_v25 = vsel %vm1687_vm9, %v3296_v41, %v3303_v61  ;;  %v1715_v31 = vsel %vm1687_vm9, %v1664_v40, %v1666_v17 }
 0x2b1   : > { %2291 = vmatmul.mubr.msk.bf16.vlgmr.msra.gmra.mrb[8].mxu0 %vm731_vm8, %v2390_v19 }
 0x2b2   : > { %1332 = vmatpush1.bf16.msra.mxu0 %v3233_v2  ;;  %1363 = vmatprep.mubr.bf16.mxu0 %v2437_v48  ;;  %v1690_v2 = vsel %vm1687_vm9, %v3241_v9, %v3243_v42  ;;  %v1694_v9 = vsel %vm1687_vm9, %v3251_v14, %v3253_v47  ;;  %v1693_v42 = vsel %vm1687_vm9, %v3249_v21, %v3251_v14 }
 0x2b3   : > { %1763 = vmatprep.subr.bf16.mxu0 %v1689_v11  ;;  %v1658_v20 = vpop.permute.xlu0 %1657  ;;  %v1697_v14 = vsel %vm1687_vm9, %v3259_v18, %v3261_v8  ;;  %v1696_v21 = vsel %vm1687_vm9, %v3267_v22, %v3259_v18  ;;  %v1701_v8 = vsel %vm1687_vm9, %v3269_v53, %v3271_v54  ;;  %v1700_v18 = vsel %vm1687_vm9, %v3277_v29, %v3269_v53 }
 0x2b4   : > { %v1674_v45 = vpop.permute.xlu1 %1673  ;;  %v1706_v22 = vsel %vm1687_vm9, %v3281_v23, %v3283_v24  ;;  %v1705_v54 = vsel %vm1687_vm9, %v3279_v51, %v3281_v23  ;;  %v1704_v53 = vsel %vm1687_vm9, %v3287_v58, %v3279_v51  ;;  %v1710_v29 = vsel %vm1687_vm9, %v3292_v37, %v3296_v41 }
 0x2b5   : > { %v1709_v23 = vsel %vm1687_vm9, %v3289_v1, %v3292_v37  ;;  %v1708_v51 = vsel %vm1687_vm9, %v3305_v7, %v3289_v1  ;;  %v1714_v58 = vsel %vm1687_vm9, %v3318_v6, %v1664_v40  ;;  %v1713_v41 = vsel %vm1687_vm9, %v3316_v0, %v3318_v6 }
 0x2b6   : > { %v1712_v57 = vsel %vm1687_vm9, %v1658_v20, %v3316_v0 }
 0x2b7   : > { %v1672_v47 = vpop.permute.xlu0 %1671 }
 0x2b8   : > { %v1668_v49 = vpop.permute.xlu1 %1667  ;;  %v1718_v35 = vsel %vm1687_vm9, %v1672_v47, %v1674_v45  ;;  %v1717_v55 = vsel %vm1687_vm9, %v3341_v59, %v1672_v47 }
 0x2b9   : > { %v1716_v56 = vsel %vm1687_vm9, %v1668_v49, %v3341_v59 }
 0x2ba   : > { %2295 = vmatmul.mubr.msk.bf16.vlgmr.msra.gmra.mrb[8].mxu1 %vm731_vm8, %v2391_v43 }
 0x2bb   : > { %1807 = vmatpush1.bf16.msra.mxu1 %v1690_v2  ;;  %2313 = vmatprep.mubr.msk.bf16.mxu1 %vm731_vm8, %v2392_v44  ;;  %v1676_v26 = vpop.permute.xlu0 %1675 }
 0x2bc   : > { %1808 = vmatprep.subr.bf16.mxu1 %v1695_v38  ;;  %v1682_v30 = vpop.permute.xlu1 %1681  ;;  %v1719_v37 = vsel %vm1687_vm9, %v1674_v45, %v1676_v26  ;;  %v2395_v45 = vld [vmem:[%s3521_s5 + $0x10] sm:$0xff]   ;;  %v1994_v26 = vld [vmem:[%s362_s29 + $0x8] sm:$0xff] }
 0x2bd   : > { %2294 = vmatmul.mubr.msk.bf16.vlgmr.msra.gmra.mrb[8].mxu0 %vm731_vm8, %v2391_v43 }
 0x2be   : > { %1764 = vmatpush1.bf16.msra.mxu0 %v1688_v27  ;;  %2312 = vmatprep.mubr.msk.bf16.mxu0 %vm731_vm8, %v2392_v44 }
 0x2bf   : > { %1765 = vmatprep.subr.bf16.mxu0 %v1693_v42  ;;  %1809 = vmatpush1.bf16.msra.mxu1 %v1694_v9  ;;  %v1680_v24 = vpop.permute.xlu0 %1679 }
 0x2c0   : > { %1810 = vmatprep.subr.bf16.mxu1 %v1699_v39  ;;  %v1686_v52 = vpop.permute.xlu1 %1685  ;;  %v1721_v5 = vsel %vm1687_vm9, %v1680_v24, %v1682_v30 }
 0x2c2   : > { %1766 = vmatpush1.bf16.msra.mxu0 %v1692_v12 }
 0x2c3   : > { %1767 = vmatprep.subr.bf16.mxu0 %v1697_v14  ;;  %1811 = vmatpush1.bf16.msra.mxu1 %v1698_v10  ;;  %v1684_v33 = vpop.permute.xlu0 %1683 }
 0x2c4   : > { %1812 = vmatprep.subr.bf16.mxu1 %v1703_v50  ;;  %v1723_v1 = vsel %vm1687_vm9, %v1684_v33, %v1686_v52  ;;  %v1722_v4 = vsel %vm1687_vm9, %v1682_v30, %v1684_v33  ;;  %v1581_v16 = vpop.permute.xlu1 %1580 }
 0x2c6   : > { %1768 = vmatpush1.bf16.msra.mxu0 %v1696_v21 }
 0x2c7   : > { %1769 = vmatprep.subr.bf16.mxu0 %v1701_v8  ;;  %1813 = vmatpush1.bf16.msra.mxu1 %v1702_v46  ;;  %v1678_v34 = vpop.permute.xlu0 %1677  ;;  %v1995_v46 = vld [vmem:[%s362_s29 + $0x10] sm:$0xff] }
 0x2c8   : > { %1814 = vmatprep.subr.bf16.mxu1 %v1707_v3  ;;  %v1720_v63 = vsel %vm1687_vm9, %v1678_v34, %v1680_v24  ;;  %v1971_v50 = vpop.permute.xlu1 %1970  ;;  %v1997_v3 = vld [vmem:[%s362_s29 + $0x30] sm:$0xff] }
 0x2ca   : > { %1770 = vmatpush1.bf16.msra.mxu0 %v1700_v18  ;;  %v2000_v18 = vunpack.c.l.bf16 %v1995_v46 }
 0x2cb   : > { %1771 = vmatprep.subr.bf16.mxu0 %v1705_v54  ;;  %1815 = vmatpush1.bf16.msra.mxu1 %v1706_v22  ;;  %v1586_v61 = vpop.permute.xlu0 %1585 }
 0x2cc   : > { %1816 = vmatprep.subr.bf16.mxu1 %v1711_v25  ;;  %v2019_v54 = vpop.permute.xlu1 %2018 }
 0x2ce   : > { %1772 = vmatpush1.bf16.msra.mxu0 %v1704_v53  ;;  %v2001_v53 = vunpack.c.h.bf16 %v1995_v46 }
 0x2cf   : > { %1773 = vmatprep.subr.bf16.mxu0 %v1709_v23  ;;  %1817 = vmatpush1.bf16.msra.mxu1 %v1710_v29  ;;  %v1976_v21 = vpop.permute.xlu0 %1975  ;;  %v2004_v23 = vunpack.c.l.bf16 %v1997_v3 }
 0x2d0   : > { %1818 = vmatprep.subr.bf16.mxu1 %v1715_v31 }
 0x2d2   : > { %1774 = vmatpush1.bf16.msra.mxu0 %v1708_v51  ;;  %v1998_v51 = vunpack.c.l.bf16 %v1994_v26 }
 0x2d3   : > { %1775 = vmatprep.subr.bf16.mxu0 %v1713_v41  ;;  %1819 = vmatpush1.bf16.msra.mxu1 %v1714_v58  ;;  %v3437_v41 = vpop.permute.xlu0 %2023 }
 0x2d4   : > { %1820 = vmatprep.subr.bf16.mxu1 %v1719_v37 }
 0x2d6   : > { %1776 = vmatpush1.bf16.msra.mxu0 %v1712_v57  ;;  %v2005_v57 = vunpack.c.h.bf16 %v1997_v3 }
 0x2d7   : > { %1777 = vmatprep.subr.bf16.mxu0 %v1717_v55  ;;  %1821 = vmatpush1.bf16.msra.mxu1 %v1718_v35  ;;  %v1996_v35 = vld [vmem:[%s362_s29 + $0x28] sm:$0xff] }
 0x2d8   : > { %1822 = vmatprep.subr.bf16.mxu1 %v1723_v1 }
 0x2da   : > { %1778 = vmatpush1.bf16.msra.mxu0 %v1716_v56 }
 0x2db   : > { %1779 = vmatprep.subr.bf16.mxu0 %v1721_v5  ;;  %1823 = vmatpush1.bf16.msra.mxu1 %v1722_v4  ;;  %v1999_v5 = vunpack.c.h.bf16 %v1994_v26 }
 0x2de   : > { %1780 = vmatpush1.bf16.msra.mxu0 %v1720_v63  ;;  %1839 = vmatmul.mubr.bf16.vlgmr.msra.gmra.mrb[12].mxu1 %v2394_v28 }
 0x2df   : > { %1947 = vmatprep.mubr.bf16.mxu1 %v2437_v48 }
 0x2e1   : > { %1796 = vmatmul.mubr.bf16.vlgmr.msra.gmra.mrb[12].mxu0 %v2394_v28 }
 0x2e2   : > { %1904 = vmatprep.mubr.bf16.mxu0 %v2437_v48 }
 0x3b1   : > { %v1840_v62 = vpop.f32.mrb[12].mxu1 }
 0x3b2   : > { %v1841_v32 = vadd.f32 %v1840_v62, %v1581_v16  ;;  %v1842_v36 = vpop.f32.mrb[13].mxu1 }
 0x3b3   : > { %v1843_v7 = vadd.f32 %v1842_v36, %v1581_v16  ;;  %v1844_v13 = vpop.f32.mrb[14].mxu1 }
 0x3b4   : > { %v1845_v19 = vadd.f32 %v1844_v13, %v1586_v61  ;;  %v1797_v60 = vpop.f32.mrb[12].mxu0  ;;  %v1846_v15 = vpop.f32.mrb[15].mxu1  ;;  %v1851_v40 = vmax.f32 %v1841_v32, 0.0  ;;  %v2002_v13 = vunpack.c.l.bf16 %v1996_v35 }
 0x3b5   : > { %v1798_v0 = vadd.f32 %v1797_v60, %v1581_v16  ;;  %v1847_v6 = vadd.f32 %v1846_v15, %v1586_v61  ;;  %v1799_v11 = vpop.f32.mrb[13].mxu0  ;;  %v1852_v2 = vmax.f32 %v1843_v7, 0.0 }
 0x3b6   : > { %v1855_v17 = vmax.f32 %v1845_v19, 0.0  ;;  %v1800_v43 = vadd.f32 %v1799_v11, %v1581_v16  ;;  %v1801_v44 = vpop.f32.mrb[14].mxu0  ;;  %v2039_v19 = vpop.permute.xlu1 %2038 }
 0x3b7   : > { %v1856_v38 = vmax.f32 %v1847_v6, 0.0  ;;  %v1802_v48 = vadd.f32 %v1801_v44, %v1586_v61  ;;  %v1803_v20 = vpop.f32.mrb[15].mxu0  ;;  %v1849_v9 = vmax.f32 %v1798_v0, 0.0  ;;  %v2044_v44 = vpop.permute.xlu0 %2043 }
 0x3b8   : > { %v1862_v59 = vpack.c.bf16 %v1855_v17, %v1851_v40  ;;  %v1804_v27 = vadd.f32 %v1803_v20, %v1586_v61  ;;  %v1850_v12 = vmax.f32 %v1800_v43, 0.0 }
 0x3b9   : > { %v1863_v42 = vpack.c.bf16 %v1856_v38, %v1852_v2  ;;  %v1853_v39 = vmax.f32 %v1802_v48, 0.0 }
 0x3ba   : > { %v1854_v10 = vmax.f32 %v1804_v27, 0.0 }
 0x3bb   : > { %v1860_v47 = vpack.c.bf16 %v1853_v39, %v1849_v9  ;;  %1915 = vmatprep.subr.bf16.mxu1 %v1863_v42  ;;  %v2003_v9 = vunpack.c.h.bf16 %v1996_v35 }
 0x3bc   : > { %v1861_v14 = vpack.c.bf16 %v1854_v10, %v1850_v12  ;;  %1916 = vmatpush1.bf16.msra.mxu1 %v1862_v59 }
 0x3be   : > { %1872 = vmatprep.subr.bf16.mxu0 %v1861_v14 }
 0x3bf   : > { %1873 = vmatpush1.bf16.msra.mxu0 %v1860_v47  ;;  %2318 = vmatmul.mubr.msk.bf16.vlgmr.msra.gmra.mrb[8].mxu1 %vm731_vm8, %v2395_v45 }
 0x3c2   : > { %2317 = vmatmul.mubr.msk.bf16.vlgmr.msra.gmra.mrb[8].mxu0 %vm731_vm8, %v2395_v45 }
 0x492   : > { %v1949_v8 = vpop.f32.mrb[8].mxu1 }
 0x493   : > { %v1980_v49 = vadd.f32 %v1971_v50, %v1949_v8  ;;  %v1951_v22 = vpop.f32.mrb[9].mxu1 }
 0x494   : > { %v1981_v25 = vadd.f32 %v1971_v50, %v1951_v22  ;;  %v1953_v29 = vpop.f32.mrb[10].mxu1 }
 0x495   : > { %v1988_v24 = vmax.f32 %v1980_v49, 0.0  ;;  %v1984_v30 = vadd.f32 %v1976_v21, %v1953_v29  ;;  %v1906_v31 = vpop.f32.mrb[8].mxu0  ;;  %v1955_v58 = vpop.f32.mrb[11].mxu1 }
 0x496   : > { %v1989_v37 = vmax.f32 %v1981_v25, 0.0  ;;  %v1978_v33 = vadd.f32 %v1971_v50, %v1906_v31  ;;  %v1985_v52 = vadd.f32 %v1976_v21, %v1955_v58  ;;  %v1908_v1 = vpop.f32.mrb[9].mxu0 }
 0x497   : > { %v2008_v55 = vadd.f32 %v2000_v18, %v1988_v24  ;;  %v1992_v56 = vmax.f32 %v1984_v30, 0.0  ;;  %v1979_v4 = vadd.f32 %v1971_v50, %v1908_v1  ;;  %v1910_v28 = vpop.f32.mrb[10].mxu0 }
 0x498   : > { %v2009_v34 = vadd.f32 %v2001_v53, %v1989_v37  ;;  %v1986_v63 = vmax.f32 %v1978_v33, 0.0  ;;  %v1993_v16 = vmax.f32 %v1985_v52, 0.0  ;;  %v1982_v62 = vadd.f32 %v1976_v21, %v1910_v28  ;;  %v1912_v32 = vpop.f32.mrb[11].mxu0 }
 0x499   : > { %v2028_v36 = vmul.f32 %v2019_v54, %v2008_v55  ;;  %v2012_v61 = vadd.f32 %v2004_v23, %v1992_v56  ;;  %v1987_v7 = vmax.f32 %v1979_v4, 0.0  ;;  %v1983_v43 = vadd.f32 %v1976_v21, %v1912_v32 }
 0x49a   : > { %v2029_v60 = vmul.f32 %v2019_v54, %v2009_v34  ;;  %v2006_v15 = vadd.f32 %v1998_v51, %v1986_v63  ;;  %v2013_v0 = vadd.f32 %v2005_v57, %v1993_v16  ;;  %v1990_v6 = vmax.f32 %v1982_v62, 0.0 }
 0x49b   : > { %v3439_v11 = vadd.f32 %v2039_v19, %v2028_v36  ;;  %v2032_v40 = vmul.f32 %v3437_v41, %v2012_v61  ;;  %v2007_v17 = vadd.f32 %v1999_v5, %v1987_v7  ;;  %v1991_v50 = vmax.f32 %v1983_v43, 0.0  ;;  %v2127_v7 = vld [vmem:[%s3490_s15 + $0x10] sm:$0xff] }
 0x49c   : > { %v3442_v2 = vadd.f32 %v2039_v19, %v2029_v60  ;;  %v2026_v38 = vmul.f32 %v2019_v54, %v2006_v15  ;;  %v2033_v48 = vmul.f32 %v3437_v41, %v2013_v0  ;;  %v2010_v10 = vadd.f32 %v2002_v13, %v1990_v6  ;;  %v2126_v15 = vld [vmem:[%s3490_s15 + $0x8] sm:$0xff] }
 0x49d   : > { %v2064_v20 = vmul.f32 0.044715, %v3439_v11  ;;  %v3446_v59 = vadd.f32 %v2044_v44, %v2032_v40  ;;  %v2027_v27 = vmul.f32 %v2019_v54, %v2007_v17  ;;  %v2011_v24 = vadd.f32 %v2003_v9, %v1991_v50 }
 0x49e   : > { %v2065_v42 = vmul.f32 0.044715, %v3442_v2  ;;  %v3449_v39 = vadd.f32 %v2039_v19, %v2026_v38  ;;  %v3451_v12 = vadd.f32 %v2044_v44, %v2033_v48  ;;  %v2030_v54 = vmul.f32 %v3437_v41, %v2010_v10 }
 0x49f   : > { %v2072_v47 = vmul.f32 %v2064_v20, %v3439_v11  ;;  %v2068_v45 = vmul.f32 0.044715, %v3446_v59  ;;  %v3455_v14 = vadd.f32 %v2039_v19, %v2027_v27  ;;  %v2031_v52 = vmul.f32 %v3437_v41, %v2011_v24  ;;  %v2129_v19 = vld [vmem:[%s3490_s15 + $0x30] sm:$0xff] }
 0x4a0   : > { %v2073_v21 = vmul.f32 %v2065_v42, %v3442_v2  ;;  %v2062_v46 = vmul.f32 0.044715, %v3449_v39  ;;  %v2069_v26 = vmul.f32 0.044715, %v3451_v12  ;;  %v3472_v51 = vadd.f32 %v2044_v44, %v2030_v54 }
 0x4a1   : > { %v2080_v8 = vmul.f32 %v2072_v47, %v3439_v11  ;;  %v2076_v3 = vmul.f32 %v2068_v45, %v3446_v59  ;;  %v2063_v22 = vmul.f32 0.044715, %v3455_v14  ;;  %v3482_v34 = vadd.f32 %v2044_v44, %v2031_v52 }
 0x4a2   : > { %v2081_v49 = vmul.f32 %v2073_v21, %v3442_v2  ;;  %v2070_v18 = vmul.f32 %v2062_v46, %v3449_v39  ;;  %v2077_v29 = vmul.f32 %v2069_v26, %v3451_v12  ;;  %v2066_v4 = vmul.f32 0.044715, %v3472_v51 }
 0x4a3   : > { %v2088_v25 = vadd.f32 %v2080_v8, %v3439_v11  ;;  %v2084_v53 = vmul.f32 %v2076_v3, %v3446_v59  ;;  %v2071_v31 = vmul.f32 %v2063_v22, %v3455_v14  ;;  %v2067_v62 = vmul.f32 0.044715, %v3482_v34 }
 0x4a4   : > { %v2089_v30 = vadd.f32 %v2081_v49, %v3442_v2  ;;  %v2078_v23 = vmul.f32 %v2070_v18, %v3449_v39  ;;  %v2085_v33 = vmul.f32 %v2077_v29, %v3451_v12  ;;  %v2074_v63 = vmul.f32 %v2066_v4, %v3472_v51 }
 0x4a5   : > { %v2096_v58 = vmul.f32 0.7978846, %v2088_v25  ;;  %v2092_v37 = vadd.f32 %v2084_v53, %v3446_v59  ;;  %v2079_v35 = vmul.f32 %v2071_v31, %v3455_v14  ;;  %v2075_v36 = vmul.f32 %v2067_v62, %v3482_v34 }
 0x4a6   : > { %v2097_v57 = vmul.f32 0.7978846, %v2089_v30  ;;  %v2086_v1 = vadd.f32 %v2078_v23, %v3449_v39  ;;  %v2093_v56 = vadd.f32 %v2085_v33, %v3451_v12  ;;  %v2082_v32 = vmul.f32 %v2074_v63, %v3472_v51  ;;  %v2128_v33 = vld [vmem:[%s3490_s15 + $0x28] sm:$0xff] }
 0x4a7   : > { %2396 = vtanh.f32 %v2096_v58  ;;  %v2100_v55 = vmul.f32 0.7978846, %v2092_v37  ;;  %v2087_v28 = vadd.f32 %v2079_v35, %v3455_v14  ;;  %v2083_v13 = vmul.f32 %v2075_v36, %v3482_v34 }
 0x4a8   : > { %2398 = vtanh.f32 %v2097_v57  ;;  %v2094_v5 = vmul.f32 0.7978846, %v2086_v1  ;;  %v2101_v41 = vmul.f32 0.7978846, %v2093_v56  ;;  %v2090_v61 = vadd.f32 %v2082_v32, %v3472_v51 }
 0x4a9   : > { %2400 = vtanh.f32 %v2100_v55  ;;  %v2095_v16 = vmul.f32 0.7978846, %v2087_v28  ;;  %v2091_v0 = vadd.f32 %v2083_v13, %v3482_v34  ;;  %v2132_v40 = vunpack.c.l.bf16 %v2127_v7 }
 0x4aa   : > { %2402 = vtanh.f32 %v2094_v5  ;;  %v2098_v60 = vmul.f32 0.7978846, %v2090_v61  ;;  %v2133_v17 = vunpack.c.h.bf16 %v2127_v7  ;;  %v2056_v44 = vmul.f32 0.5, %v3439_v11 }
 0x4ab   : > { %2404 = vtanh.f32 %v2101_v41  ;;  %v2136_v48 = vunpack.c.l.bf16 %v2129_v19  ;;  %v2099_v20 = vmul.f32 0.7978846, %v2091_v0  ;;  %v2057_v9 = vmul.f32 0.5, %v3442_v2 }
 0x4ac   : > { %2406 = vtanh.f32 %v2095_v16  ;;  %v2130_v10 = vunpack.c.l.bf16 %v2126_v15  ;;  %v2137_v47 = vunpack.c.h.bf16 %v2129_v19  ;;  %v2060_v21 = vmul.f32 0.5, %v3446_v59 }
 0x4ad   : > { %2408 = vtanh.f32 %v2098_v60  ;;  %v2054_v11 = vmul.f32 0.5, %v3449_v39  ;;  %v2131_v49 = vunpack.c.h.bf16 %v2126_v15  ;;  %v2061_v54 = vmul.f32 0.5, %v3451_v12 }
 0x4ae   : > { %2410 = vtanh.f32 %v2099_v20  ;;  %v2055_v59 = vmul.f32 0.5, %v3455_v14  ;;  %v2058_v1 = vmul.f32 0.5, %v3472_v51  ;;  %v2134_v55 = vunpack.c.l.bf16 %v2128_v33 }
 0x4af   : > { %v2059_v5 = vmul.f32 0.5, %v3482_v34  ;;  %v2135_v41 = vunpack.c.h.bf16 %v2128_v33 }
 0x4b1   : > { %v2397_v6 = vpop.eup %2396 }
 0x4b2   : > { %v2399_v43 = vpop.eup %2398  ;;  %v2112_v38 = vadd.f32 1.0, %v2397_v6 }
 0x4b3   : > { %v2401_v27 = vpop.eup %2400  ;;  %v2113_v42 = vadd.f32 1.0, %v2399_v43 }
 0x4b4   : > { %v2403_v45 = vpop.eup %2402  ;;  %v2120_v50 = vmul.f32 %v2112_v38, %v2056_v44  ;;  %v2116_v46 = vadd.f32 1.0, %v2401_v27 }
 0x4b5   : > { %v2405_v8 = vpop.eup %2404  ;;  %v2121_v3 = vmul.f32 %v2113_v42, %v2057_v9  ;;  %v2110_v26 = vadd.f32 1.0, %v2403_v45 }
 0x4b6   : > { %v2407_v18 = vpop.eup %2406  ;;  %v2140_v22 = vadd.f32 %v2132_v40, %v2120_v50  ;;  %v2124_v2 = vmul.f32 %v2116_v46, %v2060_v21  ;;  %v2117_v25 = vadd.f32 1.0, %v2405_v8 }
 0x4b7   : > { %v2141_v53 = vadd.f32 %v2133_v17, %v2121_v3  ;;  %v2118_v29 = vmul.f32 %v2110_v26, %v2054_v11  ;;  %v2111_v24 = vadd.f32 1.0, %v2407_v18  ;;  %v2409_v52 = vpop.eup %2408 }
 0x4b8   : > { %v2144_v30 = vadd.f32 %v2136_v48, %v2124_v2  ;;  %v2125_v39 = vmul.f32 %v2117_v25, %v2061_v54  ;;  %v2114_v35 = vadd.f32 1.0, %v2409_v52  ;;  %v2411_v56 = vpop.eup %2410 }
 0x4b9   : > { %v2330_v23 = vpack.c.bf16 %v2141_v53, %v2140_v22  ;;  %v2138_v31 = vadd.f32 %v2130_v10, %v2118_v29  ;;  %v2119_v58 = vmul.f32 %v2111_v24, %v2055_v59  ;;  %v2115_v28 = vadd.f32 1.0, %v2411_v56 }
 0x4ba   : > { %v2145_v37 = vadd.f32 %v2137_v47, %v2125_v39  ;;  %v2122_v4 = vmul.f32 %v2114_v35, %v2058_v1 }
 0x4bb   : > { %2171 = vst [vmem:[%s372_s10 + $0x8] sm:$0xff] %v2330_v23  ;;  %v2139_v12 = vadd.f32 %v2131_v49, %v2119_v58  ;;  %v2123_v16 = vmul.f32 %v2115_v28, %v2059_v5 }
 0x4bc   : > { %v2332_v57 = vpack.c.bf16 %v2145_v37, %v2144_v30  ;;  %v2142_v63 = vadd.f32 %v2134_v55, %v2122_v4 }
 0x4bd   : > { %v2329_v14 = vpack.c.bf16 %v2139_v12, %v2138_v31  ;;  %v2143_v62 = vadd.f32 %v2135_v41, %v2123_v16 }
 0x4be   : > { %2173 = vst [vmem:[%s372_s10 + $0x18] sm:$0xff] %v2332_v57 }
 0x4bf   : > { %2170 = vst [vmem:[%s372_s10] sm:$0xff] %v2329_v14  ;;  %v2331_v32 = vpack.c.bf16 %v2143_v62, %v2142_v63 }
 0x4c1   : > { %2172 = vst [vmem:[%s372_s10 + $0x10] sm:$0xff] %v2331_v32 }
 0x4c2 PF: > { %s19_s30 = sadd.s32 1, %s2418_s30  }
 0x4c3   : > { %p16_p4 = scmp.ge.s32.totalorder %s19_s30, 4  }
 0x4c5   :  { %18 = sbr.rel (!%p16_p4) target bundleno = 1 (0x1), region = 98 }

</bundles_post_ra>
